<compile_context>
chip_gen: v7x
topology: tpu7x:2x2x1
jax: 0.10.0
libtpu: 0.0.40
codegen_flags: <defaults>
</compile_context>

<pallas_src>
import functools
import math

import jax
import jax.numpy as jnp
from jax.experimental import pallas as pl
from jax.experimental.pallas import tpu as pltpu


def _layer_norm(x, gamma, beta, eps=1e-5):
    mu = jnp.mean(x, axis=-1, keepdims=True)
    var = jnp.mean((x - mu) ** 2, axis=-1, keepdims=True)
    return (x - mu) * jax.lax.rsqrt(var + eps) * gamma + beta


def _encoder_kernel(x_ref, w_attn_ref, w_ffn1_ref, w_ffn2_ref, vec_d_ref, vec_h_ref,
                    out_ref, *, n_layers, n_heads, d_model, block_b, seq_len):
    hd = d_model // n_heads
    rows = block_b * seq_len          # batch flattened into the matmul M dim
    bf16 = jnp.bfloat16

    x = x_ref[...].reshape(rows, d_model).astype(jnp.float32)

    def to_heads(t):                  # [rows, D] -> [H*block_b, S, hd]
        t = t.reshape(rows, n_heads, hd)
        t = jnp.transpose(t, (1, 0, 2))           # [H, rows, hd]
        return t.reshape(n_heads * block_b, seq_len, hd)

    def from_heads(t):                # [H*block_b, S, hd] -> [rows, D]
        t = t.reshape(n_heads, rows, hd)
        t = jnp.transpose(t, (1, 0, 2))           # [rows, H, hd]
        return t.reshape(rows, d_model)

    for l in range(n_layers):
        bq = vec_d_ref[l, 0]
        bk = vec_d_ref[l, 1]
        bv = vec_d_ref[l, 2]
        bo = vec_d_ref[l, 3]
        ln1w = vec_d_ref[l, 4]
        ln1b = vec_d_ref[l, 5]
        ln2w = vec_d_ref[l, 6]
        ln2b = vec_d_ref[l, 7]
        b2 = vec_d_ref[l, 8]
        b1 = vec_h_ref[l, 0]

        # --- pre-LN multi-head self-attention block ---
        h = _layer_norm(x, ln1w, ln1b)
        hb = h.astype(bf16)
        # NOTE: the 1/sqrt(head_dim) scale is folded into w_attn[:,0]/bq at pack time.
        q = jnp.dot(hb, w_attn_ref[l, 0], preferred_element_type=jnp.float32) + bq
        k = jnp.dot(hb, w_attn_ref[l, 1], preferred_element_type=jnp.float32) + bk
        v = jnp.dot(hb, w_attn_ref[l, 2], preferred_element_type=jnp.float32) + bv

        qg = to_heads(q)
        kg = to_heads(k)
        vg = to_heads(v)

        s = jnp.einsum('gqd,gkd->gqk', qg.astype(bf16), kg.astype(bf16),
                       preferred_element_type=jnp.float32)     # [G, S, S]
        s = s - jnp.max(s, axis=-1, keepdims=True)
        p = jnp.exp(s)
        p = p * pl.reciprocal(jnp.sum(p, axis=-1, keepdims=True), approx=True)
        og = jnp.einsum('gqk,gkd->gqd', p.astype(bf16), vg.astype(bf16),
                        preferred_element_type=jnp.float32)    # [G, S, hd]

        o = from_heads(og)
        attn = jnp.dot(o.astype(bf16), w_attn_ref[l, 3],
                       preferred_element_type=jnp.float32) + bo
        x = x + attn                  # dropout1 is identity at inference

        # --- pre-LN feed-forward block (ReLU activation, PyTorch default) ---
        h2 = _layer_norm(x, ln2w, ln2b)
        ff = jnp.dot(h2.astype(bf16), w_ffn1_ref[l],
                     preferred_element_type=jnp.float32) + b1
        ff = jnp.maximum(ff, 0.0)
        ff = jnp.dot(ff.astype(bf16), w_ffn2_ref[l],
                     preferred_element_type=jnp.float32) + b2
        x = x + ff                    # dropout2 is identity at inference

    out_ref[...] = x.reshape(block_b, seq_len, d_model).astype(out_ref.dtype)


def encoder_forward(x_emb, packed, *, n_layers, n_heads, block_b=None):
    """Runs the transformer encoder in one Pallas kernel. Returns hidden [B, S, D]."""
    B, S, D = x_emb.shape
    if block_b is None:
        # Keep >= 2 grid steps so v7x's two TensorCores both get work.
        block_b = B // 2 if (B >= 2 and B % 2 == 0) else 1
    assert B % block_b == 0, "batch must be divisible by block_b"
    grid = (B // block_b,)

    w_attn = packed["w_attn"]
    w_ffn1 = packed["w_ffn1"]
    w_ffn2 = packed["w_ffn2"]
    vec_d = packed["vec_d"]
    vec_h = packed["vec_h"]

    kernel = functools.partial(_encoder_kernel, n_layers=n_layers, n_heads=n_heads,
                               d_model=D, block_b=block_b, seq_len=S)

    def resident(a):
        return pl.BlockSpec(a.shape, lambda b, _nd=a.ndim: (0,) * _nd)

    hidden = pl.pallas_call(
        kernel,
        grid=grid,
        in_specs=[pl.BlockSpec((block_b, S, D), lambda b: (b, 0, 0)),
                  resident(w_attn), resident(w_ffn1), resident(w_ffn2),
                  resident(vec_d), resident(vec_h)],
        out_specs=pl.BlockSpec((block_b, S, D), lambda b: (b, 0, 0)),
        out_shape=jax.ShapeDtypeStruct((B, S, D), jnp.float32),
        compiler_params=pltpu.CompilerParams(dimension_semantics=("parallel",)),
    )(x_emb, w_attn, w_ffn1, w_ffn2, vec_d, vec_h)
    return hidden


def normal_param_extractor(x):
    """torchrl NormalParamExtractor default: chunk in 2, biased_softplus_1.0 on scale."""
    loc, scale_raw = jnp.split(x, 2, axis=-1)
    bias = jnp.log(jnp.expm1(jnp.float32(1.0)))  # softplus(bias) == 1.0
    scale = jax.nn.softplus(scale_raw + bias)
    scale = jnp.maximum(scale, 1e-4)
    return loc, scale


def polynomial_transformer_forward(polynomial, params, packed, *, n_layers, n_heads,
                                   block_b=None):
    # Embedding lookup (gather) kept as JAX glue.
    x_emb = params["emb"][polynomial]                      # [B, S, d_model]
    hidden = encoder_forward(x_emb, packed, n_layers=n_layers, n_heads=n_heads,
                             block_b=block_b)
    # Lane-dense kernel output: the 2-wide head + mean-pool stay outside the kernel.
    logits = hidden @ params["wh"] + params["bh"]          # [B, S, 2]
    pooled = jnp.mean(logits, axis=1)                      # [B, 2]
    loc, scale = normal_param_extractor(pooled)
    return (loc, scale), logits


def init_params(key, *, vocab, d_model, d_hidden, n_layers, n_out=2):
    # Math layout: activations are multiplied as x @ W (W is [in, out]).
    # NOTE: real PyTorch checkpoints store Linear/in_proj weights as [out, in]
    # and would need transposition before packing.
    ks = jax.random.split(key, 6)
    std = 0.02
    f32 = jnp.float32
    return {
        "emb":  (jax.random.normal(ks[0], (vocab, d_model)) * std).astype(f32),
        "wqkv": (jax.random.normal(ks[1], (n_layers, d_model, 3 * d_model)) * std).astype(f32),
        "bqkv": jnp.zeros((n_layers, 3 * d_model), f32),
        "wo":   (jax.random.normal(ks[2], (n_layers, d_model, d_model)) * std).astype(f32),
        "bo":   jnp.zeros((n_layers, d_model), f32),
        "ln1w": jnp.ones((n_layers, d_model), f32),
        "ln1b": jnp.zeros((n_layers, d_model), f32),
        "ln2w": jnp.ones((n_layers, d_model), f32),
        "ln2b": jnp.zeros((n_layers, d_model), f32),
        "w1":   (jax.random.normal(ks[3], (n_layers, d_model, d_hidden)) * std).astype(f32),
        "b1":   jnp.zeros((n_layers, d_hidden), f32),
        "w2":   (jax.random.normal(ks[4], (n_layers, d_hidden, d_model)) * std).astype(f32),
        "b2":   jnp.zeros((n_layers, d_model), f32),
        "wh":   (jax.random.normal(ks[5], (d_model, n_out)) * std).astype(f32),
        "bh":   jnp.zeros((n_out,), f32),
    }


def pack_params(params, *, n_layers, n_heads):
    """Collapse the per-layer parameters into a few VMEM-resident slabs.

    w_attn [L,4,D,D] (bf16): wq (pre-scaled by 1/sqrt(hd)), wk, wv, wo
    w_ffn1 [L,D,H]   (bf16), w_ffn2 [L,H,D] (bf16)
    vec_d  [L,9,D]   (f32):  bq*scale, bk, bv, bo, ln1w, ln1b, ln2w, ln2b, b2
    vec_h  [L,1,H]   (f32):  b1
    """
    D = params["wqkv"].shape[1]
    H = params["w1"].shape[2]
    hd = D // n_heads
    scale = 1.0 / math.sqrt(hd)

    wqkv3 = params["wqkv"].reshape(n_layers, D, 3, D).transpose(0, 2, 1, 3)  # [L,3,D,D]
    w_attn = jnp.stack(
        [wqkv3[:, 0] * scale, wqkv3[:, 1], wqkv3[:, 2], params["wo"]],
        axis=1).astype(jnp.bfloat16)                                          # [L,4,D,D]

    vec_d = jnp.stack([
        params["bqkv"][:, 0:D] * scale,          # bq (scale folded in)
        params["bqkv"][:, D:2 * D],              # bk
        params["bqkv"][:, 2 * D:3 * D],          # bv
        params["bo"],
        params["ln1w"], params["ln1b"],
        params["ln2w"], params["ln2b"],
        params["b2"],
    ], axis=1).astype(jnp.float32)                                            # [L,9,D]

    vec_h = params["b1"].reshape(n_layers, 1, H).astype(jnp.float32)          # [L,1,H]

    return {
        "w_attn": w_attn,
        "w_ffn1": params["w1"].astype(jnp.bfloat16),
        "w_ffn2": params["w2"].astype(jnp.bfloat16),
        "vec_d": vec_d,
        "vec_h": vec_h,
    }


if __name__ == "__main__":
    # Small config consistent with PolynomialModelConfig (policy model -> head dim 2).
    n_monomials = 16
    use_input_height = True
    vocab = n_monomials + int(use_input_height)
    d_model, d_hidden, n_layers, n_heads = 32, 64, 2, 4
    B, S = 8, 8   # block_b=4 -> grid of 2 steps, M=32 rows per matmul

    key = jax.random.PRNGKey(0)
    k_params, k_poly = jax.random.split(key)
    params = init_params(k_params, vocab=vocab, d_model=d_model,
                         d_hidden=d_hidden, n_layers=n_layers, n_out=2)
    packed = pack_params(params, n_layers=n_layers, n_heads=n_heads)

    polynomial = jax.random.randint(k_poly, (B, S), 0, vocab, dtype=jnp.int32)

    (loc, scale), logits = polynomial_transformer_forward(
        polynomial, params, packed, n_layers=n_layers, n_heads=n_heads)
    jax.block_until_ready((loc, scale, logits))

    assert loc.shape == (B, 1) and scale.shape == (B, 1) and logits.shape == (B, S, 2)
    # TODO(synk): dropout (p=0.1) is treated as identity (inference mode).
    print("KERNEL_OK")
</pallas_src>

<mosaic_0001>
module attributes {stable_mosaic.version = 11 : i64} {
  func.func @_encoder_kernel(%arg0: i32, %arg1: memref<4x8x32xf32, #tpu.memory_space<vmem>>, %arg2: memref<2x4x32x32xbf16, #tpu.memory_space<vmem>>, %arg3: memref<2x32x64xbf16, #tpu.memory_space<vmem>>, %arg4: memref<2x64x32xbf16, #tpu.memory_space<vmem>>, %arg5: memref<2x9x32xf32, #tpu.memory_space<vmem>>, %arg6: memref<2x1x64xf32, #tpu.memory_space<vmem>>, %arg7: memref<4x8x32xf32, #tpu.memory_space<vmem>>) attributes {dimension_semantics = [#tpu.dimension_semantics<parallel>], iteration_bounds = array<i64: 2>, scalar_prefetch = 0 : i64, scratch_operands = 0 : i64, tpu.core_type = #tpu.core_type<tc>, window_params = [{transform_indices = @transform_0, window_bounds = array<i64: 4, 8, 32>}, {pipeline_mode = #tpu.pipeline_mode<synchronous>, transform_indices = @transform_1, window_bounds = array<i64: 2, 4, 32, 32>}, {pipeline_mode = #tpu.pipeline_mode<synchronous>, transform_indices = @transform_2, window_bounds = array<i64: 2, 32, 64>}, {pipeline_mode = #tpu.pipeline_mode<synchronous>, transform_indices = @transform_3, window_bounds = array<i64: 2, 64, 32>}, {pipeline_mode = #tpu.pipeline_mode<synchronous>, transform_indices = @transform_4, window_bounds = array<i64: 2, 9, 32>}, {pipeline_mode = #tpu.pipeline_mode<synchronous>, transform_indices = @transform_5, window_bounds = array<i64: 2, 1, 64>}, {transform_indices = @transform_6, window_bounds = array<i64: 4, 8, 32>}]} {
    %c0 = arith.constant 0 : index
    %c0_0 = arith.constant 0 : index
    %c0_1 = arith.constant 0 : index
    %0 = vector.load %arg1[%c0, %c0_0, %c0_1] : memref<4x8x32xf32, #tpu.memory_space<vmem>>, vector<4x8x32xf32>
    %1 = vector.shape_cast %0 : vector<4x8x32xf32> to vector<32x32xf32>
    %c0_2 = arith.constant 0 : index
    %c0_3 = arith.constant 0 : index
    %c0_4 = arith.constant 0 : index
    %2 = vector.load %arg5[%c0_2, %c0_3, %c0_4] : memref<2x9x32xf32, #tpu.memory_space<vmem>>, vector<1x1x32xf32>
    %3 = vector.shape_cast %2 : vector<1x1x32xf32> to vector<32xf32>
    %c0_5 = arith.constant 0 : index
    %c1 = arith.constant 1 : index
    %c0_6 = arith.constant 0 : index
    %4 = vector.load %arg5[%c0_5, %c1, %c0_6] : memref<2x9x32xf32, #tpu.memory_space<vmem>>, vector<1x1x32xf32>
    %5 = vector.shape_cast %4 : vector<1x1x32xf32> to vector<32xf32>
    %c0_7 = arith.constant 0 : index
    %c2 = arith.constant 2 : index
    %c0_8 = arith.constant 0 : index
    %6 = vector.load %arg5[%c0_7, %c2, %c0_8] : memref<2x9x32xf32, #tpu.memory_space<vmem>>, vector<1x1x32xf32>
    %7 = vector.shape_cast %6 : vector<1x1x32xf32> to vector<32xf32>
    %c0_9 = arith.constant 0 : index
    %c3 = arith.constant 3 : index
    %c0_10 = arith.constant 0 : index
    %8 = vector.load %arg5[%c0_9, %c3, %c0_10] : memref<2x9x32xf32, #tpu.memory_space<vmem>>, vector<1x1x32xf32>
    %9 = vector.shape_cast %8 : vector<1x1x32xf32> to vector<32xf32>
    %c0_11 = arith.constant 0 : index
    %c4 = arith.constant 4 : index
    %c0_12 = arith.constant 0 : index
    %10 = vector.load %arg5[%c0_11, %c4, %c0_12] : memref<2x9x32xf32, #tpu.memory_space<vmem>>, vector<1x1x32xf32>
    %11 = vector.shape_cast %10 : vector<1x1x32xf32> to vector<32xf32>
    %c0_13 = arith.constant 0 : index
    %c5 = arith.constant 5 : index
    %c0_14 = arith.constant 0 : index
    %12 = vector.load %arg5[%c0_13, %c5, %c0_14] : memref<2x9x32xf32, #tpu.memory_space<vmem>>, vector<1x1x32xf32>
    %13 = vector.shape_cast %12 : vector<1x1x32xf32> to vector<32xf32>
    %c0_15 = arith.constant 0 : index
    %c6 = arith.constant 6 : index
    %c0_16 = arith.constant 0 : index
    %14 = vector.load %arg5[%c0_15, %c6, %c0_16] : memref<2x9x32xf32, #tpu.memory_space<vmem>>, vector<1x1x32xf32>
    %15 = vector.shape_cast %14 : vector<1x1x32xf32> to vector<32xf32>
    %c0_17 = arith.constant 0 : index
    %c7 = arith.constant 7 : index
    %c0_18 = arith.constant 0 : index
    %16 = vector.load %arg5[%c0_17, %c7, %c0_18] : memref<2x9x32xf32, #tpu.memory_space<vmem>>, vector<1x1x32xf32>
    %17 = vector.shape_cast %16 : vector<1x1x32xf32> to vector<32xf32>
    %c0_19 = arith.constant 0 : index
    %c8 = arith.constant 8 : index
    %c0_20 = arith.constant 0 : index
    %18 = vector.load %arg5[%c0_19, %c8, %c0_20] : memref<2x9x32xf32, #tpu.memory_space<vmem>>, vector<1x1x32xf32>
    %19 = vector.shape_cast %18 : vector<1x1x32xf32> to vector<32xf32>
    %c0_21 = arith.constant 0 : index
    %c0_22 = arith.constant 0 : index
    %c0_23 = arith.constant 0 : index
    %20 = vector.load %arg6[%c0_21, %c0_22, %c0_23] : memref<2x1x64xf32, #tpu.memory_space<vmem>>, vector<1x1x64xf32>
    %21 = vector.shape_cast %20 : vector<1x1x64xf32> to vector<64xf32>
    %cst = arith.constant dense<0.000000e+00> : vector<32xf32>
    %22 = vector.multi_reduction <add>, %1, %cst [1] : vector<32x32xf32> to vector<32xf32>
    %23 = vector.shape_cast %22 : vector<32xf32> to vector<32x1xf32>
    %cst_24 = arith.constant 3.200000e+01 : f32
    %24 = vector.broadcast %cst_24 : f32 to vector<32x1xf32>
    %25 = arith.divf %23, %24 : vector<32x1xf32>
    %26 = vector.broadcast %25 : vector<32x1xf32> to vector<32x32xf32>
    %27 = arith.subf %1, %26 : vector<32x32xf32>
    %28 = arith.mulf %27, %27 : vector<32x32xf32>
    %cst_25 = arith.constant dense<0.000000e+00> : vector<32xf32>
    %29 = vector.multi_reduction <add>, %28, %cst_25 [1] : vector<32x32xf32> to vector<32xf32>
    %30 = vector.shape_cast %29 : vector<32xf32> to vector<32x1xf32>
    %cst_26 = arith.constant 3.200000e+01 : f32
    %31 = vector.broadcast %cst_26 : f32 to vector<32x1xf32>
    %32 = arith.divf %30, %31 : vector<32x1xf32>
    %33 = vector.broadcast %25 : vector<32x1xf32> to vector<32x32xf32>
    %34 = arith.subf %1, %33 : vector<32x32xf32>
    %cst_27 = arith.constant 9.99999974E-6 : f32
    %35 = vector.broadcast %cst_27 : f32 to vector<32x1xf32>
    %36 = arith.addf %32, %35 : vector<32x1xf32>
    %37 = math.rsqrt %36 : vector<32x1xf32>
    %38 = vector.broadcast %37 : vector<32x1xf32> to vector<32x32xf32>
    %39 = arith.mulf %34, %38 : vector<32x32xf32>
    %40 = vector.shape_cast %11 : vector<32xf32> to vector<1x32xf32>
    %41 = vector.broadcast %40 : vector<1x32xf32> to vector<32x32xf32>
    %42 = arith.mulf %39, %41 : vector<32x32xf32>
    %43 = vector.shape_cast %13 : vector<32xf32> to vector<1x32xf32>
    %44 = vector.broadcast %43 : vector<1x32xf32> to vector<32x32xf32>
    %45 = arith.addf %42, %44 : vector<32x32xf32>
    %46 = arith.truncf %45 : vector<32x32xf32> to vector<32x32xbf16>
    %c0_28 = arith.constant 0 : index
    %c0_29 = arith.constant 0 : index
    %c0_30 = arith.constant 0 : index
    %c0_31 = arith.constant 0 : index
    %47 = vector.load %arg2[%c0_28, %c0_29, %c0_30, %c0_31] : memref<2x4x32x32xbf16, #tpu.memory_space<vmem>>, vector<1x1x32x32xbf16>
    %48 = vector.shape_cast %47 : vector<1x1x32x32xbf16> to vector<32x32xbf16>
    %cst_32 = arith.constant dense<0.000000e+00> : vector<32x32xf32>
    %49 = tpu.matmul %46, %48, %cst_32 {dimension_numbers = #tpu.dot_dimension_numbers<[1], [0], [0], [1], [0, 0, 1, 1], [], []>} : vector<32x32xbf16>, vector<32x32xbf16>, vector<32x32xf32> -> vector<32x32xf32>
    %50 = vector.shape_cast %3 : vector<32xf32> to vector<1x32xf32>
    %51 = vector.broadcast %50 : vector<1x32xf32> to vector<32x32xf32>
    %52 = arith.addf %49, %51 : vector<32x32xf32>
    %c0_33 = arith.constant 0 : index
    %c1_34 = arith.constant 1 : index
    %c0_35 = arith.constant 0 : index
    %c0_36 = arith.constant 0 : index
    %53 = vector.load %arg2[%c0_33, %c1_34, %c0_35, %c0_36] : memref<2x4x32x32xbf16, #tpu.memory_space<vmem>>, vector<1x1x32x32xbf16>
    %54 = vector.shape_cast %53 : vector<1x1x32x32xbf16> to vector<32x32xbf16>
    %cst_37 = arith.constant dense<0.000000e+00> : vector<32x32xf32>
    %55 = tpu.matmul %46, %54, %cst_37 {dimension_numbers = #tpu.dot_dimension_numbers<[1], [0], [0], [1], [0, 0, 1, 1], [], []>} : vector<32x32xbf16>, vector<32x32xbf16>, vector<32x32xf32> -> vector<32x32xf32>
    %56 = vector.shape_cast %5 : vector<32xf32> to vector<1x32xf32>
    %57 = vector.broadcast %56 : vector<1x32xf32> to vector<32x32xf32>
    %58 = arith.addf %55, %57 : vector<32x32xf32>
    %c0_38 = arith.constant 0 : index
    %c2_39 = arith.constant 2 : index
    %c0_40 = arith.constant 0 : index
    %c0_41 = arith.constant 0 : index
    %59 = vector.load %arg2[%c0_38, %c2_39, %c0_40, %c0_41] : memref<2x4x32x32xbf16, #tpu.memory_space<vmem>>, vector<1x1x32x32xbf16>
    %60 = vector.shape_cast %59 : vector<1x1x32x32xbf16> to vector<32x32xbf16>
    %cst_42 = arith.constant dense<0.000000e+00> : vector<32x32xf32>
    %61 = tpu.matmul %46, %60, %cst_42 {dimension_numbers = #tpu.dot_dimension_numbers<[1], [0], [0], [1], [0, 0, 1, 1], [], []>} : vector<32x32xbf16>, vector<32x32xbf16>, vector<32x32xf32> -> vector<32x32xf32>
    %62 = vector.shape_cast %7 : vector<32xf32> to vector<1x32xf32>
    %63 = vector.broadcast %62 : vector<1x32xf32> to vector<32x32xf32>
    %64 = arith.addf %61, %63 : vector<32x32xf32>
    %65 = vector.shape_cast %52 : vector<32x32xf32> to vector<32x4x8xf32>
    %66 = tpu.transpose %65, [1, 0, 2] : vector<32x4x8xf32> -> vector<4x32x8xf32>
    %67 = vector.shape_cast %66 : vector<4x32x8xf32> to vector<16x8x8xf32>
    %68 = vector.shape_cast %58 : vector<32x32xf32> to vector<32x4x8xf32>
    %69 = tpu.transpose %68, [1, 0, 2] : vector<32x4x8xf32> -> vector<4x32x8xf32>
    %70 = vector.shape_cast %69 : vector<4x32x8xf32> to vector<16x8x8xf32>
    %71 = vector.shape_cast %64 : vector<32x32xf32> to vector<32x4x8xf32>
    %72 = tpu.transpose %71, [1, 0, 2] : vector<32x4x8xf32> -> vector<4x32x8xf32>
    %73 = vector.shape_cast %72 : vector<4x32x8xf32> to vector<16x8x8xf32>
    %74 = arith.truncf %67 : vector<16x8x8xf32> to vector<16x8x8xbf16>
    %75 = arith.truncf %70 : vector<16x8x8xf32> to vector<16x8x8xbf16>
    "tpu.trace_start"() <{level = 10 : i32, message = "gqd,gkd->gqk"}> : () -> ()
    %cst_43 = arith.constant dense<0.000000e+00> : vector<16x8x8xf32>
    %76 = tpu.matmul %74, %75, %cst_43 {dimension_numbers = #tpu.dot_dimension_numbers<[2], [2], [1], [1], [0, 0, 0, 1, 1, 1], [0], [0]>} : vector<16x8x8xbf16>, vector<16x8x8xbf16>, vector<16x8x8xf32> -> vector<16x8x8xf32>
    "tpu.trace_stop"() : () -> ()
    %cst_44 = arith.constant dense<0xFF800000> : vector<16x8xf32>
    %77 = vector.multi_reduction <maximumf>, %76, %cst_44 [2] : vector<16x8x8xf32> to vector<16x8xf32>
    %78 = vector.shape_cast %77 : vector<16x8xf32> to vector<16x8x1xf32>
    %79 = vector.broadcast %78 : vector<16x8x1xf32> to vector<16x8x8xf32>
    %80 = arith.subf %76, %79 : vector<16x8x8xf32>
    %81 = math.exp %80 : vector<16x8x8xf32>
    %cst_45 = arith.constant dense<0.000000e+00> : vector<16x8xf32>
    %82 = vector.multi_reduction <add>, %81, %cst_45 [2] : vector<16x8x8xf32> to vector<16x8xf32>
    %83 = vector.shape_cast %82 : vector<16x8xf32> to vector<16x8x1xf32>
    %84 = tpu.reciprocal %83 {approx = true} : vector<16x8x1xf32> -> vector<16x8x1xf32>
    %85 = vector.broadcast %84 : vector<16x8x1xf32> to vector<16x8x8xf32>
    %86 = arith.mulf %81, %85 : vector<16x8x8xf32>
    %87 = arith.truncf %86 : vector<16x8x8xf32> to vector<16x8x8xbf16>
    %88 = arith.truncf %73 : vector<16x8x8xf32> to vector<16x8x8xbf16>
    "tpu.trace_start"() <{level = 10 : i32, message = "gqk,gkd->gqd"}> : () -> ()
    %cst_46 = arith.constant dense<0.000000e+00> : vector<16x8x8xf32>
    %89 = tpu.matmul %87, %88, %cst_46 {dimension_numbers = #tpu.dot_dimension_numbers<[2], [1], [1], [2], [0, 0, 0, 1, 1, 2], [0], [0]>} : vector<16x8x8xbf16>, vector<16x8x8xbf16>, vector<16x8x8xf32> -> vector<16x8x8xf32>
    "tpu.trace_stop"() : () -> ()
    %90 = vector.shape_cast %89 : vector<16x8x8xf32> to vector<4x32x8xf32>
    %91 = tpu.transpose %90, [1, 0, 2] : vector<4x32x8xf32> -> vector<32x4x8xf32>
    %92 = vector.shape_cast %91 : vector<32x4x8xf32> to vector<32x32xf32>
    %93 = arith.truncf %92 : vector<32x32xf32> to vector<32x32xbf16>
    %c0_47 = arith.constant 0 : index
    %c3_48 = arith.constant 3 : index
    %c0_49 = arith.constant 0 : index
    %c0_50 = arith.constant 0 : index
    %94 = vector.load %arg2[%c0_47, %c3_48, %c0_49, %c0_50] : memref<2x4x32x32xbf16, #tpu.memory_space<vmem>>, vector<1x1x32x32xbf16>
    %95 = vector.shape_cast %94 : vector<1x1x32x32xbf16> to vector<32x32xbf16>
    %cst_51 = arith.constant dense<0.000000e+00> : vector<32x32xf32>
    %96 = tpu.matmul %93, %95, %cst_51 {dimension_numbers = #tpu.dot_dimension_numbers<[1], [0], [0], [1], [0, 0, 1, 1], [], []>} : vector<32x32xbf16>, vector<32x32xbf16>, vector<32x32xf32> -> vector<32x32xf32>
    %97 = vector.shape_cast %9 : vector<32xf32> to vector<1x32xf32>
    %98 = vector.broadcast %97 : vector<1x32xf32> to vector<32x32xf32>
    %99 = arith.addf %96, %98 : vector<32x32xf32>
    %100 = arith.addf %1, %99 : vector<32x32xf32>
    %cst_52 = arith.constant dense<0.000000e+00> : vector<32xf32>
    %101 = vector.multi_reduction <add>, %100, %cst_52 [1] : vector<32x32xf32> to vector<32xf32>
    %102 = vector.shape_cast %101 : vector<32xf32> to vector<32x1xf32>
    %cst_53 = arith.constant 3.200000e+01 : f32
    %103 = vector.broadcast %cst_53 : f32 to vector<32x1xf32>
    %104 = arith.divf %102, %103 : vector<32x1xf32>
    %105 = vector.broadcast %104 : vector<32x1xf32> to vector<32x32xf32>
    %106 = arith.subf %100, %105 : vector<32x32xf32>
    %107 = arith.mulf %106, %106 : vector<32x32xf32>
    %cst_54 = arith.constant dense<0.000000e+00> : vector<32xf32>
    %108 = vector.multi_reduction <add>, %107, %cst_54 [1] : vector<32x32xf32> to vector<32xf32>
    %109 = vector.shape_cast %108 : vector<32xf32> to vector<32x1xf32>
    %cst_55 = arith.constant 3.200000e+01 : f32
    %110 = vector.broadcast %cst_55 : f32 to vector<32x1xf32>
    %111 = arith.divf %109, %110 : vector<32x1xf32>
    %112 = vector.broadcast %104 : vector<32x1xf32> to vector<32x32xf32>
    %113 = arith.subf %100, %112 : vector<32x32xf32>
    %cst_56 = arith.constant 9.99999974E-6 : f32
    %114 = vector.broadcast %cst_56 : f32 to vector<32x1xf32>
    %115 = arith.addf %111, %114 : vector<32x1xf32>
    %116 = math.rsqrt %115 : vector<32x1xf32>
    %117 = vector.broadcast %116 : vector<32x1xf32> to vector<32x32xf32>
    %118 = arith.mulf %113, %117 : vector<32x32xf32>
    %119 = vector.shape_cast %15 : vector<32xf32> to vector<1x32xf32>
    %120 = vector.broadcast %119 : vector<1x32xf32> to vector<32x32xf32>
    %121 = arith.mulf %118, %120 : vector<32x32xf32>
    %122 = vector.shape_cast %17 : vector<32xf32> to vector<1x32xf32>
    %123 = vector.broadcast %122 : vector<1x32xf32> to vector<32x32xf32>
    %124 = arith.addf %121, %123 : vector<32x32xf32>
    %125 = arith.truncf %124 : vector<32x32xf32> to vector<32x32xbf16>
    %c0_57 = arith.constant 0 : index
    %c0_58 = arith.constant 0 : index
    %c0_59 = arith.constant 0 : index
    %126 = vector.load %arg3[%c0_57, %c0_58, %c0_59] : memref<2x32x64xbf16, #tpu.memory_space<vmem>>, vector<1x32x64xbf16>
    %127 = vector.shape_cast %126 : vector<1x32x64xbf16> to vector<32x64xbf16>
    %cst_60 = arith.constant dense<0.000000e+00> : vector<32x64xf32>
    %128 = tpu.matmul %125, %127, %cst_60 {dimension_numbers = #tpu.dot_dimension_numbers<[1], [0], [0], [1], [0, 0, 1, 1], [], []>} : vector<32x32xbf16>, vector<32x64xbf16>, vector<32x64xf32> -> vector<32x64xf32>
    %129 = vector.shape_cast %21 : vector<64xf32> to vector<1x64xf32>
    %130 = vector.broadcast %129 : vector<1x64xf32> to vector<32x64xf32>
    %131 = arith.addf %128, %130 : vector<32x64xf32>
    %cst_61 = arith.constant 0.000000e+00 : f32
    %132 = vector.broadcast %cst_61 : f32 to vector<32x64xf32>
    %133 = arith.maximumf %131, %132 : vector<32x64xf32>
    %134 = arith.truncf %133 : vector<32x64xf32> to vector<32x64xbf16>
    %c0_62 = arith.constant 0 : index
    %c0_63 = arith.constant 0 : index
    %c0_64 = arith.constant 0 : index
    %135 = vector.load %arg4[%c0_62, %c0_63, %c0_64] : memref<2x64x32xbf16, #tpu.memory_space<vmem>>, vector<1x64x32xbf16>
    %136 = vector.shape_cast %135 : vector<1x64x32xbf16> to vector<64x32xbf16>
    %cst_65 = arith.constant dense<0.000000e+00> : vector<32x32xf32>
    %137 = tpu.matmul %134, %136, %cst_65 {dimension_numbers = #tpu.dot_dimension_numbers<[1], [0], [0], [1], [0, 0, 1, 1], [], []>} : vector<32x64xbf16>, vector<64x32xbf16>, vector<32x32xf32> -> vector<32x32xf32>
    %138 = vector.shape_cast %19 : vector<32xf32> to vector<1x32xf32>
    %139 = vector.broadcast %138 : vector<1x32xf32> to vector<32x32xf32>
    %140 = arith.addf %137, %139 : vector<32x32xf32>
    %141 = arith.addf %100, %140 : vector<32x32xf32>
    %c1_66 = arith.constant 1 : index
    %c0_67 = arith.constant 0 : index
    %c0_68 = arith.constant 0 : index
    %142 = vector.load %arg5[%c1_66, %c0_67, %c0_68] : memref<2x9x32xf32, #tpu.memory_space<vmem>>, vector<1x1x32xf32>
    %143 = vector.shape_cast %142 : vector<1x1x32xf32> to vector<32xf32>
    %c1_69 = arith.constant 1 : index
    %c1_70 = arith.constant 1 : index
    %c0_71 = arith.constant 0 : index
    %144 = vector.load %arg5[%c1_69, %c1_70, %c0_71] : memref<2x9x32xf32, #tpu.memory_space<vmem>>, vector<1x1x32xf32>
    %145 = vector.shape_cast %144 : vector<1x1x32xf32> to vector<32xf32>
    %c1_72 = arith.constant 1 : index
    %c2_73 = arith.constant 2 : index
    %c0_74 = arith.constant 0 : index
    %146 = vector.load %arg5[%c1_72, %c2_73, %c0_74] : memref<2x9x32xf32, #tpu.memory_space<vmem>>, vector<1x1x32xf32>
    %147 = vector.shape_cast %146 : vector<1x1x32xf32> to vector<32xf32>
    %c1_75 = arith.constant 1 : index
    %c3_76 = arith.constant 3 : index
    %c0_77 = arith.constant 0 : index
    %148 = vector.load %arg5[%c1_75, %c3_76, %c0_77] : memref<2x9x32xf32, #tpu.memory_space<vmem>>, vector<1x1x32xf32>
    %149 = vector.shape_cast %148 : vector<1x1x32xf32> to vector<32xf32>
    %c1_78 = arith.constant 1 : index
    %c4_79 = arith.constant 4 : index
    %c0_80 = arith.constant 0 : index
    %150 = vector.load %arg5[%c1_78, %c4_79, %c0_80] : memref<2x9x32xf32, #tpu.memory_space<vmem>>, vector<1x1x32xf32>
    %151 = vector.shape_cast %150 : vector<1x1x32xf32> to vector<32xf32>
    %c1_81 = arith.constant 1 : index
    %c5_82 = arith.constant 5 : index
    %c0_83 = arith.constant 0 : index
    %152 = vector.load %arg5[%c1_81, %c5_82, %c0_83] : memref<2x9x32xf32, #tpu.memory_space<vmem>>, vector<1x1x32xf32>
    %153 = vector.shape_cast %152 : vector<1x1x32xf32> to vector<32xf32>
    %c1_84 = arith.constant 1 : index
    %c6_85 = arith.constant 6 : index
    %c0_86 = arith.constant 0 : index
    %154 = vector.load %arg5[%c1_84, %c6_85, %c0_86] : memref<2x9x32xf32, #tpu.memory_space<vmem>>, vector<1x1x32xf32>
    %155 = vector.shape_cast %154 : vector<1x1x32xf32> to vector<32xf32>
    %c1_87 = arith.constant 1 : index
    %c7_88 = arith.constant 7 : index
    %c0_89 = arith.constant 0 : index
    %156 = vector.load %arg5[%c1_87, %c7_88, %c0_89] : memref<2x9x32xf32, #tpu.memory_space<vmem>>, vector<1x1x32xf32>
    %157 = vector.shape_cast %156 : vector<1x1x32xf32> to vector<32xf32>
    %c1_90 = arith.constant 1 : index
    %c8_91 = arith.constant 8 : index
    %c0_92 = arith.constant 0 : index
    %158 = vector.load %arg5[%c1_90, %c8_91, %c0_92] : memref<2x9x32xf32, #tpu.memory_space<vmem>>, vector<1x1x32xf32>
    %159 = vector.shape_cast %158 : vector<1x1x32xf32> to vector<32xf32>
    %c1_93 = arith.constant 1 : index
    %c0_94 = arith.constant 0 : index
    %c0_95 = arith.constant 0 : index
    %160 = vector.load %arg6[%c1_93, %c0_94, %c0_95] : memref<2x1x64xf32, #tpu.memory_space<vmem>>, vector<1x1x64xf32>
    %161 = vector.shape_cast %160 : vector<1x1x64xf32> to vector<64xf32>
    %cst_96 = arith.constant dense<0.000000e+00> : vector<32xf32>
    %162 = vector.multi_reduction <add>, %141, %cst_96 [1] : vector<32x32xf32> to vector<32xf32>
    %163 = vector.shape_cast %162 : vector<32xf32> to vector<32x1xf32>
    %cst_97 = arith.constant 3.200000e+01 : f32
    %164 = vector.broadcast %cst_97 : f32 to vector<32x1xf32>
    %165 = arith.divf %163, %164 : vector<32x1xf32>
    %166 = vector.broadcast %165 : vector<32x1xf32> to vector<32x32xf32>
    %167 = arith.subf %141, %166 : vector<32x32xf32>
    %168 = arith.mulf %167, %167 : vector<32x32xf32>
    %cst_98 = arith.constant dense<0.000000e+00> : vector<32xf32>
    %169 = vector.multi_reduction <add>, %168, %cst_98 [1] : vector<32x32xf32> to vector<32xf32>
    %170 = vector.shape_cast %169 : vector<32xf32> to vector<32x1xf32>
    %cst_99 = arith.constant 3.200000e+01 : f32
    %171 = vector.broadcast %cst_99 : f32 to vector<32x1xf32>
    %172 = arith.divf %170, %171 : vector<32x1xf32>
    %173 = vector.broadcast %165 : vector<32x1xf32> to vector<32x32xf32>
    %174 = arith.subf %141, %173 : vector<32x32xf32>
    %cst_100 = arith.constant 9.99999974E-6 : f32
    %175 = vector.broadcast %cst_100 : f32 to vector<32x1xf32>
    %176 = arith.addf %172, %175 : vector<32x1xf32>
    %177 = math.rsqrt %176 : vector<32x1xf32>
    %178 = vector.broadcast %177 : vector<32x1xf32> to vector<32x32xf32>
    %179 = arith.mulf %174, %178 : vector<32x32xf32>
    %180 = vector.shape_cast %151 : vector<32xf32> to vector<1x32xf32>
    %181 = vector.broadcast %180 : vector<1x32xf32> to vector<32x32xf32>
    %182 = arith.mulf %179, %181 : vector<32x32xf32>
    %183 = vector.shape_cast %153 : vector<32xf32> to vector<1x32xf32>
    %184 = vector.broadcast %183 : vector<1x32xf32> to vector<32x32xf32>
    %185 = arith.addf %182, %184 : vector<32x32xf32>
    %186 = arith.truncf %185 : vector<32x32xf32> to vector<32x32xbf16>
    %c1_101 = arith.constant 1 : index
    %c0_102 = arith.constant 0 : index
    %c0_103 = arith.constant 0 : index
    %c0_104 = arith.constant 0 : index
    %187 = vector.load %arg2[%c1_101, %c0_102, %c0_103, %c0_104] : memref<2x4x32x32xbf16, #tpu.memory_space<vmem>>, vector<1x1x32x32xbf16>
    %188 = vector.shape_cast %187 : vector<1x1x32x32xbf16> to vector<32x32xbf16>
    %cst_105 = arith.constant dense<0.000000e+00> : vector<32x32xf32>
    %189 = tpu.matmul %186, %188, %cst_105 {dimension_numbers = #tpu.dot_dimension_numbers<[1], [0], [0], [1], [0, 0, 1, 1], [], []>} : vector<32x32xbf16>, vector<32x32xbf16>, vector<32x32xf32> -> vector<32x32xf32>
    %190 = vector.shape_cast %143 : vector<32xf32> to vector<1x32xf32>
    %191 = vector.broadcast %190 : vector<1x32xf32> to vector<32x32xf32>
    %192 = arith.addf %189, %191 : vector<32x32xf32>
    %c1_106 = arith.constant 1 : index
    %c1_107 = arith.constant 1 : index
    %c0_108 = arith.constant 0 : index
    %c0_109 = arith.constant 0 : index
    %193 = vector.load %arg2[%c1_106, %c1_107, %c0_108, %c0_109] : memref<2x4x32x32xbf16, #tpu.memory_space<vmem>>, vector<1x1x32x32xbf16>
    %194 = vector.shape_cast %193 : vector<1x1x32x32xbf16> to vector<32x32xbf16>
    %cst_110 = arith.constant dense<0.000000e+00> : vector<32x32xf32>
    %195 = tpu.matmul %186, %194, %cst_110 {dimension_numbers = #tpu.dot_dimension_numbers<[1], [0], [0], [1], [0, 0, 1, 1], [], []>} : vector<32x32xbf16>, vector<32x32xbf16>, vector<32x32xf32> -> vector<32x32xf32>
    %196 = vector.shape_cast %145 : vector<32xf32> to vector<1x32xf32>
    %197 = vector.broadcast %196 : vector<1x32xf32> to vector<32x32xf32>
    %198 = arith.addf %195, %197 : vector<32x32xf32>
    %c1_111 = arith.constant 1 : index
    %c2_112 = arith.constant 2 : index
    %c0_113 = arith.constant 0 : index
    %c0_114 = arith.constant 0 : index
    %199 = vector.load %arg2[%c1_111, %c2_112, %c0_113, %c0_114] : memref<2x4x32x32xbf16, #tpu.memory_space<vmem>>, vector<1x1x32x32xbf16>
    %200 = vector.shape_cast %199 : vector<1x1x32x32xbf16> to vector<32x32xbf16>
    %cst_115 = arith.constant dense<0.000000e+00> : vector<32x32xf32>
    %201 = tpu.matmul %186, %200, %cst_115 {dimension_numbers = #tpu.dot_dimension_numbers<[1], [0], [0], [1], [0, 0, 1, 1], [], []>} : vector<32x32xbf16>, vector<32x32xbf16>, vector<32x32xf32> -> vector<32x32xf32>
    %202 = vector.shape_cast %147 : vector<32xf32> to vector<1x32xf32>
    %203 = vector.broadcast %202 : vector<1x32xf32> to vector<32x32xf32>
    %204 = arith.addf %201, %203 : vector<32x32xf32>
    %205 = vector.shape_cast %192 : vector<32x32xf32> to vector<32x4x8xf32>
    %206 = tpu.transpose %205, [1, 0, 2] : vector<32x4x8xf32> -> vector<4x32x8xf32>
    %207 = vector.shape_cast %206 : vector<4x32x8xf32> to vector<16x8x8xf32>
    %208 = vector.shape_cast %198 : vector<32x32xf32> to vector<32x4x8xf32>
    %209 = tpu.transpose %208, [1, 0, 2] : vector<32x4x8xf32> -> vector<4x32x8xf32>
    %210 = vector.shape_cast %209 : vector<4x32x8xf32> to vector<16x8x8xf32>
    %211 = vector.shape_cast %204 : vector<32x32xf32> to vector<32x4x8xf32>
    %212 = tpu.transpose %211, [1, 0, 2] : vector<32x4x8xf32> -> vector<4x32x8xf32>
    %213 = vector.shape_cast %212 : vector<4x32x8xf32> to vector<16x8x8xf32>
    %214 = arith.truncf %207 : vector<16x8x8xf32> to vector<16x8x8xbf16>
    %215 = arith.truncf %210 : vector<16x8x8xf32> to vector<16x8x8xbf16>
    "tpu.trace_start"() <{level = 10 : i32, message = "gqd,gkd->gqk"}> : () -> ()
    %cst_116 = arith.constant dense<0.000000e+00> : vector<16x8x8xf32>
    %216 = tpu.matmul %214, %215, %cst_116 {dimension_numbers = #tpu.dot_dimension_numbers<[2], [2], [1], [1], [0, 0, 0, 1, 1, 1], [0], [0]>} : vector<16x8x8xbf16>, vector<16x8x8xbf16>, vector<16x8x8xf32> -> vector<16x8x8xf32>
    "tpu.trace_stop"() : () -> ()
    %cst_117 = arith.constant dense<0xFF800000> : vector<16x8xf32>
    %217 = vector.multi_reduction <maximumf>, %216, %cst_117 [2] : vector<16x8x8xf32> to vector<16x8xf32>
    %218 = vector.shape_cast %217 : vector<16x8xf32> to vector<16x8x1xf32>
    %219 = vector.broadcast %218 : vector<16x8x1xf32> to vector<16x8x8xf32>
    %220 = arith.subf %216, %219 : vector<16x8x8xf32>
    %221 = math.exp %220 : vector<16x8x8xf32>
    %cst_118 = arith.constant dense<0.000000e+00> : vector<16x8xf32>
    %222 = vector.multi_reduction <add>, %221, %cst_118 [2] : vector<16x8x8xf32> to vector<16x8xf32>
    %223 = vector.shape_cast %222 : vector<16x8xf32> to vector<16x8x1xf32>
    %224 = tpu.reciprocal %223 {approx = true} : vector<16x8x1xf32> -> vector<16x8x1xf32>
    %225 = vector.broadcast %224 : vector<16x8x1xf32> to vector<16x8x8xf32>
    %226 = arith.mulf %221, %225 : vector<16x8x8xf32>
    %227 = arith.truncf %226 : vector<16x8x8xf32> to vector<16x8x8xbf16>
    %228 = arith.truncf %213 : vector<16x8x8xf32> to vector<16x8x8xbf16>
    "tpu.trace_start"() <{level = 10 : i32, message = "gqk,gkd->gqd"}> : () -> ()
    %cst_119 = arith.constant dense<0.000000e+00> : vector<16x8x8xf32>
    %229 = tpu.matmul %227, %228, %cst_119 {dimension_numbers = #tpu.dot_dimension_numbers<[2], [1], [1], [2], [0, 0, 0, 1, 1, 2], [0], [0]>} : vector<16x8x8xbf16>, vector<16x8x8xbf16>, vector<16x8x8xf32> -> vector<16x8x8xf32>
    "tpu.trace_stop"() : () -> ()
    %230 = vector.shape_cast %229 : vector<16x8x8xf32> to vector<4x32x8xf32>
    %231 = tpu.transpose %230, [1, 0, 2] : vector<4x32x8xf32> -> vector<32x4x8xf32>
    %232 = vector.shape_cast %231 : vector<32x4x8xf32> to vector<32x32xf32>
    %233 = arith.truncf %232 : vector<32x32xf32> to vector<32x32xbf16>
    %c1_120 = arith.constant 1 : index
    %c3_121 = arith.constant 3 : index
    %c0_122 = arith.constant 0 : index
    %c0_123 = arith.constant 0 : index
    %234 = vector.load %arg2[%c1_120, %c3_121, %c0_122, %c0_123] : memref<2x4x32x32xbf16, #tpu.memory_space<vmem>>, vector<1x1x32x32xbf16>
    %235 = vector.shape_cast %234 : vector<1x1x32x32xbf16> to vector<32x32xbf16>
    %cst_124 = arith.constant dense<0.000000e+00> : vector<32x32xf32>
    %236 = tpu.matmul %233, %235, %cst_124 {dimension_numbers = #tpu.dot_dimension_numbers<[1], [0], [0], [1], [0, 0, 1, 1], [], []>} : vector<32x32xbf16>, vector<32x32xbf16>, vector<32x32xf32> -> vector<32x32xf32>
    %237 = vector.shape_cast %149 : vector<32xf32> to vector<1x32xf32>
    %238 = vector.broadcast %237 : vector<1x32xf32> to vector<32x32xf32>
    %239 = arith.addf %236, %238 : vector<32x32xf32>
    %240 = arith.addf %141, %239 : vector<32x32xf32>
    %cst_125 = arith.constant dense<0.000000e+00> : vector<32xf32>
    %241 = vector.multi_reduction <add>, %240, %cst_125 [1] : vector<32x32xf32> to vector<32xf32>
    %242 = vector.shape_cast %241 : vector<32xf32> to vector<32x1xf32>
    %cst_126 = arith.constant 3.200000e+01 : f32
    %243 = vector.broadcast %cst_126 : f32 to vector<32x1xf32>
    %244 = arith.divf %242, %243 : vector<32x1xf32>
    %245 = vector.broadcast %244 : vector<32x1xf32> to vector<32x32xf32>
    %246 = arith.subf %240, %245 : vector<32x32xf32>
    %247 = arith.mulf %246, %246 : vector<32x32xf32>
    %cst_127 = arith.constant dense<0.000000e+00> : vector<32xf32>
    %248 = vector.multi_reduction <add>, %247, %cst_127 [1] : vector<32x32xf32> to vector<32xf32>
    %249 = vector.shape_cast %248 : vector<32xf32> to vector<32x1xf32>
    %cst_128 = arith.constant 3.200000e+01 : f32
    %250 = vector.broadcast %cst_128 : f32 to vector<32x1xf32>
    %251 = arith.divf %249, %250 : vector<32x1xf32>
    %252 = vector.broadcast %244 : vector<32x1xf32> to vector<32x32xf32>
    %253 = arith.subf %240, %252 : vector<32x32xf32>
    %cst_129 = arith.constant 9.99999974E-6 : f32
    %254 = vector.broadcast %cst_129 : f32 to vector<32x1xf32>
    %255 = arith.addf %251, %254 : vector<32x1xf32>
    %256 = math.rsqrt %255 : vector<32x1xf32>
    %257 = vector.broadcast %256 : vector<32x1xf32> to vector<32x32xf32>
    %258 = arith.mulf %253, %257 : vector<32x32xf32>
    %259 = vector.shape_cast %155 : vector<32xf32> to vector<1x32xf32>
    %260 = vector.broadcast %259 : vector<1x32xf32> to vector<32x32xf32>
    %261 = arith.mulf %258, %260 : vector<32x32xf32>
    %262 = vector.shape_cast %157 : vector<32xf32> to vector<1x32xf32>
    %263 = vector.broadcast %262 : vector<1x32xf32> to vector<32x32xf32>
    %264 = arith.addf %261, %263 : vector<32x32xf32>
    %265 = arith.truncf %264 : vector<32x32xf32> to vector<32x32xbf16>
    %c1_130 = arith.constant 1 : index
    %c0_131 = arith.constant 0 : index
    %c0_132 = arith.constant 0 : index
    %266 = vector.load %arg3[%c1_130, %c0_131, %c0_132] : memref<2x32x64xbf16, #tpu.memory_space<vmem>>, vector<1x32x64xbf16>
    %267 = vector.shape_cast %266 : vector<1x32x64xbf16> to vector<32x64xbf16>
    %cst_133 = arith.constant dense<0.000000e+00> : vector<32x64xf32>
    %268 = tpu.matmul %265, %267, %cst_133 {dimension_numbers = #tpu.dot_dimension_numbers<[1], [0], [0], [1], [0, 0, 1, 1], [], []>} : vector<32x32xbf16>, vector<32x64xbf16>, vector<32x64xf32> -> vector<32x64xf32>
    %269 = vector.shape_cast %161 : vector<64xf32> to vector<1x64xf32>
    %270 = vector.broadcast %269 : vector<1x64xf32> to vector<32x64xf32>
    %271 = arith.addf %268, %270 : vector<32x64xf32>
    %cst_134 = arith.constant 0.000000e+00 : f32
    %272 = vector.broadcast %cst_134 : f32 to vector<32x64xf32>
    %273 = arith.maximumf %271, %272 : vector<32x64xf32>
    %274 = arith.truncf %273 : vector<32x64xf32> to vector<32x64xbf16>
    %c1_135 = arith.constant 1 : index
    %c0_136 = arith.constant 0 : index
    %c0_137 = arith.constant 0 : index
    %275 = vector.load %arg4[%c1_135, %c0_136, %c0_137] : memref<2x64x32xbf16, #tpu.memory_space<vmem>>, vector<1x64x32xbf16>
    %276 = vector.shape_cast %275 : vector<1x64x32xbf16> to vector<64x32xbf16>
    %cst_138 = arith.constant dense<0.000000e+00> : vector<32x32xf32>
    %277 = tpu.matmul %274, %276, %cst_138 {dimension_numbers = #tpu.dot_dimension_numbers<[1], [0], [0], [1], [0, 0, 1, 1], [], []>} : vector<32x64xbf16>, vector<64x32xbf16>, vector<32x32xf32> -> vector<32x32xf32>
    %278 = vector.shape_cast %159 : vector<32xf32> to vector<1x32xf32>
    %279 = vector.broadcast %278 : vector<1x32xf32> to vector<32x32xf32>
    %280 = arith.addf %277, %279 : vector<32x32xf32>
    %281 = arith.addf %240, %280 : vector<32x32xf32>
    %282 = vector.shape_cast %281 : vector<32x32xf32> to vector<4x8x32xf32>
    %c0_139 = arith.constant 0 : index
    %c0_140 = arith.constant 0 : index
    %c0_141 = arith.constant 0 : index
    %283 = vector.load %arg7[%c0_139, %c0_140, %c0_141] : memref<4x8x32xf32, #tpu.memory_space<vmem>>, vector<4x8x32xf32>
    tpu.vector_store %arg7[%c0_139, %c0_140, %c0_141], %282 {strides = array<i32>} : memref<4x8x32xf32, #tpu.memory_space<vmem>>, vector<4x8x32xf32>,
    return
  }
  func.func @transform_0(%arg0: i32) -> (i32, i32, i32) {
    %c0_i32 = arith.constant 0 : i32
    %c0_i32_0 = arith.constant 0 : i32
    %c0_i32_1 = arith.constant 0 : i32
    return %arg0, %c0_i32, %c0_i32_0 : i32, i32, i32
  }
  func.func @transform_1(%arg0: i32) -> (i32, i32, i32, i32) {
    %c0_i32 = arith.constant 0 : i32
    %c0_i32_0 = arith.constant 0 : i32
    %c0_i32_1 = arith.constant 0 : i32
    %c0_i32_2 = arith.constant 0 : i32
    %c0_i32_3 = arith.constant 0 : i32
    return %c0_i32, %c0_i32_0, %c0_i32_1, %c0_i32_2 : i32, i32, i32, i32
  }
  func.func @transform_2(%arg0: i32) -> (i32, i32, i32) {
    %c0_i32 = arith.constant 0 : i32
    %c0_i32_0 = arith.constant 0 : i32
    %c0_i32_1 = arith.constant 0 : i32
    %c0_i32_2 = arith.constant 0 : i32
    return %c0_i32, %c0_i32_0, %c0_i32_1 : i32, i32, i32
  }
  func.func @transform_3(%arg0: i32) -> (i32, i32, i32) {
    %c0_i32 = arith.constant 0 : i32
    %c0_i32_0 = arith.constant 0 : i32
    %c0_i32_1 = arith.constant 0 : i32
    %c0_i32_2 = arith.constant 0 : i32
    return %c0_i32, %c0_i32_0, %c0_i32_1 : i32, i32, i32
  }
  func.func @transform_4(%arg0: i32) -> (i32, i32, i32) {
    %c0_i32 = arith.constant 0 : i32
    %c0_i32_0 = arith.constant 0 : i32
    %c0_i32_1 = arith.constant 0 : i32
    %c0_i32_2 = arith.constant 0 : i32
    return %c0_i32, %c0_i32_0, %c0_i32_1 : i32, i32, i32
  }
  func.func @transform_5(%arg0: i32) -> (i32, i32, i32) {
    %c0_i32 = arith.constant 0 : i32
    %c0_i32_0 = arith.constant 0 : i32
    %c0_i32_1 = arith.constant 0 : i32
    %c0_i32_2 = arith.constant 0 : i32
    return %c0_i32, %c0_i32_0, %c0_i32_1 : i32, i32, i32
  }
  func.func @transform_6(%arg0: i32) -> (i32, i32, i32) {
    %c0_i32 = arith.constant 0 : i32
    %c0_i32_0 = arith.constant 0 : i32
    %c0_i32_1 = arith.constant 0 : i32
    return %arg0, %c0_i32, %c0_i32_0 : i32, i32, i32
  }
}

</mosaic_0001>

<bundles_post_ra>
// kernel: tpu_custom_call.1
= control target key start
LH: loop header
LB: loop body
LE: loop exit
PB: predicated region body
PF: predicated region fallthrough
CT: control target
= control target key end

     0   :  { %11 = vsyncpa [#allocation3], 0  ;;  %s14139_s0 = inlined_call_operand.hbm [shape: f32[8,8,32], index: 0, kind: input, shape index: {}]   ;;  %s14140_s1 = inlined_call_operand.vmem [shape: bf16[2,4,32,32], index: 1, kind: input, shape index: {}]   ;;  %s14141_s2 = inlined_call_operand.hbm [shape: bf16[2,32,64], index: 2, kind: input, shape index: {}]   ;;  %s14142_s3 = inlined_call_operand.vmem [shape: bf16[2,64,32], index: 3, kind: input, shape index: {}]   ;;  %s14143_s4 = inlined_call_operand.vmem [shape: f32[2,9,32], index: 4, kind: input, shape index: {}]   ;;  %s14144_s5 = inlined_call_operand.vmem [shape: f32[2,1,64], index: 5, kind: input, shape index: {}]   ;;  %s14145_s6 = inlined_call_operand.hbm [shape: f32[8,8,32], index: 6, kind: output, shape index: {}]  }
   0x1   :  { %13 = vsyncpa [#allocation3 + $0x1], 0 }
   0x2   :  { %14 = vsyncpa [#allocation6], 0 }
   0x3   :  { %15 = vsyncpa [#allocation4], 0 }
   0x4   :  { %17 = vsyncpa [#allocation4 + $0x1], 0  ;;  %s11230_s21 = smov 0   ;;  %s11232_s22 = smov 0  }
   0x5   :  { %s11234_s23 = smov 0   ;;  %s11236_s24 = smov 0  }
   0x6 LB: > { %s11251_s25 = sadd.s32 4294967295, %s11175_s24   ;;  %s9791_s26 = sadd.s32 4294967294, %s11175_s24   ;;  %s11175_s24 = sphi %s11236_s24, %s14236_s24   ;;  %s11171_s23 = sphi %s11234_s23, %s14235_s23   ;;  %s11167_s22 = sphi %s11232_s22, %s14234_s22   ;;  %s11163_s21 = sphi %s11230_s21, %s14233_s21  }
   0x7   : > { %p43_p0 = scmp.ne.s32.totalorder %s11167_s22, %s11163_s21  ;;  %p14146_p1 = scmp.eq.s32.totalorder %s11251_s25, 0 }
   0x8   : > { %p178_p3 = scmp.eq.s32.totalorder %s9791_s26, 1  ;;  %p9792_p5 = scmp.ge.s32.totalorder %s11175_s24, 1 }
   0x9   : > { %p11260_p4 = por %p14146_p1, %p43_p0  ;;  %p185_p7 = scmp.lt.s32.totalorder %s11175_s24, 3 }
   0xa   : > { %p11265_p6 = por %p178_p3, %p43_p0  ;;  %s11177_s30 = smov [#allocation5]  }
   0xb   : > { %s14173_s27 = scalar_select %p11260_p4, 1, 0 }
   0xc   : > { %s14174_s28 = scalar_select %p11265_p6, 1, 0 }
   0xd   : > { %p11270_p8 = pnand %p9792_p5, %p185_p7  ;;  %s200_s7 = sshll.u32 %s11177_s30, 4  ;;  %s11274_s7 = int_to_ptr.vmem [resolvable:$true] %s200_s7 }
   0xe   : > { %s11286_s9 = sadd.s32 1, %s11175_s24   ;;  %s30_s10 = sadd.s32 1, %s11171_s23 }
   0xf   : > { %s14175_s29 = scalar_select %p11270_p8, 1, 0 }
  0x10   : > { %p10731_p9 = pneg %p11270_p8  ;;  %s27_s11 = ssub.s32 %s11175_s24, %s11286_s9 }
  0x11   : > { %s11047_s14 = scalar_lea.hbm %s14141_s2, 512 }
  0x12   : > { %p11281_p11 = pnand %p10731_p9, %p14146_p1  ;;  %p11048_p12 = scmp.ne.s32.totalorder %s14141_s2, %s11047_s14 }
  0x13   : > { %p11054_p5 = scmp.lt.u32.totalorder %s11047_s14, %s14141_s2 }
  0x14   : > { %p11049_p13 = pneg %p11281_p11 }
  0x16   : > { %p11050_p0 = pnand %p11049_p13, %p11048_p12 }
  0x18   : > { %p11051_p3 = pneg %p11050_p0 }
  0x1a   : > { %p11056_p7 = pnand %p11054_p5, %p11051_p3 }
  0x1c   : > { %11059 = shalt.err (!%p11056_p7)
}
  0x1d   : > { %s11060_s19 = scalar_lea.vmem %s11274_s7, 512  ;;  %p11068_p2 = scmp.lt.s32.totalorder %s11274_s7, %s11274_s7 }
  0x1e   : > { %p11061_p9 = scmp.ne.s32.totalorder %s11274_s7, %s11060_s19  ;;  %p11069_p6 = scmp.lt.s32.totalorder %s11060_s19, %s11060_s19 }
  0x20   : > { %p11063_p10 = pnand %p11061_p9, %p11049_p13  ;;  %p11070_p4 = por %p11069_p6, %p11068_p2 }
  0x22   : > { %p11064_p1 = pneg %p11063_p10 }
  0x24   : > { %p11071_p8 = pnand %p11070_p4, %p11064_p1 }
  0x26   : > { %11074 = shalt.err (!%p11071_p8)
}
  0x27   : > { %s11178_s20 = smov 64   ;;  %s11179_s26 = smov 4  }
  0x28   : > { %10734 = dma.hbm_to_vmem [thread:$0]  (!%p11281_p11), %s14141_s2, 512, %s11274_s7, [#allocation6], %s11178_s20, %s11178_s20, %s11179_s26  }
  0x29   : > { %p28_p2 = scmp.eq.s32.totalorder %s27_s11, 0  ;;  %p37_p1 = scmp.ne.s32.totalorder %s11171_s23, %s11167_s22 }
  0x2a   : > { %p38_p4 = scmp.eq.s32.totalorder %s11175_s24, 0  ;;  %p10744_p6 = scmp.lt.s32.totalorder %s11175_s24, 2 }
  0x2b   : > { %s11317_s13 = scalar_select %p28_p2, %s11171_s23, %s30_s10  }
  0x2c   : > { %p39_p8 = por %p38_p4, %p37_p1  ;;  %p14177_p10 = scmp.eq.s32.totalorder %s11251_s25, 1 }
  0x2d   : > { %s223_s15 = sand.u32 1, %s11171_s23   ;;  %s10053_s16 = sshll.u32 %s11175_s24, 9 }
  0x2e   : > { %p11321_p12 = por %p14177_p10, %p37_p1  ;;  %s9795_s17 = sshll.u32 %s223_s15, 5 }
  0x2f   : > { %s11330_s19 = scalar_lea.hbm %s14139_s0, %s10053_s16  ;;  %s227_s7 = scalar_lea.vmem [#allocation2], %s9795_s17 }
  0x30   : > { %s234_s10 = sshll.u32 %s227_s7, 4  ;;  %p11332_p11 = pnand %p10744_p6, %p39_p8  ;;  %s11336_s10 = int_to_ptr.vmem [resolvable:$true] %s234_s10 }
  0x31   : > { %s11338_s20 = scalar_lea.sflag [#allocation3], %s223_s15  ;;  %s11075_s26 = scalar_lea.hbm %s11330_s19, 512 }
  0x32   : > { %p11076_p13 = scmp.ne.s32.totalorder %s11330_s19, %s11075_s26  ;;  %p11077_p0 = pneg %p11332_p11 }
  0x33   : > { %s11080_s16 = scalar_lea.hbm %s14139_s0, 1024  ;;  %p11081_p7 = scmp.lt.u32.totalorder %s11330_s19, %s14139_s0 }
  0x34   : > { %p11078_p3 = pnand %p11077_p0, %p11076_p13  ;;  %p11082_p9 = scmp.lt.u32.totalorder %s11080_s16, %s11075_s26 }
  0x35   : > { %p11084_p1 = scmp.lt.u32.totalorder %s11075_s26, %s11330_s19 }
  0x36   : > { %p11079_p5 = pneg %p11078_p3  ;;  %p11083_p2 = por %p11082_p9, %p11081_p7 }
  0x38   : > { %p11085_p4 = por %p11084_p1, %p11083_p2 }
  0x3a   : > { %p11086_p6 = pnand %p11085_p4, %p11079_p5 }
  0x3c   : > { %11089 = shalt.err (!%p11086_p6)
}
  0x3d   : > { %s11090_s15 = scalar_lea.vmem %s11336_s10, 512  ;;  %s11180_s18 = smov [#allocation2]  }
  0x3e   : > { %p11091_p8 = scmp.ne.s32.totalorder %s11336_s10, %s11090_s15  ;;  %s11095_s7 = sshll.u32 %s11180_s18, 4  ;;  %s11096_s7 = int_to_ptr.vmem [resolvable:$false] %s11095_s7 }
  0x3f   : > { %s11097_s30 = scalar_lea.vmem %s11096_s7, 1024  ;;  %p11098_p3 = scmp.lt.s32.totalorder %s11336_s10, %s11096_s7 }
  0x40   : > { %p11093_p10 = pnand %p11091_p8, %p11077_p0  ;;  %p11099_p7 = scmp.lt.s32.totalorder %s11097_s30, %s11090_s15 }
  0x42   : > { %p11094_p13 = pneg %p11093_p10  ;;  %p11100_p9 = por %p11099_p7, %p11098_p3 }
  0x44   : > { %p11101_p2 = pnand %p11100_p9, %p11094_p13 }
  0x46   : > { %11104 = shalt.err (!%p11101_p2)
}
  0x47   : > { %s11181_s26 = smov 128   ;;  %s11182_s12 = smov 8  }
  0x48   : > { %10738 = dma.hbm_to_vmem [thread:$0]  (!%p11332_p11), %s11330_s19, 512, %s11336_s10, %s11338_s20, %s11181_s26, %s11181_s26, %s11182_s12  }
  0x49   : > { %p14180_p0 = scmp.ne.s32.totalorder %s14175_s29, 0 }
  0x4b   : > { %246 = sbr.rel (%p14180_p0) target bundleno = 5517 (0x158d), region = 44 }
  0x52   : > { %s11369_s16 = sand.u32 1, %s11167_s22   ;;  %p14181_p5 = scmp.ne.s32.totalorder %s14173_s27, 0 }
  0x53   : > { %s14159_s17 = sshll.u32 %s11369_s16, 5  ;;  %s249_s8 = scalar_lea.sflag [#allocation3], %s11369_s16 }
  0x54   : > { %s11375_s15 = scalar_lea.vmem [#allocation2], %s14159_s17 }
  0x55   : > { %11150 = dma.done.wait (%p14181_p5), %s249_s8, 512  }
  0x56   : > { %11152 = vsyncadd (%p14181_p5), %s249_s8, 4294966784  ;;  %p14182_p11 = scmp.eq.s32.totalorder %s11251_s25, 0 }
  0x58   : > { %11154 = dma.done.wait (%p14182_p11), [#allocation6], 512   ;;  %p14183_p1 = pmov %p14182_p11 }
  0x59   : > { %vm302_vm0 = vcmask 261120   ;;  %v288_v0 = vld [vmem:[%s11375_s15] sm:$0xff]  ;;  %v290_v1 = vld [vmem:[%s11375_s15 + $0x10] sm:$0xff]  ;;  %v289_v2 = vld [vmem:[%s11375_s15 + $0x8] sm:$0xff]  ;;  %s11183_s18 = smov 120   ;;  %s11184_s7 = smov 112  }
  0x5a   : > { %11156 = vsyncadd (%p14183_p1), [#allocation6], 4294966784  ;;  %v303_v3 = vsel %vm302_vm0, %v288_v0, 0.0  ;;  %v309_v4 = vsel %vm302_vm0, %v290_v1, 0.0  ;;  %v291_v5 = vld [vmem:[%s11375_s15 + $0x18] sm:$0xff]  ;;  %v306_v6 = vsel %vm302_vm0, %v289_v2, 0.0 }
  0x5b   : > { %304 = vadd.xlane.f32.xlu0 %v303_v3  ;;  %310 = vadd.xlane.f32.xlu1 %v309_v4  ;;  %v312_v7 = vsel %vm302_vm0, %v291_v5, 0.0  ;;  %v10855_v28 = vld [vmem:[%s14140_s1] sm:$0xff]   ;;  %v10857_v30 = vld [vmem:[%s14140_s1 + $0x8] sm:$0xff]   ;;  %v10859_v32 = vld [vmem:[%s14140_s1 + $0x10] sm:$0xff]   ;;  %s11185_s12 = smov 104   ;;  %vm11187_vm1 = vmmov 0  }
  0x5c   : > { %v10856_v29 = vld [vmem:[%s14140_s1 + $0x20] sm:$0xff]   ;;  %10235 = vmatprep.subr.bf16.mxu1 %v10855_v28  ;;  %v10858_v31 = vld [vmem:[%s14140_s1 + $0x28] sm:$0xff]   ;;  %vm2373_vm2 = vcmask 64512   ;;  %vm3321_vm3 = vcmask 1043456   ;;  %s11190_s29 = smov 16   ;;  %s11191_s19 = smov 8  }
  0x5d   : > { %10251 = vmatprep.subr.bf16.mxu0 %v10856_v29  ;;  %10236 = vmatpush3.bf16.msra.mxu1 %v10855_v28  ;;  %v9802_v47 = vld [vmem:[%s14143_s4 + $0x4] ss:$0 sm:$0xff]  ;;  %v9803_v52 = vld [vmem:[%s14143_s4 + $0x5] ss:$0 sm:$0xff]  ;;  %s11192_s20 = smov 24   ;;  %vm4651_vm4 = vcmask 130048  }
  0x5e   : > { %10252 = vmatpush3.bf16.msra.mxu0 %v10856_v29  ;;  %10237 = vmatprep.subr.bf16.mxu1 %v10857_v30  ;;  %vm4656_vm5 = vcmask 195584   ;;  %vm4932_vm6 = vcmask 523264   ;;  %s14230_s17 = sshll.u32 %s11369_s16, 5  ;;  %s10054_s27 = sshll.u32 %s11251_s25, 9 }
  0x5f   : > { %307 = vadd.xlane.f32.xlu0 %v306_v6  ;;  %313 = vadd.xlane.f32.xlu1 %v312_v7  ;;  %s284_s26 = scalar_lea.vmem [#allocation7], %s14230_s17  ;;  %s14092_s25 = scalar_lea.hbm %s14145_s6, %s10054_s27 }
  0x60   : > { %10253 = vmatprep.subr.bf16.mxu0 %v10858_v31  ;;  %s9708_s8 = sshll.u32 %s284_s26, 4  ;;  %s14084_s8 = int_to_ptr.vmem [resolvable:$true] %s9708_s8 }
  0x61   : > { %10238 = vmatpush3.bf16.msra.mxu1 %v10857_v30 }
  0x62   : > { %10254 = vmatpush3.bf16.msra.mxu0 %v10858_v31  ;;  %10243 = vmatprep.subr.bf16.mxu1 %v10859_v32  ;;  %v11188_v31 = vmov 1983009808  }
  0xe8   : > { %v305_v8 = vpop.xlane.xlu0 %304  ;;  %v311_v9 = vpop.xlane.xlu1 %310 }
  0xe9   : > { %v316_v10 = vmul.f32 0.03125, %v305_v8  ;;  %v318_v11 = vmul.f32 0.03125, %v311_v9 }
  0xeb   : > { %v320_v12 = vsub.f32 %v288_v0, %v316_v10  ;;  %v322_v13 = vsub.f32 %v290_v1, %v318_v11  ;;  %v10860_v1 = vld [vmem:[%s14140_s1 + $0x18] sm:$0xff]  }
  0xec   : > { %v308_v14 = vpop.xlane.xlu0 %307  ;;  %v314_v15 = vpop.xlane.xlu1 %313 }
  0xed   : > { %v317_v16 = vmul.f32 0.03125, %v308_v14  ;;  %v319_v17 = vmul.f32 0.03125, %v314_v15  ;;  %v324_v18 = vmul.f32 %v320_v12, %v320_v12  ;;  %v326_v19 = vmul.f32 %v322_v13, %v322_v13 }
  0xef   : > { %v321_v20 = vsub.f32 %v289_v2, %v317_v16  ;;  %v323_v21 = vsub.f32 %v291_v5, %v319_v17  ;;  %v328_v22 = vsel %vm302_vm0, %v324_v18, 0.0  ;;  %v334_v23 = vsel %vm302_vm0, %v326_v19, 0.0  ;;  %v9804_v2 = vld [vmem:[%s14143_s4] ss:$0 sm:$0xff]  ;;  %v9813_v16 = vld [vmem:[%s14143_s4 + $0x1] ss:$0 sm:$0xff] }
  0xf0   : > { %329 = vadd.xlane.f32.xlu0 %v328_v22 }
  0xf1   : > { %v325_v24 = vmul.f32 %v321_v20, %v321_v20  ;;  %v327_v25 = vmul.f32 %v323_v21, %v323_v21 }
  0xf3   : > { %v331_v26 = vsel %vm302_vm0, %v325_v24, 0.0  ;;  %v337_v27 = vsel %vm302_vm0, %v327_v25, 0.0  ;;  %v14151_v24 = vmov 0.0  }
  0xf4   : > { %335 = vadd.xlane.f32.xlu0 %v334_v23  ;;  %332 = vadd.xlane.f32.xlu1 %v331_v26  ;;  %v9822_v23 = vld [vmem:[%s14143_s4 + $0x2] ss:$0 sm:$0xff] }
  0xf5   : > { %10265 = vmatprep.subr.bf16.mxu0 %v14151_v24 }
  0xf8   : > { %338 = vadd.xlane.f32.xlu1 %v337_v27 }
 0x17d   : > { %v330_v33 = vpop.xlane.xlu0 %329 }
 0x17e   : > { %v340_v34 = vmul.f32 0.03125, %v330_v33  ;;  %v634_v33 = vlaneseq }
 0x180   : > { %v344_v35 = vadd.f32 1e-05, %v340_v34 }
 0x181   : > { %v333_v36 = vpop.xlane.xlu1 %332  ;;  %v336_v37 = vpop.xlane.xlu0 %335 }
 0x182   : > { %10883 = vrsqrt.f32 %v344_v35  ;;  %v341_v38 = vmul.f32 0.03125, %v333_v36  ;;  %v342_v39 = vmul.f32 0.03125, %v336_v37  ;;  %v635_v36 = vshrl.u32 %v634_v33, 7 }
 0x184   : > { %v345_v40 = vadd.f32 1e-05, %v341_v38  ;;  %v346_v41 = vadd.f32 1e-05, %v342_v39  ;;  %v11189_v38 = vmov 1934713408  }
 0x185   : > { %v339_v42 = vpop.xlane.xlu1 %338  ;;  %v664_v39 = vunpack.c.l.s4 %v11189_v38 }
 0x186   : > { %10885 = vrsqrt.f32 %v345_v40  ;;  %v343_v43 = vmul.f32 0.03125, %v339_v42 }
 0x187   : > { %10887 = vrsqrt.f32 %v346_v41 }
 0x188   : > { %v347_v44 = vadd.f32 1e-05, %v343_v43 }
 0x18a   : > { %10889 = vrsqrt.f32 %v347_v44  ;;  %v665_v44 = vunpack.c.0.s8 %v664_v39 }
 0x18c   : > { %v10884_v45 = vpop.eup %10883 }
 0x18d   : > { %v352_v46 = vmul.f32 %v10884_v45, %v320_v12 }
 0x18f   : > { %v360_v51 = vmul.f32 %v9802_v47, %v352_v46 }
 0x190   : > { %v10886_v48 = vpop.eup %10885 }
 0x191   : > { %v10888_v49 = vpop.eup %10887  ;;  %v353_v50 = vmul.f32 %v10886_v48, %v321_v20  ;;  %v368_v56 = vadd.f32 %v9803_v52, %v360_v51 }
 0x192   : > { %v354_v53 = vmul.f32 %v10888_v49, %v322_v13 }
 0x193   : > { %v361_v54 = vmul.f32 %v9802_v47, %v353_v50 }
 0x194   : > { %v10890_v55 = vpop.eup %10889  ;;  %v362_v59 = vmul.f32 %v9802_v47, %v354_v53 }
 0x195   : > { %v369_v57 = vadd.f32 %v9803_v52, %v361_v54  ;;  %v355_v58 = vmul.f32 %v10890_v55, %v323_v21 }
 0x196   : > { %v370_v62 = vadd.f32 %v9803_v52, %v362_v59 }
 0x197   : > { %v372_v60 = vpack.c.bf16 %v369_v57, %v368_v56  ;;  %v363_v61 = vmul.f32 %v9802_v47, %v355_v58 }
 0x199   : > { %10239 = vmatprep.mubr.msk.bf16.mxu1 %vm302_vm0, %v372_v60  ;;  %10255 = vmatprep.mubr.msk.bf16.mxu0 %vm302_vm0, %v372_v60  ;;  %v371_v63 = vadd.f32 %v9803_v52, %v363_v61 }
 0x19b   : > { %v373_v0 = vpack.c.bf16 %v371_v63, %v370_v62 }
 0x19d   : > { %10240 = vmatmul.mubr.msk.bf16.vlgmr.msra.gmra.mrb[0].mxu1 %vm302_vm0, %v373_v0  ;;  %10256 = vmatmul.mubr.msk.bf16.vlgmr.msra.gmra.mrb[0].mxu0 %vm302_vm0, %v373_v0 }
 0x19e   : > { %10244 = vmatpush3.bf16.msra.mxu1 %v10859_v32  ;;  %10247 = vmatprep.mubr.msk.bf16.mxu1 %vm302_vm0, %v372_v60  ;;  %v632_v32 = vunpack.c.l.s4 %v11188_v31  ;;  %v11544_v60 = vsub.s32 %v665_v44, %v635_v36 }
 0x19f   : > { %10245 = vmatprep.subr.bf16.mxu1 %v10860_v1  ;;  %10267 = vmatprep.mubr.msk.bf16.mxu0 %vm11187_vm1, %v14151_v24 }
 0x1a0   : > { %v633_v35 = vunpack.c.0.s8 %v632_v32 }
 0x1a2   : > { %10246 = vmatpush3.bf16.msra.mxu1 %v10860_v1  ;;  %v11530_v41 = vsub.s32 %v633_v35, %v635_v36 }
 0x1a3   : > { %10259 = vmatprep.subr.bf16.mxu1 %v14151_v24 }
 0x1a5   : > { %10248 = vmatmul.mubr.msk.bf16.vlgmr.msra.gmra.mrb[4].mxu1 %vm302_vm0, %v373_v0 }
 0x1a6   : > { %10261 = vmatprep.mubr.msk.bf16.mxu1 %vm11187_vm1, %v14151_v24 }
 0x270   : > { %v10241_v3 = vpop.f32.mrb[0].mxu1  ;;  %v10257_v4 = vpop.f32.mrb[0].mxu0 }
 0x271   : > { %v434_v5 = vpop.f32.mrb[1].mxu1  ;;  %v574_v6 = vpop.f32.mrb[1].mxu0  ;;  %v11475_v22 = vadd.f32 %v10241_v3, %v9804_v2  ;;  %v11506_v27 = vadd.f32 %v10257_v4, %v9822_v23 }
 0x272   : > { %v11430_v7 = vadd.f32 %v9804_v2, %v434_v5  ;;  %v10242_v8 = vpop.f32.mrb[2].mxu1  ;;  %v10258_v9 = vpop.f32.mrb[2].mxu0  ;;  %v11496_v26 = vadd.f32 %v9822_v23, %v574_v6 }
 0x273   : > { %v437_v10 = vpop.f32.mrb[3].mxu1  ;;  %v577_v11 = vpop.f32.mrb[3].mxu0  ;;  %v11492_v25 = vadd.f32 %v10242_v8, %v9804_v2  ;;  %14184 = vst [vmem:[#allocation11_spill] sm:$0xff] %v11506_v27  ;;  %v11526_v29 = vadd.f32 %v10258_v9, %v9822_v23 }
 0x274   : > { %v11432_v12 = vadd.f32 %v9804_v2, %v437_v10  ;;  %593 = vrot.lane.b32.xlu0 %v11430_v7, %s11183_s18  ;;  %v11514_v28 = vadd.f32 %v9822_v23, %v577_v11 }
 0x275   : > { %14185 = vst [vmem:[#allocation12_spill] sm:$0xff] %v11526_v29 }
 0x276   : > { %595 = vrot.lane.b32.xlu1 %v11432_v12, %s11183_s18 }
 0x278   : > { %v10249_v13 = vpop.f32.mrb[4].mxu1  ;;  %605 = vrot.lane.b32.xlu0 %v11430_v7, %s11184_s7 }
 0x279   : > { %v504_v14 = vpop.f32.mrb[5].mxu1  ;;  %v11447_v18 = vadd.f32 %v10249_v13, %v9813_v16 }
 0x27a   : > { %v10250_v15 = vpop.f32.mrb[6].mxu1  ;;  %607 = vrot.lane.b32.xlu1 %v11432_v12, %s11184_s7  ;;  %v11451_v19 = vadd.f32 %v9813_v16, %v504_v14 }
 0x27b   : > { %v507_v17 = vpop.f32.mrb[7].mxu1  ;;  %v11457_v20 = vadd.f32 %v10250_v15, %v9813_v16 }
 0x27c   : > { %617 = vrot.lane.b32.xlu0 %v11430_v7, %s11185_s12  ;;  %v11467_v21 = vadd.f32 %v9813_v16, %v507_v17 }
 0x27e   : > { %619 = vrot.lane.b32.xlu1 %v11432_v12, %s11185_s12 }
 0x280   : > { %1181 = vrot.lane.b32.xlu0 %v11447_v18, %s11183_s18 }
 0x282   : > { %1189 = vrot.lane.b32.xlu1 %v11451_v19, %s11184_s7 }
 0x284   : > { %1193 = vrot.lane.b32.xlu0 %v11447_v18, %s11184_s7 }
 0x286   : > { %1183 = vrot.lane.b32.xlu1 %v11457_v20, %s11183_s18 }
 0x288   : > { %1177 = vrot.lane.b32.xlu0 %v11451_v19, %s11183_s18 }
 0x28a   : > { %1195 = vrot.lane.b32.xlu1 %v11457_v20, %s11184_s7 }
 0x28c   : > { %1201 = vrot.lane.b32.xlu0 %v11451_v19, %s11185_s12 }
 0x28e   : > { %1179 = vrot.lane.b32.xlu1 %v11467_v21, %s11183_s18 }
 0x290   : > { %1205 = vrot.lane.b32.xlu0 %v11447_v18, %s11185_s12 }
 0x292   : > { %1191 = vrot.lane.b32.xlu1 %v11467_v21, %s11184_s7 }
 0x294   : > { %597 = vrot.lane.b32.xlu0 %v11475_v22, %s11183_s18 }
 0x296   : > { %1203 = vrot.lane.b32.xlu1 %v11467_v21, %s11185_s12 }
 0x298   : > { %609 = vrot.lane.b32.xlu0 %v11475_v22, %s11184_s7 }
 0x29a   : > { %1207 = vrot.lane.b32.xlu1 %v11457_v20, %s11185_s12 }
 0x29c   : > { %621 = vrot.lane.b32.xlu0 %v11475_v22, %s11185_s12 }
 0x29e   : > { %599 = vrot.lane.b32.xlu1 %v11492_v25, %s11183_s18 }
 0x2a0   : > { %1761 = vrot.lane.b32.xlu0 %v11496_v26, %s11183_s18 }
 0x2a2   : > { %611 = vrot.lane.b32.xlu1 %v11492_v25, %s11184_s7 }
 0x2a4   : > { %1785 = vrot.lane.b32.xlu0 %v11496_v26, %s11185_s12 }
 0x2a6   : > { %623 = vrot.lane.b32.xlu1 %v11492_v25, %s11185_s12 }
 0x2a8   : > { %1765 = vrot.lane.b32.xlu0 %v11506_v27, %s11183_s18 }
 0x2aa   : > { %1763 = vrot.lane.b32.xlu1 %v11514_v28, %s11183_s18 }
 0x2ae   : > { %1773 = vrot.lane.b32.xlu1 %v11496_v26, %s11184_s7 }
 0x2b2   : > { %1775 = vrot.lane.b32.xlu1 %v11514_v28, %s11184_s7 }
 0x2b6   : > { %1787 = vrot.lane.b32.xlu1 %v11514_v28, %s11185_s12 }
 0x2ba   : > { %1767 = vrot.lane.b32.xlu1 %v11526_v29, %s11183_s18 }
 0x2e6   : > { %v594_v30 = vpop.permute.xlu0 %593 }
 0x2e8   : > { %v596_v34 = vpop.permute.xlu1 %595 }
 0x2ea   : > { %v606_v37 = vpop.permute.xlu0 %605 }
 0x2eb   : > { %v629_v42 = vcombine.low %v11430_v7, %v606_v37  ;;  %v630_v43 = vcombine.high %v11430_v7, %v606_v37 }
 0x2ec   : > { %v608_v40 = vpop.permute.xlu1 %607 }
 0x2ed   : > { %v697_v46 = vcombine.low %v11432_v12, %v608_v40  ;;  %v698_v47 = vcombine.high %v11432_v12, %v608_v40  ;;  %v637_v55 = vrot.slane %v629_v42, %v11530_v41  ;;  %v644_v57 = vrot.slane %v630_v43, %v11530_v41 }
 0x2ee   : > { %v618_v45 = vpop.permute.xlu0 %617 }
 0x2ef   : > { %v645_v48 = vcombine.low %v594_v30, %v618_v45  ;;  %v646_v49 = vcombine.high %v594_v30, %v618_v45  ;;  %v705_v58 = vrot.slane %v697_v46, %v11530_v41  ;;  %v712_v59 = vrot.slane %v698_v47, %v11530_v41 }
 0x2f0   : > { %v620_v50 = vpop.permute.xlu1 %619 }
 0x2f1   : > { %v653_v51 = vrot.slane %v645_v48, %v11530_v41  ;;  %v660_v52 = vrot.slane %v646_v49, %v11530_v41  ;;  %v713_v53 = vcombine.low %v596_v34, %v620_v50  ;;  %v714_v54 = vcombine.high %v596_v34, %v620_v50 }
 0x2f2   : > { %v11539_v56 = vpop.permute.xlu0 %1181 }
 0x2f3   : > { %v661_v61 = vcombine.low %v637_v55, %v653_v51  ;;  %v662_v62 = vcombine.high %v637_v55, %v653_v51  ;;  %v721_v63 = vrot.slane %v713_v53, %v11530_v41  ;;  %v728_v0 = vrot.slane %v714_v54, %v11530_v41 }
 0x2f4   : > { %v1190_v1 = vpop.permute.xlu1 %1189  ;;  %v677_v2 = vcombine.low %v644_v57, %v660_v52  ;;  %v678_v3 = vcombine.high %v644_v57, %v660_v52 }
 0x2f5   : > { %v729_v4 = vcombine.low %v705_v58, %v721_v63  ;;  %v730_v5 = vcombine.high %v705_v58, %v721_v63  ;;  %v745_v6 = vcombine.low %v712_v59, %v728_v0  ;;  %v746_v7 = vcombine.high %v712_v59, %v728_v0 }
 0x2f6   : > { %v1194_v8 = vpop.permute.xlu0 %1193  ;;  %v669_v9 = vrot.slane %v661_v61, %v11544_v60  ;;  %v676_v10 = vrot.slane %v662_v62, %v11544_v60  ;;  %v685_v12 = vrot.slane %v677_v2, %v11544_v60  ;;  %v692_v13 = vrot.slane %v678_v3, %v11544_v60 }
 0x2f7   : > { %v737_v14 = vrot.slane %v729_v4, %v11544_v60  ;;  %v744_v15 = vrot.slane %v730_v5, %v11544_v60  ;;  %v753_v16 = vrot.slane %v745_v6, %v11544_v60  ;;  %v760_v17 = vrot.slane %v746_v7, %v11544_v60 }
 0x2f8   : > { %v11550_v11 = vpop.permute.xlu1 %1183  ;;  %v901_v30 = vcombine.low %v669_v9, %v676_v10  ;;  %v9827_v31 = vcombine.high %v669_v9, %v676_v10  ;;  %v917_v33 = vcombine.low %v685_v12, %v692_v13  ;;  %v9828_v34 = vcombine.high %v685_v12, %v692_v13 }
 0x2f9   : > { %v969_v35 = vcombine.low %v737_v14, %v744_v15  ;;  %v9829_v36 = vcombine.high %v737_v14, %v744_v15  ;;  %v985_v37 = vcombine.low %v753_v16, %v760_v17  ;;  %v9830_v38 = vcombine.high %v753_v16, %v760_v17 }
 0x2fa   : > { %v1178_v23 = vpop.permute.xlu0 %1177  ;;  %v11561_v40 = vrot.slane %v901_v30, %v11530_v41  ;;  %v11564_v42 = vrot.slane %v9827_v31, %v11530_v41  ;;  %v11569_v46 = vrot.slane %v917_v33, %v11530_v41  ;;  %v11572_v47 = vrot.slane %v9828_v34, %v11530_v41 }
 0x2fb   : > { %v11575_v48 = vrot.slane %v969_v35, %v11530_v41  ;;  %v1213_v49 = vcombine.low %v11451_v19, %v1190_v1  ;;  %v11579_v50 = vrot.slane %v9829_v36, %v11530_v41  ;;  %v11582_v51 = vrot.slane %v985_v37, %v11530_v41 }
 0x2fc   : > { %v11558_v32 = vpop.permute.xlu1 %1195  ;;  %v11585_v52 = vrot.slane %v9830_v38, %v11530_v41  ;;  %v1214_v53 = vcombine.high %v11451_v19, %v1190_v1  ;;  %v1349_v55 = vcombine.low %v11447_v18, %v1194_v8  ;;  %v933_v61 = vcombine.low %v11561_v40, %v11564_v42 }
 0x2fd   : > { %14186 = vst [vmem:[#allocation13_spill] sm:$0xff] %v11575_v48  ;;  %14187 = vst [vmem:[#allocation14_spill] sm:$0xff] %v11579_v50  ;;  %v1350_v62 = vcombine.high %v11447_v18, %v1194_v8  ;;  %v949_v1 = vcombine.low %v11569_v46, %v11572_v47  ;;  %v1221_v2 = vrot.slane %v1213_v49, %v11530_v41 }
 0x2fe   : > { %v1202_v39 = vpop.permute.xlu0 %1201  ;;  %14188 = vst [vmem:[#allocation15_spill] sm:$0xff] %v11582_v51  ;;  %14189 = vst [vmem:[#allocation16_spill] sm:$0xff] %v11585_v52  ;;  %v1001_v4 = vcombine.low %v11575_v48, %v11579_v50  ;;  %v1228_v18 = vrot.slane %v1214_v53, %v11530_v41  ;;  %v1017_v7 = vcombine.low %v11582_v51, %v11585_v52  ;;  %v14192_v48 = vmov 0.0  }
 0x2ff   : > { %v1229_v43 = vcombine.low %v1178_v23, %v1202_v39  ;;  %v1230_v44 = vcombine.high %v1178_v23, %v1202_v39  ;;  %v1357_v8 = vrot.slane %v1349_v55, %v11530_v41  ;;  %v1364_v13 = vrot.slane %v1350_v62, %v11530_v41 }
 0x300   : > { %v11566_v45 = vpop.permute.xlu1 %1179  ;;  %v1417_v17 = vcombine.low %v11457_v20, %v11558_v32  ;;  %v1418_v23 = vcombine.high %v11457_v20, %v11558_v32  ;;  %v11621_v35 = vrot.slane %v933_v61, %v11544_v60  ;;  %v11624_v36 = vrot.slane %v949_v1, %v11544_v60 }
 0x301   : > { %v1237_v57 = vrot.slane %v1229_v43, %v11530_v41  ;;  %v1244_v63 = vrot.slane %v1230_v44, %v11530_v41  ;;  %v11629_v43 = vrot.slane %v1001_v4, %v11544_v60  ;;  %v11632_v20 = vrot.slane %v1017_v7, %v11544_v60 }
 0x302   : > { %v1206_v54 = vpop.permute.xlu0 %1205  ;;  %v11651_v62 = vrot.slane %v1417_v17, %v11530_v41 }
 0x303   : > { %v1365_v58 = vcombine.low %v11539_v56, %v1206_v54  ;;  %v1366_v59 = vcombine.high %v11539_v56, %v1206_v54  ;;  %v1245_v9 = vcombine.low %v1221_v2, %v1237_v57  ;;  %v1246_v10 = vcombine.high %v1221_v2, %v1237_v57 }
 0x304   : > { %v1192_v0 = vpop.permute.xlu1 %1191  ;;  %v1261_v14 = vcombine.low %v1228_v18, %v1244_v63  ;;  %v1262_v15 = vcombine.high %v1228_v18, %v1244_v63  ;;  %v11671_v7 = vcombine.low %v11629_v43, %v11632_v20 }
 0x305   : > { %v1373_v3 = vrot.slane %v1365_v58, %v11530_v41  ;;  %v1380_v5 = vrot.slane %v1366_v59, %v11530_v41  ;;  %v1253_v37 = vrot.slane %v1245_v9, %v11544_v60  ;;  %v1260_v38 = vrot.slane %v1246_v10, %v11544_v60 }
 0x306   : > { %v11608_v6 = vpop.permute.xlu0 %597  ;;  %v1269_v32 = vrot.slane %v1261_v14, %v11544_v60  ;;  %v1276_v44 = vrot.slane %v1262_v15, %v11544_v60  ;;  %v1281_v49 = vcombine.low %v11467_v21, %v1192_v0  ;;  %v1282_v53 = vcombine.high %v11467_v21, %v1192_v0 }
 0x307   : > { %v1381_v30 = vcombine.low %v1357_v8, %v1373_v3  ;;  %v1382_v31 = vcombine.high %v1357_v8, %v1373_v3  ;;  %v1397_v33 = vcombine.low %v1364_v13, %v1380_v5  ;;  %v1398_v34 = vcombine.high %v1364_v13, %v1380_v5 }
 0x308   : > { %v1204_v16 = vpop.permute.xlu1 %1203  ;;  %v11660_v0 = vrot.slane %v1418_v23, %v11530_v41  ;;  %v1485_v1 = vcombine.low %v1253_v37, %v1260_v38  ;;  %v9835_v2 = vcombine.high %v1253_v37, %v1260_v38  ;;  %v1501_v3 = vcombine.low %v1269_v32, %v1276_v44 }
 0x309   : > { %v11641_v55 = vrot.slane %v1381_v30, %v11544_v60  ;;  %v11644_v57 = vrot.slane %v1382_v31, %v11544_v60  ;;  %v1297_v58 = vcombine.low %v11566_v45, %v1204_v16  ;;  %v1298_v59 = vcombine.high %v11566_v45, %v1204_v16 }
 0x30a   : > { %v610_v39 = vpop.permute.xlu0 %609  ;;  %v11654_v21 = vrot.slane %v1397_v33, %v11544_v60  ;;  %v11657_v63 = vrot.slane %v1398_v34, %v11544_v60  ;;  %v11664_v45 = vcombine.low %v11621_v35, %v11624_v36  ;;  %v9836_v4 = vcombine.high %v1269_v32, %v1276_v44 }
 0x30b   : > { %v1289_v18 = vrot.slane %v1281_v49, %v11530_v41  ;;  %v1621_v8 = vcombine.low %v11641_v55, %v11644_v57  ;;  %v1296_v9 = vrot.slane %v1282_v53, %v11530_v41  ;;  %v1305_v10 = vrot.slane %v1297_v58, %v11530_v41 }
 0x30c   : > { %v11638_v54 = vpop.permute.xlu1 %1207  ;;  %v1312_v13 = vrot.slane %v1298_v59, %v11530_v41  ;;  %v9839_v15 = vcombine.high %v11641_v55, %v11644_v57  ;;  %v765_v17 = vcombine.low %v11475_v22, %v610_v39  ;;  %v766_v23 = vcombine.high %v11475_v22, %v610_v39 }
 0x30d   : > { %v1433_v31 = vcombine.low %v11550_v11, %v11638_v54  ;;  %v11689_v33 = vrot.slane %v1485_v1, %v11530_v41  ;;  %v11692_v34 = vrot.slane %v9835_v2, %v11530_v41  ;;  %v11697_v44 = vrot.slane %v1501_v3, %v11530_v41 }
 0x30e   : > { %v622_v14 = vpop.permute.xlu0 %621  ;;  %v11700_v22 = vrot.slane %v9836_v4, %v11530_v41  ;;  %v1313_v39 = vcombine.low %v1289_v18, %v1305_v10  ;;  %v1314_v49 = vcombine.high %v1289_v18, %v1305_v10  ;;  %v1329_v53 = vcombine.low %v1296_v9, %v1312_v13 }
 0x30f   : > { %v781_v37 = vcombine.low %v11608_v6, %v622_v14  ;;  %v782_v38 = vcombine.high %v11608_v6, %v622_v14  ;;  %v1434_v58 = vcombine.high %v11550_v11, %v11638_v54  ;;  %v773_v59 = vrot.slane %v765_v17, %v11530_v41 }
 0x310   : > { %v11667_v5 = vpop.permute.xlu1 %599  ;;  %v780_v1 = vrot.slane %v766_v23, %v11530_v41  ;;  %v1330_v3 = vcombine.high %v1296_v9, %v1312_v13  ;;  %v11709_v14 = vrot.slane %v1433_v31, %v11530_v41  ;;  %v1517_v4 = vcombine.low %v11689_v33, %v11692_v34 }
 0x311   : > { %v789_v6 = vrot.slane %v781_v37, %v11530_v41  ;;  %v796_v2 = vrot.slane %v782_v38, %v11530_v41  ;;  %v1533_v18 = vcombine.low %v11697_v44, %v11700_v22  ;;  %v1321_v23 = vrot.slane %v1313_v39, %v11544_v60 }
 0x312   : > { %v1328_v37 = vrot.slane %v1314_v49, %v11544_v60  ;;  %v11718_v9 = vrot.slane %v1517_v4, %v11544_v60  ;;  %v1344_v39 = vrot.slane %v1330_v3, %v11544_v60  ;;  %v1449_v3 = vcombine.low %v11651_v62, %v11709_v14 }
 0x313   : > { %v797_v10 = vcombine.low %v773_v59, %v789_v6  ;;  %v798_v11 = vcombine.high %v773_v59, %v789_v6  ;;  %v813_v54 = vcombine.low %v780_v1, %v796_v2  ;;  %v814_v17 = vcombine.high %v780_v1, %v796_v2 }
 0x314   : > { %v612_v32 = vpop.permute.xlu1 %611  ;;  %v11721_v13 = vrot.slane %v1533_v18, %v11544_v60  ;;  %v1337_v1 = vrot.slane %v1329_v53, %v11544_v60  ;;  %v1553_v19 = vcombine.low %v1321_v23, %v1328_v37  ;;  %v1448_v53 = vrot.slane %v1434_v58, %v11530_v41 }
 0x315   : > { %v805_v31 = vrot.slane %v797_v10, %v11544_v60  ;;  %v812_v38 = vrot.slane %v798_v11, %v11544_v60  ;;  %v821_v12 = vrot.slane %v813_v54, %v11544_v60  ;;  %v828_v59 = vrot.slane %v814_v17, %v11544_v60 }
 0x316   : > { %v1549_v49 = vcombine.low %v11718_v9, %v11721_v13  ;;  %v833_v18 = vcombine.low %v11492_v25, %v612_v32  ;;  %v834_v10 = vcombine.high %v11492_v25, %v612_v32  ;;  %v1450_v30 = vcombine.high %v11651_v62, %v11709_v14 }
 0x317   : > { %v1037_v2 = vcombine.low %v805_v31, %v812_v38  ;;  %v9831_v4 = vcombine.high %v805_v31, %v812_v38  ;;  %v1053_v11 = vcombine.low %v821_v12, %v828_v59  ;;  %v9832_v56 = vcombine.high %v821_v12, %v828_v59 }
 0x318   : > { %v624_v61 = vpop.permute.xlu1 %623  ;;  %v2357_v54 = vpack.c.bf16 %v1549_v49, %v1549_v49  ;;  %v9837_v16 = vcombine.high %v1321_v23, %v1328_v37  ;;  %v1569_v12 = vcombine.low %v1337_v1, %v1344_v39  ;;  %v9838_v32 = vcombine.high %v1337_v1, %v1344_v39  ;;  %v11758_v23 = vpop.permute.xlu0 %1761 }
 0x319   : > { %v849_v6 = vcombine.low %v11667_v5, %v624_v61  ;;  %v850_v17 = vcombine.high %v11667_v5, %v624_v61  ;;  %v841_v61 = vrot.slane %v833_v18, %v11530_v41  ;;  %v848_v5 = vrot.slane %v834_v10, %v11530_v41 }
 0x31a   : > { %v2378_v31 = vsel %vm2373_vm2, %v2357_v54, 0  ;;  %v11746_v58 = vrot.slane %v1037_v2, %v11530_v41  ;;  %v11749_v59 = vrot.slane %v9831_v4, %v11530_v41  ;;  %v11752_v62 = vrot.slane %v1053_v11, %v11530_v41 }
 0x31b   : > { %v857_v38 = vrot.slane %v849_v6, %v11530_v41  ;;  %v864_v25 = vrot.slane %v850_v17, %v11530_v41  ;;  %10260 = vmatpush3.bf16.xpose.msra.mxu1 %v2378_v31  ;;  %v11755_v14 = vrot.slane %v9832_v56, %v11530_v41  ;;  %v11766_v1 = vrot.slane %v1621_v8, %v11530_v41 }
 0x31c   : > { %10271 = vmatprep.subr.bf16.mxu1 %v14151_v24  ;;  %v11760_v37 = vpop.permute.xlu1 %1763  ;;  %v11772_v39 = vrot.slane %v9839_v15, %v11530_v41  ;;  %v14190_v56 = vcombine.low %v11654_v21, %v11657_v63  ;;  %v14191_v6 = vcombine.high %v11654_v21, %v11657_v63  ;;  %v11791_v15 = vrot.slane %v1553_v19, %v11530_v41 }
 0x31d   : > { %v865_v8 = vcombine.low %v841_v61, %v857_v38  ;;  %v866_v4 = vcombine.high %v841_v61, %v857_v38  ;;  %v881_v18 = vcombine.low %v848_v5, %v864_v25  ;;  %v882_v10 = vcombine.high %v848_v5, %v864_v25  ;;  %v1786_v61 = vpop.permute.xlu0 %1785 }
 0x31e   : > { %v11778_v49 = vrot.slane %v14190_v56, %v11530_v41  ;;  %v11784_v2 = vrot.slane %v14191_v6, %v11530_v41  ;;  %v1653_v55 = vcombine.low %v11766_v1, %v11772_v39  ;;  %v11794_v11 = vrot.slane %v9837_v16, %v11530_v41 }
 0x31f   : > { %v1465_v21 = vcombine.low %v11660_v0, %v1448_v53  ;;  %v1466_v63 = vcombine.high %v11660_v0, %v1448_v53  ;;  %v1069_v54 = vcombine.low %v11746_v58, %v11749_v59  ;;  %v2341_v17 = vpack.c.bf16 %v11664_v45, %v11664_v45 }
 0x320   : > { %v1669_v57 = vcombine.low %v11778_v49, %v11784_v2  ;;  %v11803_v31 = vrot.slane %v1653_v55, %v11544_v60  ;;  %v11809_v19 = vrot.slane %v1569_v12, %v11530_v41  ;;  %v11812_v16 = vrot.slane %v9838_v32, %v11530_v41  ;;  %v1774_v6 = vpop.permute.xlu1 %1773 }
 0x321   : > { %v1085_v0 = vcombine.low %v11752_v62, %v11755_v14  ;;  %v873_v53 = vrot.slane %v865_v8, %v11544_v60  ;;  %v880_v25 = vrot.slane %v866_v4, %v11544_v60  ;;  %v889_v45 = vrot.slane %v881_v18, %v11544_v60 }
 0x322   : > { %v11806_v38 = vrot.slane %v1669_v57, %v11544_v60  ;;  %10262 = vmatmul.mubr.msk.bf16.vlgmr.msra.gmra.mrb[8].mxu1 %vm2373_vm2, %v2341_v17  ;;  %v896_v5 = vrot.slane %v882_v10, %v11544_v60  ;;  %v1585_v32 = vcombine.low %v11791_v15, %v11794_v11  ;;  %v1601_v56 = vcombine.low %v11809_v19, %v11812_v16 }
 0x323   : > { %10273 = vmatprep.mubr.msk.bf16.mxu1 %vm11187_vm1, %v14151_v24  ;;  %v1457_v8 = vrot.slane %v1449_v3, %v11544_v60  ;;  %v1464_v4 = vrot.slane %v1450_v30, %v11544_v60  ;;  %v1473_v18 = vrot.slane %v1465_v21, %v11544_v60  ;;  %v11833_v10 = vrot.slane %v1069_v54, %v11544_v60 }
 0x324   : > { %v1685_v12 = vcombine.low %v11803_v31, %v11806_v38  ;;  %v1480_v55 = vrot.slane %v1466_v63, %v11544_v60  ;;  %v11837_v17 = vrot.slane %v1585_v32, %v11544_v60  ;;  %v11840_v29 = vrot.slane %v1601_v56, %v11544_v60 }
 0x325   : > { %v1813_v24 = vcombine.low %v11758_v23, %v1786_v61  ;;  %v1105_v27 = vcombine.low %v873_v53, %v880_v25  ;;  %v9833_v3 = vcombine.high %v873_v53, %v880_v25  ;;  %v11844_v30 = vrot.slane %v1085_v0, %v11544_v60 }
 0x326   : > { %v2359_v57 = vpack.c.bf16 %v1685_v12, %v1685_v12  ;;  %v1121_v21 = vcombine.low %v889_v45, %v896_v5  ;;  %v9834_v52 = vcombine.high %v889_v45, %v896_v5  ;;  %v1617_v63 = vcombine.low %v11837_v17, %v11840_v29  ;;  %v11854_v45 = vpop.permute.xlu1 %1775 }
 0x327   : > { %v1689_v12 = vcombine.low %v1457_v8, %v1464_v4  ;;  %v9841_v32 = vcombine.high %v1457_v8, %v1464_v4  ;;  %v1797_v56 = vcombine.low %v11496_v26, %v1774_v6  ;;  %v1101_v51 = vcombine.low %v11833_v10, %v11844_v30 }
 0x328   : > { %v2470_v54 = vsel %vm2373_vm2, %v2359_v57, 0  ;;  %v1705_v50 = vcombine.low %v1473_v18, %v1480_v55  ;;  %v9842_v53 = vcombine.high %v1473_v18, %v1480_v55  ;;  %v1814_v0 = vcombine.high %v11758_v23, %v1786_v61 }
 0x329   : > { %10272 = vmatpush3.bf16.xpose.msra.mxu1 %v2470_v54  ;;  %v2358_v25 = vpack.c.bf16 %v1617_v63, %v1617_v63  ;;  %v1821_v5 = vrot.slane %v1813_v24, %v11530_v41  ;;  %v11858_v57 = vrot.slane %v1105_v27, %v11530_v41  ;;  %v11861_v8 = vrot.slane %v9833_v3, %v11530_v41 }
 0x32a   : > { %10283 = vmatprep.subr.bf16.mxu1 %v14192_v48  ;;  %v1550_v4 = vcombine.high %v11718_v9, %v11721_v13  ;;  %v11866_v18 = vrot.slane %v1121_v21, %v11530_v41  ;;  %v11869_v23 = vrot.slane %v9834_v52, %v11530_v41  ;;  %v2343_v55 = vpack.c.bf16 %v1101_v51, %v1101_v51 }
 0x32b   : > { %v2424_v61 = vsel %vm2373_vm2, %v2358_v25, 0  ;;  %v1798_v24 = vcombine.high %v11496_v26, %v1774_v6  ;;  %v1805_v27 = vrot.slane %v1797_v56, %v11530_v41  ;;  %v11875_v3 = vrot.slane %v1689_v12, %v11530_v41 }
 0x32c   : > { %10266 = vmatpush3.bf16.xpose.msra.mxu0 %v2424_v61  ;;  %v2361_v54 = vpack.c.bf16 %v1550_v4, %v1550_v4  ;;  %v11878_v9 = vrot.slane %v1814_v0, %v11530_v41  ;;  %v11882_v52 = vrot.slane %v9841_v32, %v11530_v41  ;;  %v11885_v13 = vrot.slane %v1705_v50, %v11530_v41 }
 0x32d   : > { %10277 = vmatprep.subr.bf16.mxu0 %v14192_v48  ;;  %v11888_v51 = vrot.slane %v9842_v53, %v11530_v41  ;;  %v1070_v26 = vcombine.high %v11746_v58, %v11749_v59  ;;  %v1137_v21 = vcombine.low %v11858_v57, %v11861_v8  ;;  %v1686_v63 = vcombine.high %v11803_v31, %v11806_v38  ;;  %v1788_v53 = vpop.permute.xlu1 %1787 }
 0x32e   : > { %v1153_v12 = vcombine.low %v11866_v18, %v11869_v23  ;;  %v2562_v50 = vsel %vm2373_vm2, %v2361_v54, 0  ;;  %v1721_v32 = vcombine.low %v11875_v3, %v11882_v52  ;;  %v1812_v0 = vrot.slane %v1798_v24, %v11530_v41 }
 0x32f   : > { %v1737_v56 = vcombine.low %v11885_v13, %v11888_v51  ;;  %v1829_v25 = vcombine.low %v1805_v27, %v1821_v5  ;;  %v1865_v31 = vcombine.low %v11514_v28, %v11854_v45  ;;  %v2342_v38 = vpack.c.bf16 %v11671_v7, %v11671_v7 }
 0x330   : > { %10274 = vmatmul.mubr.msk.bf16.vlgmr.msra.gmra.mrb[12].mxu1 %vm2373_vm2, %v2343_v55  ;;  %v11914_v4 = vrot.slane %v1721_v32, %v11544_v60  ;;  %v966_v55 = vcombine.high %v11621_v35, %v11624_v36  ;;  %v1830_v54 = vcombine.high %v1805_v27, %v1821_v5  ;;  %v2363_v6 = vpack.c.bf16 %v1686_v63, %v1686_v63 }
 0x331   : > { %10284 = vmatpush3.bf16.xpose.msra.mxu1 %v2562_v50  ;;  %10285 = vmatprep.mubr.msk.bf16.mxu1 %vm11187_vm1, %v14192_v48  ;;  %v11917_v61 = vrot.slane %v1737_v56, %v11544_v60  ;;  %v1881_v50 = vcombine.low %v11760_v37, %v1788_v53  ;;  %v11931_v56 = vrot.slane %v1137_v21, %v11544_v60 }
 0x332   : > { %10295 = vmatprep.subr.bf16.mxu1 %v14192_v48  ;;  %v11934_v35 = vrot.slane %v1153_v12, %v11544_v60  ;;  %v1845_v36 = vcombine.low %v1812_v0, %v11878_v9  ;;  %v1846_v5 = vcombine.high %v1812_v0, %v11878_v9  ;;  %v1866_v27 = vcombine.high %v11514_v28, %v11854_v45 }
 0x333   : > { %10268 = vmatmul.mubr.msk.bf16.vlgmr.msra.gmra.mrb[4].mxu0 %vm2373_vm2, %v2342_v38  ;;  %v1753_v32 = vcombine.low %v11914_v4, %v11917_v61  ;;  %v1882_v63 = vcombine.high %v11760_v37, %v1788_v53  ;;  %v11944_v38 = vrot.slane %v1829_v25, %v11544_v60  ;;  %v1873_v21 = vrot.slane %v1865_v31, %v11530_v41 }
 0x334   : > { %10279 = vmatprep.mubr.msk.bf16.mxu0 %vm11187_vm1, %v14192_v48  ;;  %v2345_v12 = vpack.c.bf16 %v966_v55, %v966_v55  ;;  %v11948_v24 = vrot.slane %v1830_v54, %v11544_v60  ;;  %v1889_v9 = vrot.slane %v1881_v50, %v11530_v41  ;;  %v2654_v0 = vsel %vm2373_vm2, %v2363_v6, 0 }
 0x335   : > { %v2360_v7 = vpack.c.bf16 %v1753_v32, %v1753_v32  ;;  %v1618_v28 = vcombine.high %v11837_v17, %v11840_v29  ;;  %v1169_v45 = vcombine.low %v11931_v56, %v11934_v35  ;;  %v1518_v53 = vcombine.high %v11689_v33, %v11692_v34 }
 0x336   : > { %v1534_v25 = vcombine.high %v11697_v44, %v11700_v22  ;;  %v11963_v31 = vrot.slane %v1845_v36, %v11544_v60  ;;  %v1880_v6 = vrot.slane %v1866_v27, %v11530_v41  ;;  %v1896_v29 = vrot.slane %v1882_v63, %v11530_v41 }
 0x337   : > { %v2516_v37 = vsel %vm2373_vm2, %v2360_v7, 0  ;;  %v1102_v33 = vcombine.high %v11833_v10, %v11844_v30  ;;  %v11973_v34 = vrot.slane %v1518_v53, %v11544_v60  ;;  %v11979_v22 = vrot.slane %v1846_v5, %v11544_v60 }
 0x338   : > { %10286 = vmatmul.mubr.msk.bf16.vlgmr.msra.gmra.mrb[16].mxu1 %vm2373_vm2, %v2345_v12  ;;  %10278 = vmatpush3.bf16.xpose.msra.mxu0 %v2516_v37  ;;  %v11976_v44 = vrot.slane %v1534_v25, %v11544_v60  ;;  %v1897_v17 = vcombine.low %v1873_v21, %v1889_v9  ;;  %v1654_v55 = vcombine.high %v11766_v1, %v11772_v39 }
 0x339   : > { %10296 = vmatpush3.bf16.xpose.msra.mxu1 %v2654_v0  ;;  %10289 = vmatprep.subr.bf16.mxu0 %v14192_v48  ;;  %v1670_v54 = vcombine.high %v11778_v49, %v11784_v2  ;;  %v1898_v50 = vcombine.high %v1873_v21, %v1889_v9  ;;  %v2344_v10 = vpack.c.bf16 %v1169_v45, %v1169_v45 }
 0x33a   : > { %10297 = vmatprep.mubr.msk.bf16.mxu1 %vm11187_vm1, %v14192_v48  ;;  %10307 = vmatprep.subr.bf16.mxu1 %v14192_v48  ;;  %v2362_v30 = vpack.c.bf16 %v1618_v28, %v1618_v28  ;;  %v1551_v7 = vcombine.low %v11973_v34, %v11976_v44  ;;  %v1913_v32 = vcombine.low %v1880_v6, %v1896_v29 }
 0x33b   : > { %v1914_v36 = vcombine.high %v1880_v6, %v1896_v29  ;;  %v11989_v5 = vrot.slane %v1654_v55, %v11544_v60  ;;  %v11992_v27 = vrot.slane %v1670_v54, %v11544_v60  ;;  %v2347_v63 = vpack.c.bf16 %v1102_v33, %v1102_v33 }
 0x33c   : > { %v2365_v12 = vpack.c.bf16 %v1551_v7, %v1551_v7  ;;  %v1586_v1 = vcombine.high %v11791_v15, %v11794_v11  ;;  %v1602_v39 = vcombine.high %v11809_v19, %v11812_v16  ;;  %v2069_v49 = vcombine.low %v11944_v38, %v11948_v24 }
 0x33d   : > { %v9843_v2 = vcombine.high %v11944_v38, %v11948_v24  ;;  %v14193_v21 = vcombine.high %v11561_v40, %v11564_v42  ;;  %v14194_v0 = vcombine.high %v11569_v46, %v11572_v47  ;;  %v12015_v11 = vrot.slane %v1897_v17, %v11544_v60 }
 0x33e   : > { %v12018_v19 = vrot.slane %v1898_v50, %v11544_v60  ;;  %v2608_v16 = vsel %vm2373_vm2, %v2362_v30, 0  ;;  %v1754_v40 = vcombine.high %v11914_v4, %v11917_v61  ;;  %v1921_v42 = vrot.slane %v1913_v32, %v11544_v60 }
 0x33f   : > { %v12006_v9 = vrot.slane %v14193_v21, %v11544_v60  ;;  %v12012_v15 = vrot.slane %v14194_v0, %v11544_v60  ;;  %10280 = vmatmul.mubr.msk.bf16.vlgmr.msra.gmra.mrb[8].mxu0 %vm2373_vm2, %v2344_v10  ;;  %v1928_v46 = vrot.slane %v1914_v36, %v11544_v60  ;;  %v2746_v47 = vsel %vm2373_vm2, %v2365_v12, 0 }
 0x340   : > { %10298 = vmatmul.mubr.msk.bf16.vlgmr.msra.gmra.mrb[20].mxu1 %vm2373_vm2, %v2347_v63  ;;  %10290 = vmatpush3.bf16.xpose.msra.mxu0 %v2608_v16  ;;  %v1687_v24 = vcombine.low %v11989_v5, %v11992_v27  ;;  %v1034_v38 = vcombine.high %v11629_v43, %v11632_v20  ;;  %v12036_v4 = vrot.slane %v1586_v1, %v11544_v60 }
 0x341   : > { %10291 = vmatprep.mubr.msk.bf16.mxu0 %vm11187_vm1, %v14192_v48  ;;  %10308 = vmatpush3.bf16.xpose.msra.mxu1 %v2746_v47  ;;  %v12039_v61 = vrot.slane %v1602_v39, %v11544_v60  ;;  %v2085_v28 = vcombine.low %v11963_v31, %v11979_v22  ;;  %v9844_v37 = vcombine.high %v11963_v31, %v11979_v22 }
 0x342   : > { %10301 = vmatprep.subr.bf16.mxu0 %v14192_v48  ;;  %10309 = vmatprep.mubr.msk.bf16.mxu1 %vm11187_vm1, %v14192_v48  ;;  %v967_v43 = vcombine.low %v12006_v9, %v12012_v15  ;;  %v2137_v20 = vcombine.low %v12015_v11, %v12018_v19  ;;  %v9845_v45 = vcombine.high %v12015_v11, %v12018_v19 }
 0x343   : > { %10319 = vmatprep.subr.bf16.mxu1 %v14192_v48  ;;  %v2364_v53 = vpack.c.bf16 %v1754_v40, %v1754_v40  ;;  %v1170_v25 = vcombine.high %v11931_v56, %v11934_v35  ;;  %v2153_v6 = vcombine.low %v1921_v42, %v1928_v46  ;;  %v2367_v31 = vpack.c.bf16 %v1687_v24, %v1687_v24 }
 0x344   : > { %v12060_v29 = vrot.slane %v1070_v26, %v11544_v60  ;;  %v14195_v33 = vcombine.high %v11752_v62, %v11755_v14  ;;  %v9846_v17 = vcombine.high %v1921_v42, %v1928_v46  ;;  %v2346_v55 = vpack.c.bf16 %v1034_v38, %v1034_v38 }
 0x345   : > { %v1619_v54 = vcombine.low %v12036_v4, %v12039_v61  ;;  %v1722_v56 = vcombine.high %v11875_v3, %v11882_v52  ;;  %v2349_v35 = vpack.c.bf16 %v967_v43, %v967_v43  ;;  %v1738_v58 = vcombine.high %v11885_v13, %v11888_v51 }
 0x346   : > { %v12066_v22 = vrot.slane %v14195_v33, %v11544_v60  ;;  %v2076_v59 = vrot.slane %v2069_v49, %v11530_v41  ;;  %v2084_v26 = vrot.slane %v9843_v2, %v11530_v41  ;;  %v2700_v62 = vsel %vm2373_vm2, %v2364_v53, 0  ;;  %v14199_v49 = vld [vmem:[#allocation15_spill] sm:$0xff]  ;;  %v14200_v2 = vld [vmem:[#allocation16_spill] sm:$0xff] }
 0x347   : > { %10292 = vmatmul.mubr.msk.bf16.vlgmr.msra.gmra.mrb[12].mxu0 %vm2373_vm2, %v2346_v55  ;;  %v2348_v14 = vpack.c.bf16 %v1170_v25, %v1170_v25  ;;  %v1552_v50 = vcombine.high %v11973_v34, %v11976_v44  ;;  %v2092_v10 = vrot.slane %v2085_v28, %v11530_v41  ;;  %v2838_v3 = vsel %vm2373_vm2, %v2367_v31, 0  ;;  %v14196_v34 = vld [vmem:[#allocation13_spill] sm:$0xff]  ;;  %v14197_v44 = vld [vmem:[#allocation14_spill] sm:$0xff] }
 0x348   : > { %10302 = vmatpush3.bf16.xpose.msra.mxu0 %v2700_v62  ;;  %10310 = vmatmul.mubr.msk.bf16.vlgmr.msra.gmra.mrb[24].mxu1 %vm2373_vm2, %v2349_v35  ;;  %v1103_v52 = vcombine.low %v12060_v29, %v12066_v22  ;;  %v2100_v13 = vrot.slane %v9844_v37, %v11530_v41  ;;  %v2101_v51 = vcombine.low %v2076_v59, %v2084_v26 }
 0x349   : > { %10303 = vmatprep.mubr.msk.bf16.mxu0 %vm11187_vm1, %v14192_v48  ;;  %10320 = vmatpush3.bf16.xpose.msra.mxu1 %v2838_v3  ;;  %v2366_v30 = vpack.c.bf16 %v1619_v54, %v1619_v54  ;;  %v14198_v7 = vcombine.high %v14196_v34, %v14197_v44  ;;  %v12095_v36 = vrot.slane %v1722_v56, %v11544_v60 }
 0x34a   : > { %10313 = vmatprep.subr.bf16.mxu0 %v14192_v48  ;;  %10321 = vmatprep.mubr.msk.bf16.mxu1 %vm11187_vm1, %v14192_v48  ;;  %v12101_v63 = vrot.slane %v1738_v58, %v11544_v60  ;;  %v2109_v12 = vrot.slane %v2101_v51, %v11544_v60  ;;  %v2117_v1 = vcombine.low %v2092_v10, %v2100_v13 }
 0x34b   : > { %v12092_v32 = vrot.slane %v14198_v7, %v11544_v60  ;;  %10331 = vmatprep.subr.bf16.mxu1 %v14192_v48  ;;  %v2369_v39 = vpack.c.bf16 %v1552_v50, %v1552_v50  ;;  %v14201_v21 = vcombine.high %v14199_v49, %v14200_v2  ;;  %v2144_v11 = vrot.slane %v2137_v20, %v11530_v41 }
 0x34c   : > { %v2152_v19 = vrot.slane %v9845_v45, %v11530_v41  ;;  %v2351_v16 = vpack.c.bf16 %v1103_v52, %v1103_v52  ;;  %v2125_v40 = vrot.slane %v2117_v1, %v11544_v60  ;;  %v2160_v42 = vrot.slane %v2153_v6, %v11530_v41 }
 0x34d   : > { %v12109_v0 = vrot.slane %v14201_v21, %v11544_v60  ;;  %v2168_v46 = vrot.slane %v9846_v17, %v11530_v41  ;;  %v2792_v47 = vsel %vm2373_vm2, %v2366_v30, 0  ;;  %v2102_v38 = vcombine.high %v2076_v59, %v2084_v26 }
 0x34e   : > { %v2169_v24 = vcombine.low %v2144_v11, %v2152_v19  ;;  %v2118_v28 = vcombine.high %v2092_v10, %v2100_v13  ;;  %v1755_v37 = vcombine.low %v12095_v36, %v12101_v63  ;;  %v12119_v53 = vcombine.high %v2109_v12, %v2125_v40 }
 0x34f   : > { %v2185_v43 = vcombine.low %v2160_v42, %v2168_v46  ;;  %v2170_v20 = vcombine.high %v2144_v11, %v2152_v19  ;;  %10304 = vmatmul.mubr.msk.bf16.vlgmr.msra.gmra.mrb[16].mxu0 %vm2373_vm2, %v2348_v14  ;;  %v2116_v25 = vrot.slane %v2102_v38, %v11544_v60  ;;  %v2186_v31 = vcombine.high %v2160_v42, %v2168_v46 }
 0x350   : > { %v12123_v45 = vrot.slane %v2169_v24, %v11544_v60  ;;  %v2132_v6 = vrot.slane %v2118_v28, %v11544_v60  ;;  %10314 = vmatpush3.bf16.xpose.msra.mxu0 %v2792_v47  ;;  %10322 = vmatmul.mubr.msk.bf16.vlgmr.msra.gmra.mrb[28].mxu1 %vm2373_vm2, %v2351_v16  ;;  %v2930_v33 = vsel %vm2373_vm2, %v2369_v39, 0  ;;  %v1035_v17 = vcombine.low %v12092_v32, %v12109_v0 }
 0x351   : > { %v1688_v55 = vcombine.high %v11989_v5, %v11992_v27  ;;  %v2193_v54 = vrot.slane %v2185_v43, %v11544_v60  ;;  %10315 = vmatprep.mubr.msk.bf16.mxu0 %vm11187_vm1, %v14192_v48  ;;  %10332 = vmatpush3.bf16.xpose.msra.mxu1 %v2930_v33  ;;  %v2184_v35 = vrot.slane %v2170_v20, %v11544_v60 }
 0x352   : > { %v12136_v56 = vcombine.low %v2116_v25, %v2132_v6  ;;  %v2200_v58 = vrot.slane %v2186_v31, %v11544_v60  ;;  %10325 = vmatprep.subr.bf16.mxu0 %v14192_v48  ;;  %10333 = vmatprep.mubr.msk.bf16.mxu1 %vm11187_vm1, %v14192_v48  ;;  %v968_v5 = vcombine.high %v12006_v9, %v12012_v15 }
 0x353   : > { %v12146_v27 = vcombine.high %v12123_v45, %v2193_v54  ;;  %v2368_v59 = vpack.c.bf16 %v1755_v37, %v1755_v37  ;;  %10343 = vmatprep.subr.bf16.mxu1 %v14192_v48  ;;  %v12151_v62 = vcombine.high %v2116_v25, %v2132_v6  ;;  %v2371_v50 = vpack.c.bf16 %v1688_v55, %v1688_v55 }
 0x354   : > { %v12149_v26 = vcombine.low %v2184_v35, %v2200_v58  ;;  %v12153_v14 = vcombine.high %v2184_v35, %v2200_v58  ;;  %v2350_v10 = vpack.c.bf16 %v1035_v17, %v1035_v17  ;;  %v14202_v3 = vcombine.high %v11858_v57, %v11861_v8 }
 0x355   : > { %v14203_v9 = vcombine.high %v11866_v18, %v11869_v23  ;;  %v2353_v13 = vpack.c.bf16 %v968_v5, %v968_v5  ;;  %v2884_v51 = vsel %vm2373_vm2, %v2368_v59, 0  ;;  %v1620_v30 = vcombine.high %v12036_v4, %v12039_v61 }
 0x356   : > { %v1152_v52 = vrot.slane %v14202_v3, %v11544_v60  ;;  %v3022_v34 = vsel %vm2373_vm2, %v2371_v50, 0  ;;  %v2133_v57 = vcombine.low %v2109_v12, %v2125_v40  ;;  %v1104_v18 = vcombine.high %v12060_v29, %v12066_v22 }
 0x357   : > { %v1168_v15 = vrot.slane %v14203_v9, %v11544_v60  ;;  %10316 = vmatmul.mubr.msk.bf16.vlgmr.msra.gmra.mrb[20].mxu0 %vm2373_vm2, %v2350_v10  ;;  %v2370_v23 = vpack.c.bf16 %v1620_v30, %v1620_v30  ;;  %v1756_v12 = vcombine.high %v12095_v36, %v12101_v63  ;;  %v1036_v29 = vcombine.high %v12092_v32, %v12109_v0 }
 0x358   : > { %10326 = vmatpush3.bf16.xpose.msra.mxu0 %v2884_v51  ;;  %10334 = vmatmul.mubr.msk.bf16.vlgmr.msra.gmra.mrb[32].mxu1 %vm2373_vm2, %v2353_v13  ;;  %v3302_v4 = vpack.c.bf16 %v2133_v57, %v2133_v57  ;;  %v2355_v44 = vpack.c.bf16 %v1104_v18, %v1104_v18  ;;  %v2201_v39 = vcombine.low %v12123_v45, %v2193_v54 }
 0x359   : > { %10327 = vmatprep.mubr.msk.bf16.mxu0 %vm11187_vm1, %v14192_v48  ;;  %10344 = vmatpush3.bf16.xpose.msra.mxu1 %v3022_v34  ;;  %v1171_v8 = vcombine.low %v1152_v52, %v1168_v15  ;;  %v2976_v7 = vsel %vm2373_vm2, %v2370_v23, 0  ;;  %v2372_v22 = vpack.c.bf16 %v1756_v12, %v1756_v12  ;;  %v2354_v36 = vpack.c.bf16 %v1036_v29, %v1036_v29 }
 0x35a   : > { %10337 = vmatprep.subr.bf16.mxu0 %v14192_v48  ;;  %10345 = vmatprep.mubr.msk.bf16.mxu1 %vm11187_vm1, %v14192_v48  ;;  %v3323_v1 = vsel %vm3321_vm3, %v3302_v4, 0  ;;  %v1172_v32 = vcombine.high %v1152_v52, %v1168_v15  ;;  %v3303_v49 = vpack.c.bf16 %v2201_v39, %v2201_v39 }
 0x35b   : > { %10355 = vmatprep.subr.bf16.mxu1 %v14192_v48  ;;  %v2352_v61 = vpack.c.bf16 %v1171_v8, %v1171_v8  ;;  %v3068_v63 = vsel %vm2373_vm2, %v2372_v22, 0 }
 0x35c   : > { %v2356_v2 = vpack.c.bf16 %v1172_v32, %v1172_v32  ;;  %v3369_v21 = vsel %vm3321_vm3, %v3303_v49, 0 }
 0x35f   : > { %10328 = vmatmul.mubr.msk.bf16.vlgmr.msra.gmra.mrb[24].mxu0 %vm2373_vm2, %v2352_v61 }
 0x360   : > { %10338 = vmatpush3.bf16.xpose.msra.mxu0 %v2976_v7  ;;  %10346 = vmatmul.mubr.msk.bf16.vlgmr.msra.gmra.mrb[36].mxu1 %vm2373_vm2, %v2355_v44 }
 0x361   : > { %10339 = vmatprep.mubr.msk.bf16.mxu0 %vm11187_vm1, %v14192_v48  ;;  %10356 = vmatpush3.bf16.msra.mxu1 %v3323_v1 }
 0x362   : > { %10349 = vmatprep.subr.bf16.mxu0 %v14192_v48  ;;  %10357 = vmatprep.mubr.msk.bf16.mxu1 %vm11187_vm1, %v14192_v48 }
 0x363   : > { %10367 = vmatprep.subr.bf16.mxu1 %v14192_v48 }
 0x367   : > { %10340 = vmatmul.mubr.msk.bf16.vlgmr.msra.gmra.mrb[28].mxu0 %vm2373_vm2, %v2354_v36 }
 0x368   : > { %10350 = vmatpush3.bf16.xpose.msra.mxu0 %v3068_v63  ;;  %10351 = vmatprep.mubr.msk.bf16.mxu0 %vm11187_vm1, %v14192_v48 }
 0x369   : > { %10361 = vmatprep.subr.bf16.mxu0 %v14192_v48 }
 0x36f   : > { %10352 = vmatmul.mubr.msk.bf16.vlgmr.msra.gmra.mrb[32].mxu0 %vm2373_vm2, %v2356_v2 }
 0x370   : > { %10362 = vmatpush3.bf16.msra.mxu0 %v3369_v21  ;;  %10363 = vmatprep.mubr.msk.bf16.mxu0 %vm11187_vm1, %v14192_v48 }
 0x371   : > { %10373 = vmatprep.subr.bf16.mxu0 %v14192_v48 }
 0x3f5   : > { %v12202_v0 = vpop.f32.mrb[8].mxu1 }
 0x3f6   : > { %v10263_v11 = vpop.f32.mrb[9].mxu1  ;;  %v3110_v19 = vsel %vm2373_vm2, %v12202_v0, -inf }
 0x3f7   : > { %3111 = vmax.xlane.f32.xlu0 %v3110_v19  ;;  %v2417_v16 = vpop.f32.mrb[10].mxu1 }
 0x3f8   : > { %v10264_v40 = vpop.f32.mrb[11].mxu1  ;;  %v14204_v16 = vld [vmem:[#allocation11_spill] sm:$0xff] }
 0x403   : > { %v12206_v42 = vpop.f32.mrb[12].mxu1 }
 0x404   : > { %v10275_v46 = vpop.f32.mrb[13].mxu1  ;;  %v3116_v47 = vsel %vm2373_vm2, %v12206_v42, -inf }
 0x405   : > { %3117 = vmax.xlane.f32.xlu0 %v3116_v47  ;;  %v2509_v24 = vpop.f32.mrb[14].mxu1 }
 0x406   : > { %v10276_v38 = vpop.f32.mrb[15].mxu1  ;;  %v12210_v28 = vpop.f32.mrb[4].mxu0 }
 0x407   : > { %v10269_v37 = vpop.f32.mrb[5].mxu0  ;;  %v3113_v43 = vsel %vm2373_vm2, %v12210_v28, -inf  ;;  %v14205_v38 = vld [vmem:[#allocation12_spill] sm:$0xff] }
 0x408   : > { %3114 = vmax.xlane.f32.xlu1 %v3113_v43  ;;  %v2463_v20 = vpop.f32.mrb[6].mxu0 }
 0x409   : > { %v10270_v45 = vpop.f32.mrb[7].mxu0 }
 0x40b   : > { %v12214_v25 = vpop.f32.mrb[16].mxu1 }
 0x40c   : > { %v10287_v6 = vpop.f32.mrb[17].mxu1  ;;  %v3122_v3 = vsel %vm2373_vm2, %v12214_v25, -inf }
 0x40d   : > { %v2601_v31 = vpop.f32.mrb[18].mxu1 }
 0x40e   : > { %v10288_v33 = vpop.f32.mrb[19].mxu1 }
 0x412   : > { %v12216_v17 = vpop.f32.mrb[8].mxu0 }
 0x413   : > { %v12218_v55 = vpop.f32.mrb[20].mxu1  ;;  %v10281_v54 = vpop.f32.mrb[9].mxu0  ;;  %v3119_v35 = vsel %vm2373_vm2, %v12216_v17, -inf }
 0x414   : > { %v10299_v58 = vpop.f32.mrb[21].mxu1  ;;  %v2555_v5 = vpop.f32.mrb[10].mxu0  ;;  %3120 = vmax.xlane.f32.xlu0 %v3119_v35  ;;  %v3128_v13 = vsel %vm2373_vm2, %v12218_v55, -inf }
 0x415   : > { %v2693_v59 = vpop.f32.mrb[22].mxu1  ;;  %v10282_v50 = vpop.f32.mrb[11].mxu0 }
 0x416   : > { %v10300_v10 = vpop.f32.mrb[23].mxu1 }
 0x418   : > { %3123 = vmax.xlane.f32.xlu0 %v3122_v3 }
 0x41a   : > { %v12224_v52 = vpop.f32.mrb[12].mxu0 }
 0x41b   : > { %v10293_v9 = vpop.f32.mrb[13].mxu0  ;;  %v3125_v15 = vsel %vm2373_vm2, %v12224_v52, -inf  ;;  %v12230_v51 = vpop.f32.mrb[24].mxu1 }
 0x41c   : > { %3126 = vmax.xlane.f32.xlu1 %v3125_v15  ;;  %v2647_v30 = vpop.f32.mrb[14].mxu0  ;;  %3129 = vmax.xlane.f32.xlu0 %v3128_v13  ;;  %v10311_v34 = vpop.f32.mrb[25].mxu1  ;;  %v3134_v59 = vsel %vm2373_vm2, %v12230_v51, -inf }
 0x41d   : > { %v10294_v57 = vpop.f32.mrb[15].mxu0  ;;  %v2785_v8 = vpop.f32.mrb[26].mxu1 }
 0x41e   : > { %v10312_v18 = vpop.f32.mrb[27].mxu1  ;;  %v12270_v34 = vpop.permute.xlu0 %1765 }
 0x422   : > { %v12232_v23 = vpop.f32.mrb[16].mxu0 }
 0x423   : > { %v10305_v4 = vpop.f32.mrb[17].mxu0  ;;  %v3131_v61 = vsel %vm2373_vm2, %v12232_v23, -inf  ;;  %v12236_v44 = vpop.f32.mrb[28].mxu1 }
 0x424   : > { %3132 = vmax.xlane.f32.xlu1 %v3131_v61  ;;  %v2739_v7 = vpop.f32.mrb[18].mxu0  ;;  %v10323_v12 = vpop.f32.mrb[29].mxu1  ;;  %v3140_v50 = vsel %vm2373_vm2, %v12236_v44, -inf }
 0x425   : > { %v10306_v1 = vpop.f32.mrb[19].mxu0  ;;  %v2877_v29 = vpop.f32.mrb[30].mxu1 }
 0x426   : > { %v10324_v22 = vpop.f32.mrb[31].mxu1  ;;  %v12273_v4 = vpop.permute.xlu1 %1767 }
 0x42a   : > { %v12238_v36 = vpop.f32.mrb[20].mxu0 }
 0x42b   : > { %v10317_v63 = vpop.f32.mrb[21].mxu0  ;;  %v12240_v39 = vpop.f32.mrb[32].mxu1  ;;  %v3137_v10 = vsel %vm2373_vm2, %v12238_v36, -inf }
 0x42c   : > { %v2831_v32 = vpop.f32.mrb[22].mxu0  ;;  %v10335_v49 = vpop.f32.mrb[33].mxu1  ;;  %v3146_v3 = vsel %vm2373_vm2, %v12240_v39, -inf }
 0x42d   : > { %v10318_v2 = vpop.f32.mrb[23].mxu0  ;;  %v2969_v21 = vpop.f32.mrb[34].mxu1 }
 0x42e   : > { %v10336_v11 = vpop.f32.mrb[35].mxu1 }
 0x432   : > { %v12242_v19 = vpop.f32.mrb[24].mxu0  ;;  %1777 = vrot.lane.b32.xlu0 %v14204_v16, %s11184_s7 }
 0x433   : > { %v10329_v40 = vpop.f32.mrb[25].mxu0  ;;  %v12246_v46 = vpop.f32.mrb[36].mxu1  ;;  %v3143_v9 = vsel %vm2373_vm2, %v12242_v19, -inf }
 0x434   : > { %v2923_v47 = vpop.f32.mrb[26].mxu0  ;;  %v10347_v24 = vpop.f32.mrb[37].mxu1  ;;  %v3152_v15 = vsel %vm2373_vm2, %v12246_v46, -inf }
 0x435   : > { %1779 = vrot.lane.b32.xlu1 %v14205_v38, %s11184_s7  ;;  %v10330_v37 = vpop.f32.mrb[27].mxu0  ;;  %v3061_v43 = vpop.f32.mrb[38].mxu1 }
 0x436   : > { %v10348_v20 = vpop.f32.mrb[39].mxu1 }
 0x43a   : > { %v12250_v45 = vpop.f32.mrb[28].mxu0 }
 0x43b   : > { %v10341_v6 = vpop.f32.mrb[29].mxu0  ;;  %v3149_v13 = vsel %vm2373_vm2, %v12250_v45, -inf }
 0x43c   : > { %v3015_v31 = vpop.f32.mrb[30].mxu0 }
 0x43d   : > { %v10342_v33 = vpop.f32.mrb[31].mxu0 }
 0x442   : > { %v12252_v54 = vpop.f32.mrb[32].mxu0 }
 0x443   : > { %v10353_v35 = vpop.f32.mrb[33].mxu0  ;;  %v3155_v30 = vsel %vm2373_vm2, %v12252_v54, -inf }
 0x444   : > { %v3107_v58 = vpop.f32.mrb[34].mxu0 }
 0x445   : > { %v10354_v5 = vpop.f32.mrb[35].mxu0 }
 0x451   : > { %3135 = vmax.xlane.f32.xlu0 %v3134_v59 }
 0x455   : > { %3141 = vmax.xlane.f32.xlu0 %v3140_v50 }
 0x459   : > { %3138 = vmax.xlane.f32.xlu1 %v3137_v10  ;;  %3147 = vmax.xlane.f32.xlu0 %v3146_v3 }
 0x45d   : > { %3144 = vmax.xlane.f32.xlu1 %v3143_v9  ;;  %3153 = vmax.xlane.f32.xlu0 %v3152_v15 }
 0x461   : > { %3150 = vmax.xlane.f32.xlu1 %v3149_v13 }
 0x465   : > { %3156 = vmax.xlane.f32.xlu1 %v3155_v30 }
 0x484   : > { %v3112_v57 = vpop.xlane.xlu0 %3111 }
 0x485   : > { %v3158_v8 = vsub.f32 %v12202_v0, %v3112_v57 }
 0x487   : > { %v3174_v18 = vmul.f32 1.442695, %v3158_v8 }
 0x489   : > { %10891 = vpow2.f32 %v3174_v18 }
 0x492   : > { %v3118_v61 = vpop.xlane.xlu0 %3117 }
 0x493   : > { %v3160_v7 = vsub.f32 %v12206_v42, %v3118_v61  ;;  %v12276_v12 = vpop.eup %10891 }
 0x494   : > { %v3206_v29 = vsel %vm2373_vm2, %v12276_v12, 0.0 }
 0x495   : > { %v3178_v1 = vmul.f32 1.442695, %v3160_v7  ;;  %v3115_v22 = vpop.xlane.xlu1 %3114  ;;  %3207 = vadd.xlane.f32.xlu0 %v3206_v29 }
 0x496   : > { %v3159_v63 = vsub.f32 %v12210_v28, %v3115_v22 }
 0x497   : > { %10893 = vpow2.f32 %v3178_v1 }
 0x498   : > { %v3176_v32 = vmul.f32 1.442695, %v3159_v63 }
 0x49a   : > { %10895 = vpow2.f32 %v3176_v32 }
 0x4a1   : > { %v12281_v0 = vpop.eup %10893  ;;  %v3121_v49 = vpop.xlane.xlu0 %3120 }
 0x4a2   : > { %v3212_v2 = vsel %vm2373_vm2, %v12281_v0, 0.0  ;;  %v3161_v42 = vsub.f32 %v12216_v17, %v3121_v49 }
 0x4a3   : > { %3213 = vadd.xlane.f32.xlu0 %v3212_v2 }
 0x4a4   : > { %v12286_v21 = vpop.eup %10895  ;;  %v3180_v11 = vmul.f32 1.442695, %v3161_v42 }
 0x4a5   : > { %v3209_v40 = vsel %vm2373_vm2, %v12286_v21, 0.0  ;;  %v3124_v24 = vpop.xlane.xlu0 %3123 }
 0x4a6   : > { %10897 = vpow2.f32 %v3180_v11  ;;  %3210 = vadd.xlane.f32.xlu1 %v3209_v40  ;;  %v3162_v17 = vsub.f32 %v12214_v25, %v3124_v24 }
 0x4a8   : > { %v3182_v20 = vmul.f32 1.442695, %v3162_v17 }
 0x4a9   : > { %v3127_v37 = vpop.xlane.xlu1 %3126  ;;  %v3130_v43 = vpop.xlane.xlu0 %3129 }
 0x4aa   : > { %v3164_v6 = vsub.f32 %v12218_v55, %v3130_v43  ;;  %10899 = vpow2.f32 %v3182_v20  ;;  %v3163_v5 = vsub.f32 %v12224_v52, %v3127_v37 }
 0x4ac   : > { %v3186_v33 = vmul.f32 1.442695, %v3164_v6  ;;  %v3184_v25 = vmul.f32 1.442695, %v3163_v5 }
 0x4ad   : > { %v12308_v55 = vpop.permute.xlu0 %1777 }
 0x4ae   : > { %10901 = vpow2.f32 %v3186_v33 }
 0x4b0   : > { %v12290_v28 = vpop.eup %10897 }
 0x4b1   : > { %v3215_v47 = vsel %vm2373_vm2, %v12290_v28, 0.0  ;;  %v3133_v31 = vpop.xlane.xlu1 %3132 }
 0x4b2   : > { %3216 = vadd.xlane.f32.xlu1 %v3215_v47  ;;  %v3165_v35 = vsub.f32 %v12232_v23, %v3133_v31 }
 0x4b4   : > { %v3188_v58 = vmul.f32 1.442695, %v3165_v35  ;;  %v12302_v59 = vpop.eup %10899 }
 0x4b5   : > { %v3218_v50 = vsel %vm2373_vm2, %v12302_v59, 0.0  ;;  %v12317_v30 = vpop.permute.xlu1 %1779 }
 0x4b6   : > { %10903 = vpow2.f32 %v3188_v58 }
 0x4b7   : > { %10905 = vpow2.f32 %v3184_v25 }
 0x4b8   : > { %v12306_v10 = vpop.eup %10901 }
 0x4b9   : > { %1789 = vrot.lane.b32.xlu0 %v14204_v16, %s11185_s12  ;;  %v3224_v23 = vsel %vm2373_vm2, %v12306_v10, 0.0 }
 0x4c0   : > { %v12312_v3 = vpop.eup %10903 }
 0x4c1   : > { %v3227_v9 = vsel %vm2373_vm2, %v12312_v3, 0.0  ;;  %v12319_v8 = vpop.eup %10905 }
 0x4c2   : > { %v3221_v29 = vsel %vm2373_vm2, %v12319_v8, 0.0 }
 0x4c3   : > { %1791 = vrot.lane.b32.xlu1 %v14205_v38, %s11185_s12 }
 0x4d8   : > { %3219 = vadd.xlane.f32.xlu0 %v3218_v50 }
 0x4dc   : > { %3225 = vadd.xlane.f32.xlu0 %v3224_v23 }
 0x4de   : > { %v3136_v52 = vpop.xlane.xlu0 %3135 }
 0x4df   : > { %v3166_v15 = vsub.f32 %v12230_v51, %v3136_v52 }
 0x4e0   : > { %3228 = vadd.xlane.f32.xlu0 %v3227_v9 }
 0x4e1   : > { %v3190_v13 = vmul.f32 1.442695, %v3166_v15 }
 0x4e2   : > { %v3142_v57 = vpop.xlane.xlu0 %3141 }
 0x4e3   : > { %10907 = vpow2.f32 %v3190_v13  ;;  %v3168_v18 = vsub.f32 %v12236_v44, %v3142_v57 }
 0x4e5   : > { %v3194_v61 = vmul.f32 1.442695, %v3168_v18 }
 0x4e6   : > { %v3139_v7 = vpop.xlane.xlu1 %3138  ;;  %v3148_v1 = vpop.xlane.xlu0 %3147 }
 0x4e7   : > { %10909 = vpow2.f32 %v3194_v61  ;;  %v3167_v22 = vsub.f32 %v12238_v36, %v3139_v7  ;;  %v3170_v51 = vsub.f32 %v12240_v39, %v3148_v1  ;;  %3222 = vadd.xlane.f32.xlu1 %v3221_v29  ;;  %v1933_v61 = vcombine.low %v14204_v16, %v12308_v55 }
 0x4e8   : > { %v1934_v7 = vcombine.high %v14204_v16, %v12308_v55 }
 0x4e9   : > { %v3192_v63 = vmul.f32 1.442695, %v3167_v22  ;;  %v3198_v32 = vmul.f32 1.442695, %v3170_v51  ;;  %v1941_v51 = vrot.slane %v1933_v61, %v11530_v41 }
 0x4ea   : > { %v3145_v49 = vpop.xlane.xlu1 %3144  ;;  %v3154_v2 = vpop.xlane.xlu0 %3153 }
 0x4eb   : > { %10911 = vpow2.f32 %v3192_v63  ;;  %v3169_v42 = vsub.f32 %v12242_v19, %v3145_v49  ;;  %v3172_v44 = vsub.f32 %v12246_v46, %v3154_v2  ;;  %v1948_v63 = vrot.slane %v1934_v7, %v11530_v41 }
 0x4ec   : > { %10913 = vpow2.f32 %v3198_v32 }
 0x4ed   : > { %v12328_v11 = vpop.eup %10907  ;;  %v3196_v40 = vmul.f32 1.442695, %v3169_v42  ;;  %v3202_v47 = vmul.f32 1.442695, %v3172_v44 }
 0x4ee   : > { %v3151_v24 = vpop.xlane.xlu1 %3150  ;;  %v3230_v36 = vsel %vm2373_vm2, %v12328_v11, 0.0 }
 0x4ef   : > { %10915 = vpow2.f32 %v3196_v40  ;;  %v3171_v39 = vsub.f32 %v12250_v45, %v3151_v24  ;;  %3231 = vadd.xlane.f32.xlu0 %v3230_v36 }
 0x4f0   : > { %10917 = vpow2.f32 %v3202_v47 }
 0x4f1   : > { %v12333_v17 = vpop.eup %10909  ;;  %v3200_v37 = vmul.f32 1.442695, %v3171_v39 }
 0x4f2   : > { %v3157_v19 = vpop.xlane.xlu1 %3156  ;;  %v3236_v46 = vsel %vm2373_vm2, %v12333_v17, 0.0 }
 0x4f3   : > { %10919 = vpow2.f32 %v3200_v37  ;;  %v3173_v43 = vsub.f32 %v12252_v54, %v3157_v19  ;;  %3237 = vadd.xlane.f32.xlu0 %v3236_v46 }
 0x4f5   : > { %v12338_v20 = vpop.eup %10911  ;;  %v3204_v6 = vmul.f32 1.442695, %v3173_v43 }
 0x4f6   : > { %v12340_v31 = vpop.eup %10913  ;;  %v3233_v45 = vsel %vm2373_vm2, %v12338_v20, 0.0 }
 0x4f7   : > { %10921 = vpow2.f32 %v3204_v6  ;;  %3234 = vadd.xlane.f32.xlu1 %v3233_v45  ;;  %v3242_v33 = vsel %vm2373_vm2, %v12340_v31, 0.0 }
 0x4f8   : > { %3243 = vadd.xlane.f32.xlu0 %v3242_v33 }
 0x4f9   : > { %v12346_v35 = vpop.eup %10915 }
 0x4fa   : > { %v12348_v58 = vpop.eup %10917  ;;  %v3239_v54 = vsel %vm2373_vm2, %v12346_v35, 0.0 }
 0x4fb   : > { %3240 = vadd.xlane.f32.xlu1 %v3239_v54  ;;  %v3248_v5 = vsel %vm2373_vm2, %v12348_v58, 0.0 }
 0x4fc   : > { %3249 = vadd.xlane.f32.xlu0 %v3248_v5 }
 0x4fd   : > { %v12354_v25 = vpop.eup %10919 }
 0x4fe   : > { %v3245_v50 = vsel %vm2373_vm2, %v12354_v25, 0.0 }
 0x4ff   : > { %3246 = vadd.xlane.f32.xlu1 %v3245_v50 }
 0x501   : > { %v12358_v23 = vpop.eup %10921 }
 0x502   : > { %v3251_v52 = vsel %vm2373_vm2, %v12358_v23, 0.0 }
 0x503   : > { %3252 = vadd.xlane.f32.xlu1 %v3251_v52 }
 0x522   : > { %v3208_v9 = vpop.xlane.xlu0 %3207 }
 0x523   : > { %10923 = vrcp.f32 %v3208_v9  ;;  %v2001_v9 = vcombine.low %v14205_v38, %v12317_v30 }
 0x52d   : > { %v10924_v15 = vpop.eup %10923 }
 0x52e   : > { %v3270_v13 = vmul.f32 %v10924_v15, %v12276_v12 }
 0x530   : > { %v3214_v57 = vpop.xlane.xlu0 %3213  ;;  %v3286_v18 = vpack.c.bf16 %v3270_v13, %v3270_v13 }
 0x532   : > { %10358 = vmatmul.mubr.msk.bf16.vlgmr.msra.gmra.mrb[40].mxu1 %vm2373_vm2, %v3286_v18 }
 0x533   : > { %v3211_v1 = vpop.xlane.xlu1 %3210  ;;  %10369 = vmatprep.mubr.msk.bf16.mxu1 %vm11187_vm1, %v14192_v48 }
 0x534   : > { %v1790_v29 = vpop.permute.xlu0 %1789  ;;  %10925 = vrcp.f32 %v3211_v1 }
 0x535   : > { %v1949_v22 = vcombine.low %v12270_v34, %v1790_v29  ;;  %v1950_v12 = vcombine.high %v12270_v34, %v1790_v29  ;;  %10927 = vrcp.f32 %v3214_v57  ;;  %v2002_v57 = vcombine.high %v14205_v38, %v12317_v30 }
 0x536   : > { %v2009_v30 = vrot.slane %v2001_v9, %v11530_v41 }
 0x537   : > { %v1957_v32 = vrot.slane %v1949_v22, %v11530_v41  ;;  %v1964_v16 = vrot.slane %v1950_v12, %v11530_v41 }
 0x539   : > { %v1965_v55 = vcombine.low %v1941_v51, %v1957_v32  ;;  %v1966_v49 = vcombine.high %v1941_v51, %v1957_v32  ;;  %v1981_v2 = vcombine.low %v1948_v63, %v1964_v16  ;;  %v1982_v42 = vcombine.high %v1948_v63, %v1964_v16 }
 0x53a   : > { %v2016_v32 = vrot.slane %v2002_v57, %v11530_v41 }
 0x53b   : > { %v1973_v44 = vrot.slane %v1965_v55, %v11544_v60  ;;  %v1980_v40 = vrot.slane %v1966_v49, %v11544_v60  ;;  %v1989_v47 = vrot.slane %v1981_v2, %v11544_v60  ;;  %v1996_v34 = vrot.slane %v1982_v42, %v11544_v60 }
 0x53d   : > { %v2205_v24 = vcombine.low %v1973_v44, %v1980_v40  ;;  %v9847_v36 = vcombine.high %v1973_v44, %v1980_v40  ;;  %v2221_v39 = vcombine.low %v1989_v47, %v1996_v34  ;;  %v9848_v37 = vcombine.high %v1989_v47, %v1996_v34 }
 0x53e   : > { %v10926_v19 = vpop.eup %10925  ;;  %v3306_v34 = vpack.c.bf16 %v12119_v53, %v12119_v53 }
 0x53f   : > { %v2212_v46 = vrot.slane %v2205_v24, %v11530_v41  ;;  %v2220_v43 = vrot.slane %v9847_v36, %v11530_v41  ;;  %v2228_v6 = vrot.slane %v2221_v39, %v11530_v41  ;;  %v2236_v45 = vrot.slane %v9848_v37, %v11530_v41  ;;  %v3217_v33 = vpop.xlane.xlu1 %3216 }
 0x540   : > { %v3271_v54 = vmul.f32 %v10926_v19, %v12286_v21  ;;  %v10928_v21 = vpop.eup %10927  ;;  %10929 = vrcp.f32 %v3217_v33  ;;  %v3507_v53 = vsel %vm3321_vm3, %v3306_v34, 0 }
 0x541   : > { %v2237_v5 = vcombine.low %v2212_v46, %v2220_v43  ;;  %v2253_v50 = vcombine.low %v2228_v6, %v2236_v45  ;;  %v2238_v52 = vcombine.high %v2212_v46, %v2220_v43  ;;  %v2254_v13 = vcombine.high %v2228_v6, %v2236_v45 }
 0x542   : > { %v3287_v15 = vpack.c.bf16 %v3271_v54, %v3271_v54 }
 0x543   : > { %v12390_v18 = vrot.slane %v2237_v5, %v11544_v60  ;;  %v12393_v61 = vrot.slane %v2253_v50, %v11544_v60  ;;  %v2252_v7 = vrot.slane %v2238_v52, %v11544_v60  ;;  %v1792_v1 = vpop.permute.xlu1 %1791  ;;  %v2268_v29 = vrot.slane %v2254_v13, %v11544_v60 }
 0x544   : > { %10364 = vmatmul.mubr.msk.bf16.vlgmr.msra.gmra.mrb[36].mxu0 %vm2373_vm2, %v3287_v15  ;;  %v2017_v22 = vcombine.low %v12273_v4, %v1792_v1  ;;  %v2018_v12 = vcombine.high %v12273_v4, %v1792_v1  ;;  %v3272_v4 = vmul.f32 %v10928_v21, %v12281_v0 }
 0x545   : > { %v2269_v38 = vcombine.low %v12390_v18, %v12393_v61  ;;  %10375 = vmatprep.mubr.msk.bf16.mxu0 %vm11187_vm1, %v14192_v48  ;;  %v12405_v51 = vcombine.low %v2252_v7, %v2268_v29  ;;  %v12407_v63 = vcombine.high %v2252_v7, %v2268_v29  ;;  %v3307_v29 = vpack.c.bf16 %v12146_v27, %v12146_v27 }
 0x546   : > { %v2025_v16 = vrot.slane %v2017_v22, %v11530_v41  ;;  %v2032_v55 = vrot.slane %v2018_v12, %v11530_v41  ;;  %v3288_v0 = vpack.c.bf16 %v3272_v4, %v3272_v4  ;;  %v2270_v27 = vcombine.high %v12390_v18, %v12393_v61 }
 0x547   : > { %v3304_v49 = vpack.c.bf16 %v2269_v38, %v2269_v38  ;;  %v3553_v12 = vsel %vm3321_vm3, %v3307_v29, 0  ;;  %v3314_v29 = vpack.c.bf16 %v12151_v62, %v12151_v62 }
 0x548   : > { %v2033_v2 = vcombine.low %v2009_v30, %v2025_v16  ;;  %v2034_v42 = vcombine.high %v2009_v30, %v2025_v16  ;;  %v2049_v44 = vcombine.low %v2016_v32, %v2032_v55  ;;  %v2050_v40 = vcombine.high %v2016_v32, %v2032_v55 }
 0x549   : > { %v3415_v47 = vsel %vm3321_vm3, %v3304_v49, 0  ;;  %v3308_v16 = vpack.c.bf16 %v2270_v27, %v2270_v27  ;;  %v3875_v27 = vsel %vm3321_vm3, %v3314_v29, 0 }
 0x54a   : > { %v2041_v24 = vrot.slane %v2033_v2, %v11544_v60  ;;  %v2048_v36 = vrot.slane %v2034_v42, %v11544_v60  ;;  %v2057_v39 = vrot.slane %v2049_v44, %v11544_v60  ;;  %v2064_v37 = vrot.slane %v2050_v40, %v11544_v60  ;;  %10368 = vmatpush3.bf16.msra.mxu1 %v3415_v47  ;;  %v10930_v13 = vpop.eup %10929 }
 0x54b   : > { %10379 = vmatprep.subr.bf16.mxu1 %v14192_v48  ;;  %v3273_v21 = vmul.f32 %v10930_v13, %v12290_v28  ;;  %v3599_v2 = vsel %vm3321_vm3, %v3308_v16, 0  ;;  %v3316_v16 = vpack.c.bf16 %v12407_v63, %v12407_v63 }
 0x54c   : > { %v2273_v19 = vcombine.low %v2041_v24, %v2048_v36  ;;  %v9849_v46 = vcombine.high %v2041_v24, %v2048_v36  ;;  %v2289_v43 = vcombine.low %v2057_v39, %v2064_v37  ;;  %v9850_v6 = vcombine.high %v2057_v39, %v2064_v37 }
 0x54d   : > { %10370 = vmatmul.mubr.msk.bf16.vlgmr.msra.gmra.mrb[44].mxu1 %vm2373_vm2, %v3288_v0  ;;  %v3289_v22 = vpack.c.bf16 %v3273_v21, %v3273_v21 }
 0x54e   : > { %10380 = vmatpush3.bf16.msra.mxu1 %v3507_v53  ;;  %v12424_v45 = vrot.slane %v2273_v19, %v11530_v41  ;;  %v12427_v33 = vrot.slane %v9849_v46, %v11530_v41  ;;  %v12430_v54 = vrot.slane %v2289_v43, %v11530_v41  ;;  %v12433_v5 = vrot.slane %v9850_v6, %v11530_v41 }
 0x54f   : > { %10381 = vmatprep.mubr.msk.bf16.mxu1 %vm11187_vm1, %v14192_v48  ;;  %10391 = vmatprep.subr.bf16.mxu1 %v14192_v48  ;;  %v3311_v53 = vpack.c.bf16 %v12149_v26, %v12149_v26 }
 0x550   : > { %v2305_v50 = vcombine.low %v12424_v45, %v12427_v33  ;;  %v2321_v52 = vcombine.low %v12430_v54, %v12433_v5  ;;  %v2306_v19 = vcombine.high %v12424_v45, %v12427_v33  ;;  %v2322_v46 = vcombine.high %v12430_v54, %v12433_v5 }
 0x551   : > { %v3312_v45 = vpack.c.bf16 %v12405_v51, %v12405_v51  ;;  %v3737_v26 = vsel %vm3321_vm3, %v3311_v53, 0 }
 0x552   : > { %v2313_v9 = vrot.slane %v2305_v50, %v11544_v60  ;;  %v2329_v15 = vrot.slane %v2321_v52, %v11544_v60  ;;  %v2320_v5 = vrot.slane %v2306_v19, %v11544_v60  ;;  %v2336_v50 = vrot.slane %v2322_v46, %v11544_v60 }
 0x554   : > { %v2337_v57 = vcombine.low %v2313_v9, %v2329_v15  ;;  %v2338_v47 = vcombine.high %v2313_v9, %v2329_v15  ;;  %v2339_v51 = vcombine.low %v2320_v5, %v2336_v50 }
 0x556   : > { %v3305_v7 = vpack.c.bf16 %v2337_v57, %v2337_v57 }
 0x558   : > { %v3461_v1 = vsel %vm3321_vm3, %v3305_v7, 0 }
 0x559   : > { %10374 = vmatpush3.bf16.msra.mxu0 %v3461_v1  ;;  %v3313_v1 = vpack.c.bf16 %v2339_v51, %v2339_v51 }
 0x55a   : > { %10385 = vmatprep.subr.bf16.mxu0 %v14192_v48 }
 0x55c   : > { %10376 = vmatmul.mubr.msk.bf16.vlgmr.msra.gmra.mrb[40].mxu0 %vm2373_vm2, %v3289_v22 }
 0x55d   : > { %10386 = vmatpush3.bf16.msra.mxu0 %v3553_v12  ;;  %10387 = vmatprep.mubr.msk.bf16.mxu0 %vm11187_vm1, %v14192_v48 }
 0x55e   : > { %10397 = vmatprep.subr.bf16.mxu0 %v14192_v48 }
 0x565   : > { %v3220_v28 = vpop.xlane.xlu0 %3219 }
 0x566   : > { %10931 = vrcp.f32 %v3220_v28 }
 0x569   : > { %v3226_v38 = vpop.xlane.xlu0 %3225 }
 0x56a   : > { %10933 = vrcp.f32 %v3226_v38 }
 0x56d   : > { %v3229_v42 = vpop.xlane.xlu0 %3228 }
 0x570   : > { %v10932_v30 = vpop.eup %10931 }
 0x571   : > { %v3274_v32 = vmul.f32 %v10932_v30, %v12302_v59  ;;  %v3310_v59 = vpack.c.bf16 %v12136_v56, %v12136_v56  ;;  %v3309_v56 = vpack.c.bf16 %v2338_v47, %v2338_v47 }
 0x573   : > { %v3290_v55 = vpack.c.bf16 %v3274_v32, %v3274_v32  ;;  %v3691_v40 = vsel %vm3321_vm3, %v3310_v59, 0  ;;  %v3645_v37 = vsel %vm3321_vm3, %v3309_v56, 0  ;;  %v3315_v32 = vpack.c.bf16 %v12153_v14, %v12153_v14 }
 0x574   : > { %v10934_v49 = vpop.eup %10933  ;;  %v3223_v4 = vpop.xlane.xlu1 %3222 }
 0x575   : > { %10382 = vmatmul.mubr.msk.bf16.vlgmr.msra.gmra.mrb[48].mxu1 %vm2373_vm2, %v3290_v55  ;;  %10935 = vrcp.f32 %v3223_v4  ;;  %v3276_v18 = vmul.f32 %v10934_v49, %v12306_v10 }
 0x576   : > { %10392 = vmatpush3.bf16.msra.mxu1 %v3599_v2  ;;  %10393 = vmatprep.mubr.msk.bf16.mxu1 %vm11187_vm1, %v14192_v48  ;;  %10937 = vrcp.f32 %v3229_v42  ;;  %v2340_v42 = vcombine.high %v2320_v5, %v2336_v50 }
 0x577   : > { %10403 = vmatprep.subr.bf16.mxu1 %v14192_v48  ;;  %v3292_v61 = vpack.c.bf16 %v3276_v18, %v3276_v18 }
 0x578   : > { %v3317_v18 = vpack.c.bf16 %v2340_v42, %v2340_v42 }
 0x57c   : > { %v3232_v44 = vpop.xlane.xlu0 %3231 }
 0x57d   : > { %10394 = vmatmul.mubr.msk.bf16.vlgmr.msra.gmra.mrb[52].mxu1 %vm2373_vm2, %v3292_v61  ;;  %10939 = vrcp.f32 %v3232_v44 }
 0x57e   : > { %10404 = vmatpush3.bf16.msra.mxu1 %v3691_v40  ;;  %10405 = vmatprep.mubr.msk.bf16.mxu1 %vm11187_vm1, %v14192_v48  ;;  %v4013_v40 = vsel %vm3321_vm3, %v3317_v18, 0 }
 0x57f   : > { %10415 = vmatprep.subr.bf16.mxu1 %v14192_v48  ;;  %v10936_v34 = vpop.eup %10935 }
 0x580   : > { %v3238_v10 = vpop.xlane.xlu0 %3237  ;;  %v3275_v24 = vmul.f32 %v10936_v34, %v12319_v8  ;;  %v10938_v39 = vpop.eup %10937 }
 0x581   : > { %10941 = vrcp.f32 %v3238_v10  ;;  %v3277_v8 = vmul.f32 %v10938_v39, %v12312_v3  ;;  %v3783_v3 = vsel %vm3321_vm3, %v3312_v45, 0 }
 0x582   : > { %v3291_v36 = vpack.c.bf16 %v3275_v24, %v3275_v24 }
 0x583   : > { %v3293_v52 = vpack.c.bf16 %v3277_v8, %v3277_v8 }
 0x584   : > { %10388 = vmatmul.mubr.msk.bf16.vlgmr.msra.gmra.mrb[44].mxu0 %vm2373_vm2, %v3291_v36  ;;  %v3235_v0 = vpop.xlane.xlu1 %3234 }
 0x585   : > { %10398 = vmatpush3.bf16.msra.mxu0 %v3645_v37  ;;  %10943 = vrcp.f32 %v3235_v0  ;;  %v3244_v43 = vpop.xlane.xlu0 %3243  ;;  %10399 = vmatprep.mubr.msk.bf16.mxu0 %vm11187_vm1, %v14192_v48 }
 0x586   : > { %10409 = vmatprep.subr.bf16.mxu0 %v14192_v48  ;;  %10945 = vrcp.f32 %v3244_v43 }
 0x587   : > { %v10940_v6 = vpop.eup %10939 }
 0x588   : > { %v3241_v33 = vpop.xlane.xlu1 %3240  ;;  %v3278_v54 = vmul.f32 %v10940_v6, %v12328_v11 }
 0x589   : > { %10947 = vrcp.f32 %v3241_v33  ;;  %v3250_v13 = vpop.xlane.xlu0 %3249 }
 0x58a   : > { %v3294_v9 = vpack.c.bf16 %v3278_v54, %v3278_v54  ;;  %10949 = vrcp.f32 %v3250_v13 }
 0x58b   : > { %v10942_v15 = vpop.eup %10941 }
 0x58c   : > { %10400 = vmatmul.mubr.msk.bf16.vlgmr.msra.gmra.mrb[48].mxu0 %vm2373_vm2, %v3293_v52  ;;  %10406 = vmatmul.mubr.msk.bf16.vlgmr.msra.gmra.mrb[56].mxu1 %vm2373_vm2, %v3294_v9  ;;  %v3247_v11 = vpop.xlane.xlu1 %3246  ;;  %v3280_v57 = vmul.f32 %v10942_v15, %v12333_v17  ;;  %v3829_v17 = vsel %vm3321_vm3, %v3313_v1, 0 }
 0x58d   : > { %10410 = vmatpush3.bf16.msra.mxu0 %v3737_v26  ;;  %10416 = vmatpush3.bf16.msra.mxu1 %v3783_v3  ;;  %10951 = vrcp.f32 %v3247_v11 }
 0x58e   : > { %10411 = vmatprep.mubr.msk.bf16.mxu0 %vm11187_vm1, %v14192_v48  ;;  %10417 = vmatprep.mubr.msk.bf16.mxu1 %vm11187_vm1, %v14192_v48  ;;  %v3296_v28 = vpack.c.bf16 %v3280_v57, %v3280_v57 }
 0x58f   : > { %v10944_v7 = vpop.eup %10943  ;;  %10421 = vmatprep.subr.bf16.mxu0 %v14192_v48  ;;  %10427 = vmatprep.subr.bf16.mxu1 %v14192_v48 }
 0x590   : > { %v3279_v21 = vmul.f32 %v10944_v7, %v12338_v20  ;;  %v10946_v22 = vpop.eup %10945  ;;  %v3253_v20 = vpop.xlane.xlu1 %3252 }
 0x591   : > { %v3282_v30 = vmul.f32 %v10946_v22, %v12340_v31  ;;  %10953 = vrcp.f32 %v3253_v20  ;;  %v3921_v31 = vsel %vm3321_vm3, %v3315_v32, 0 }
 0x592   : > { %v3295_v12 = vpack.c.bf16 %v3279_v21, %v3279_v21 }
 0x593   : > { %v10948_v38 = vpop.eup %10947  ;;  %v3298_v4 = vpack.c.bf16 %v3282_v30, %v3282_v30 }
 0x594   : > { %10412 = vmatmul.mubr.msk.bf16.vlgmr.msra.gmra.mrb[52].mxu0 %vm2373_vm2, %v3295_v12  ;;  %10418 = vmatmul.mubr.msk.bf16.vlgmr.msra.gmra.mrb[60].mxu1 %vm2373_vm2, %v3296_v28  ;;  %v3281_v62 = vmul.f32 %v10948_v38, %v12346_v35  ;;  %v10950_v55 = vpop.eup %10949  ;;  %v3967_v35 = vsel %vm3321_vm3, %v3316_v16, 0 }
 0x595   : > { %10422 = vmatpush3.bf16.msra.mxu0 %v3829_v17  ;;  %10428 = vmatpush3.bf16.msra.mxu1 %v3875_v27  ;;  %v3284_v63 = vmul.f32 %v10950_v55, %v12348_v58 }
 0x596   : > { %10423 = vmatprep.mubr.msk.bf16.mxu0 %vm11187_vm1, %v14192_v48  ;;  %10429 = vmatprep.mubr.msk.bf16.mxu1 %vm11187_vm1, %v14192_v48  ;;  %v3297_v49 = vpack.c.bf16 %v3281_v62, %v3281_v62 }
 0x597   : > { %10433 = vmatprep.subr.bf16.mxu0 %v14192_v48  ;;  %10439 = vmatprep.subr.bf16.mxu1 %v14192_v48  ;;  %v10952_v2 = vpop.eup %10951  ;;  %v3300_v61 = vpack.c.bf16 %v3284_v63, %v3284_v63 }
 0x598   : > { %v3283_v14 = vmul.f32 %v10952_v2, %v12354_v25 }
 0x59a   : > { %v3299_v59 = vpack.c.bf16 %v3283_v14, %v3283_v14 }
 0x59b   : > { %v10954_v44 = vpop.eup %10953 }
 0x59c   : > { %10424 = vmatmul.mubr.msk.bf16.vlgmr.msra.gmra.mrb[56].mxu0 %vm2373_vm2, %v3297_v49  ;;  %10430 = vmatmul.mubr.msk.bf16.vlgmr.msra.gmra.mrb[64].mxu1 %vm2373_vm2, %v3298_v4  ;;  %v3285_v25 = vmul.f32 %v10954_v44, %v12358_v23 }
 0x59d   : > { %10434 = vmatpush3.bf16.msra.mxu0 %v3921_v31  ;;  %10440 = vmatpush3.bf16.msra.mxu1 %v3967_v35 }
 0x59e   : > { %10435 = vmatprep.mubr.msk.bf16.mxu0 %vm11187_vm1, %v14192_v48  ;;  %10441 = vmatprep.mubr.msk.bf16.mxu1 %vm11187_vm1, %v14192_v48  ;;  %v3301_v47 = vpack.c.bf16 %v3285_v25, %v3285_v25 }
 0x59f   : > { %10445 = vmatprep.subr.bf16.mxu0 %v14192_v48 }
 0x5a4   : > { %10436 = vmatmul.mubr.msk.bf16.vlgmr.msra.gmra.mrb[60].mxu0 %vm2373_vm2, %v3299_v59  ;;  %10442 = vmatmul.mubr.msk.bf16.vlgmr.msra.gmra.mrb[68].mxu1 %vm2373_vm2, %v3300_v61 }
 0x5a5   : > { %10446 = vmatpush3.bf16.msra.mxu0 %v4013_v40  ;;  %10447 = vmatprep.mubr.msk.bf16.mxu0 %vm11187_vm1, %v14192_v48 }
 0x5ac   : > { %10448 = vmatmul.mubr.msk.bf16.vlgmr.msra.gmra.mrb[64].mxu0 %vm2373_vm2, %v3301_v47 }
 0x605   : > { %v3359_v58 = vpop.f32.mrb[40].mxu1 }
 0x606   : > { %v10359_v34 = vpop.f32.mrb[41].mxu1 }
 0x607   : > { %v3362_v10 = vpop.f32.mrb[42].mxu1 }
 0x608   : > { %v10360_v24 = vpop.f32.mrb[43].mxu1 }
 0x617   : > { %v12536_v56 = vpop.f32.mrb[36].mxu0 }
 0x618   : > { %v10365_v36 = vpop.f32.mrb[37].mxu0 }
 0x619   : > { %v3408_v39 = vpop.f32.mrb[38].mxu0 }
 0x61a   : > { %v10366_v37 = vpop.f32.mrb[39].mxu0 }
 0x620   : > { %v12538_v0 = vpop.f32.mrb[44].mxu1 }
 0x621   : > { %v10371_v19 = vpop.f32.mrb[45].mxu1 }
 0x622   : > { %v3454_v46 = vpop.f32.mrb[46].mxu1 }
 0x623   : > { %v10372_v43 = vpop.f32.mrb[47].mxu1 }
 0x62f   : > { %v12540_v8 = vpop.f32.mrb[40].mxu0 }
 0x630   : > { %v10377_v23 = vpop.f32.mrb[41].mxu0 }
 0x631   : > { %v3500_v6 = vpop.f32.mrb[42].mxu0 }
 0x632   : > { %v10378_v53 = vpop.f32.mrb[43].mxu0 }
 0x648   : > { %v3543_v45 = vpop.f32.mrb[48].mxu1 }
 0x649   : > { %v10383_v33 = vpop.f32.mrb[49].mxu1 }
 0x64a   : > { %v3546_v54 = vpop.f32.mrb[50].mxu1 }
 0x64b   : > { %v10384_v5 = vpop.f32.mrb[51].mxu1 }
 0x650   : > { %v12542_v50 = vpop.f32.mrb[52].mxu1 }
 0x651   : > { %v10395_v52 = vpop.f32.mrb[53].mxu1 }
 0x652   : > { %v3638_v9 = vpop.f32.mrb[54].mxu1 }
 0x653   : > { %v10396_v15 = vpop.f32.mrb[55].mxu1 }
 0x657   : > { %v12544_v26 = vpop.f32.mrb[44].mxu0 }
 0x658   : > { %v10389_v3 = vpop.f32.mrb[45].mxu0 }
 0x659   : > { %v3592_v51 = vpop.f32.mrb[46].mxu0 }
 0x65a   : > { %v10390_v13 = vpop.f32.mrb[47].mxu0 }
 0x65f   : > { %v12546_v11 = vpop.f32.mrb[48].mxu0  ;;  %v3727_v57 = vpop.f32.mrb[56].mxu1 }
 0x660   : > { %v4055_v7 = vcombine.low %v3359_v58, %v3727_v57  ;;  %v4056_v21 = vcombine.high %v3359_v58, %v3727_v57  ;;  %v10401_v1 = vpop.f32.mrb[49].mxu0  ;;  %v10407_v29 = vpop.f32.mrb[57].mxu1 }
 0x661   : > { %v3684_v22 = vpop.f32.mrb[50].mxu0  ;;  %v3730_v12 = vpop.f32.mrb[58].mxu1 }
 0x662   : > { %v10402_v28 = vpop.f32.mrb[51].mxu0  ;;  %v10408_v38 = vpop.f32.mrb[59].mxu1  ;;  %v4063_v47 = vrot.slane %v4055_v7, %v11530_v41  ;;  %v4070_v58 = vrot.slane %v4056_v21, %v11530_v41 }
 0x667   : > { %v3773_v17 = vpop.f32.mrb[52].mxu0  ;;  %v3819_v27 = vpop.f32.mrb[60].mxu1 }
 0x668   : > { %v4123_v20 = vcombine.low %v12536_v56, %v3773_v17  ;;  %v4124_v62 = vcombine.high %v12536_v56, %v3773_v17  ;;  %v4191_v30 = vcombine.low %v12538_v0, %v3819_v27  ;;  %v4192_v32 = vcombine.high %v12538_v0, %v3819_v27  ;;  %v10413_v16 = vpop.f32.mrb[53].mxu0  ;;  %v10419_v55 = vpop.f32.mrb[61].mxu1 }
 0x669   : > { %v3776_v49 = vpop.f32.mrb[54].mxu0  ;;  %v3822_v4 = vpop.f32.mrb[62].mxu1 }
 0x66a   : > { %v10414_v2 = vpop.f32.mrb[55].mxu0  ;;  %v10420_v31 = vpop.f32.mrb[63].mxu1  ;;  %v4131_v19 = vrot.slane %v4123_v20, %v11530_v41  ;;  %v4138_v46 = vrot.slane %v4124_v62, %v11530_v41  ;;  %v4199_v53 = vrot.slane %v4191_v30, %v11530_v41 }
 0x66f   : > { %v3865_v35 = vpop.f32.mrb[56].mxu0  ;;  %v3911_v42 = vpop.f32.mrb[64].mxu1 }
 0x670   : > { %v4259_v14 = vcombine.low %v12540_v8, %v3865_v35  ;;  %v4260_v63 = vcombine.high %v12540_v8, %v3865_v35  ;;  %v4071_v18 = vcombine.low %v3543_v45, %v3911_v42  ;;  %v4072_v59 = vcombine.high %v3543_v45, %v3911_v42  ;;  %v10425_v61 = vpop.f32.mrb[57].mxu0  ;;  %v10431_v44 = vpop.f32.mrb[65].mxu1 }
 0x671   : > { %v3868_v40 = vpop.f32.mrb[58].mxu0  ;;  %v3914_v25 = vpop.f32.mrb[66].mxu1  ;;  %v4206_v45 = vrot.slane %v4192_v32, %v11530_v41 }
 0x672   : > { %v4079_v34 = vrot.slane %v4071_v18, %v11530_v41  ;;  %v4086_v10 = vrot.slane %v4072_v59, %v11530_v41  ;;  %v10426_v24 = vpop.f32.mrb[59].mxu0  ;;  %v10432_v56 = vpop.f32.mrb[67].mxu1  ;;  %v12567_v33 = vrot.slane %v4259_v14, %v11530_v41  ;;  %v12570_v54 = vrot.slane %v4260_v63, %v11530_v41 }
 0x674   : > { %v4087_v36 = vcombine.low %v4063_v47, %v4079_v34  ;;  %v4088_v39 = vcombine.high %v4063_v47, %v4079_v34  ;;  %v4103_v37 = vcombine.low %v4070_v58, %v4086_v10  ;;  %v4104_v0 = vcombine.high %v4070_v58, %v4086_v10 }
 0x676   : > { %v4095_v43 = vrot.slane %v4087_v36, %v11544_v60  ;;  %v4102_v8 = vrot.slane %v4088_v39, %v11544_v60  ;;  %v4111_v23 = vrot.slane %v4103_v37, %v11544_v60  ;;  %v4118_v6 = vrot.slane %v4104_v0, %v11544_v60 }
 0x677   : > { %v3957_v5 = vpop.f32.mrb[60].mxu0  ;;  %v4003_v52 = vpop.f32.mrb[68].mxu1 }
 0x678   : > { %v4327_v9 = vcombine.low %v4095_v43, %v4102_v8  ;;  %v9883_v15 = vcombine.high %v4095_v43, %v4102_v8  ;;  %v4343_v3 = vcombine.low %v4111_v23, %v4118_v6  ;;  %v9884_v51 = vcombine.high %v4111_v23, %v4118_v6  ;;  %v10437_v13 = vpop.f32.mrb[61].mxu0  ;;  %v10443_v57 = vpop.f32.mrb[69].mxu1 }
 0x679   : > { %v4139_v7 = vcombine.low %v12544_v26, %v3957_v5  ;;  %v4140_v21 = vcombine.high %v12544_v26, %v3957_v5  ;;  %v4207_v1 = vcombine.low %v12542_v50, %v4003_v52  ;;  %v4208_v29 = vcombine.high %v12542_v50, %v4003_v52  ;;  %v3960_v22 = vpop.f32.mrb[62].mxu0  ;;  %v4006_v12 = vpop.f32.mrb[70].mxu1 }
 0x67a   : > { %v4334_v28 = vrot.slane %v4327_v9, %v11530_v41  ;;  %v4342_v38 = vrot.slane %v9883_v15, %v11530_v41  ;;  %v4350_v17 = vrot.slane %v4343_v3, %v11530_v41  ;;  %v4358_v27 = vrot.slane %v9884_v51, %v11530_v41  ;;  %v10438_v20 = vpop.f32.mrb[63].mxu0  ;;  %v10444_v62 = vpop.f32.mrb[71].mxu1 }
 0x67b   : > { %v4147_v30 = vrot.slane %v4139_v7, %v11530_v41  ;;  %v4154_v26 = vrot.slane %v4140_v21, %v11530_v41  ;;  %v4215_v32 = vrot.slane %v4207_v1, %v11530_v41  ;;  %v4222_v50 = vrot.slane %v4208_v29, %v11530_v41 }
 0x67c   : > { %v4360_v16 = vcombine.high %v4334_v28, %v4342_v38  ;;  %v4376_v55 = vcombine.high %v4350_v17, %v4358_v27  ;;  %v4359_v49 = vcombine.low %v4334_v28, %v4342_v38  ;;  %v4375_v4 = vcombine.low %v4350_v17, %v4358_v27 }
 0x67d   : > { %v4155_v2 = vcombine.low %v4131_v19, %v4147_v30  ;;  %v4156_v31 = vcombine.high %v4131_v19, %v4147_v30  ;;  %v4171_v35 = vcombine.low %v4138_v46, %v4154_v26  ;;  %v4172_v42 = vcombine.high %v4138_v46, %v4154_v26 }
 0x67e   : > { %v4223_v14 = vcombine.low %v4199_v53, %v4215_v32  ;;  %v4224_v63 = vcombine.high %v4199_v53, %v4215_v32  ;;  %v4239_v18 = vcombine.low %v4206_v45, %v4222_v50  ;;  %v4240_v59 = vcombine.high %v4206_v45, %v4222_v50 }
 0x67f   : > { %v4163_v61 = vrot.slane %v4155_v2, %v11544_v60  ;;  %v4170_v44 = vrot.slane %v4156_v31, %v11544_v60  ;;  %v4179_v40 = vrot.slane %v4171_v35, %v11544_v60  ;;  %v4186_v25 = vrot.slane %v4172_v42, %v11544_v60  ;;  %v4049_v47 = vpop.f32.mrb[64].mxu0 }
 0x680   : > { %v4231_v58 = vrot.slane %v4223_v14, %v11544_v60  ;;  %v4238_v34 = vrot.slane %v4224_v63, %v11544_v60  ;;  %v4247_v10 = vrot.slane %v4239_v18, %v11544_v60  ;;  %v4254_v24 = vrot.slane %v4240_v59, %v11544_v60  ;;  %v10449_v56 = vpop.f32.mrb[65].mxu0 }
 0x681   : > { %v4395_v36 = vcombine.low %v4163_v61, %v4170_v44  ;;  %v9885_v39 = vcombine.high %v4163_v61, %v4170_v44  ;;  %v4411_v37 = vcombine.low %v4179_v40, %v4186_v25  ;;  %v9886_v0 = vcombine.high %v4179_v40, %v4186_v25  ;;  %v4052_v19 = vpop.f32.mrb[66].mxu0 }
 0x682   : > { %v4463_v46 = vcombine.low %v4231_v58, %v4238_v34  ;;  %v9887_v43 = vcombine.high %v4231_v58, %v4238_v34  ;;  %v4479_v8 = vcombine.low %v4247_v10, %v4254_v24  ;;  %v9888_v23 = vcombine.high %v4247_v10, %v4254_v24  ;;  %v10450_v6 = vpop.f32.mrb[67].mxu0 }
 0x683   : > { %v4402_v53 = vrot.slane %v4395_v36, %v11530_v41  ;;  %v4410_v45 = vrot.slane %v9885_v39, %v11530_v41  ;;  %v4418_v5 = vrot.slane %v4411_v37, %v11530_v41  ;;  %v4426_v52 = vrot.slane %v9886_v0, %v11530_v41 }
 0x684   : > { %v12597_v9 = vrot.slane %v4463_v46, %v11530_v41  ;;  %v4478_v15 = vrot.slane %v9887_v43, %v11530_v41  ;;  %v12601_v3 = vrot.slane %v4479_v8, %v11530_v41  ;;  %v12604_v51 = vrot.slane %v9888_v23, %v11530_v41 }
 0x685   : > { %v4275_v13 = vcombine.low %v12546_v11, %v4049_v47  ;;  %v4276_v57 = vcombine.high %v12546_v11, %v4049_v47  ;;  %v4374_v7 = vrot.slane %v4360_v16, %v11544_v60  ;;  %v4390_v21 = vrot.slane %v4376_v55, %v11544_v60 }
 0x686   : > { %v4428_v1 = vcombine.high %v4402_v53, %v4410_v45  ;;  %v4444_v29 = vcombine.high %v4418_v5, %v4426_v52  ;;  %v12611_v22 = vrot.slane %v4359_v49, %v11544_v60  ;;  %v12614_v12 = vrot.slane %v4375_v4, %v11544_v60 }
 0x687   : > { %v4283_v28 = vrot.slane %v4275_v13, %v11530_v41  ;;  %v4290_v38 = vrot.slane %v4276_v57, %v11530_v41  ;;  %v4393_v17 = vcombine.low %v4374_v7, %v4390_v21  ;;  %v4427_v27 = vcombine.low %v4402_v53, %v4410_v45 }
 0x688   : > { %v4442_v11 = vrot.slane %v4428_v1, %v11544_v60  ;;  %v4458_v20 = vrot.slane %v4444_v29, %v11544_v60  ;;  %v4392_v62 = vcombine.high %v12611_v22, %v12614_v12  ;;  %v4443_v30 = vcombine.low %v4418_v5, %v4426_v52  ;;  %v10861_v52 = vld [vmem:[%s14140_s1 + $0x30] sm:$0xff]  }
 0x689   : > { %v4291_v26 = vcombine.low %v12567_v33, %v4283_v28  ;;  %v4292_v32 = vcombine.high %v12567_v33, %v4283_v28  ;;  %v4307_v50 = vcombine.low %v12570_v54, %v4290_v38  ;;  %v4308_v16 = vcombine.high %v12570_v54, %v4290_v38  ;;  %10451 = vmatprep.subr.bf16.mxu1 %v10861_v52 }
 0x68a   : > { %v4461_v55 = vcombine.low %v4442_v11, %v4458_v20  ;;  %v12627_v49 = vrot.slane %v4427_v27, %v11544_v60  ;;  %v12630_v4 = vrot.slane %v4443_v30, %v11544_v60  ;;  %v4391_v2 = vcombine.low %v12611_v22, %v12614_v12  ;;  %10452 = vmatpush3.bf16.msra.mxu1 %v10861_v52  ;;  %v11045_v52 = vld [vmem:[%s11375_s15 + $0x8] sm:$0xff] }
 0x68b   : > { %v4299_v31 = vrot.slane %v4291_v26, %v11544_v60  ;;  %v4306_v35 = vrot.slane %v4292_v32, %v11544_v60  ;;  %v4315_v33 = vrot.slane %v4307_v50, %v11544_v60  ;;  %v4322_v42 = vrot.slane %v4308_v16, %v11544_v60 }
 0x68c   : > { %v10800_v14 = vpack.i.bf16 %v4461_v55, %v4393_v17  ;;  %v4459_v54 = vcombine.low %v12627_v49, %v12630_v4  ;;  %v4460_v63 = vcombine.high %v12627_v49, %v12630_v4  ;;  %v4394_v18 = vcombine.high %v4374_v7, %v4390_v21  ;;  %v10862_v17 = vld [vmem:[%s14140_s1 + $0x38] sm:$0xff]  }
 0x68d   : > { %v4531_v59 = vcombine.low %v4299_v31, %v4306_v35  ;;  %v9889_v61 = vcombine.high %v4299_v31, %v4306_v35  ;;  %v4547_v44 = vcombine.low %v4315_v33, %v4322_v42  ;;  %v9890_v40 = vcombine.high %v4315_v33, %v4322_v42  ;;  %10453 = vmatprep.subr.bf16.mxu1 %v10862_v17 }
 0x68e   : > { %10801 = vrot.lane.b32.xlu1 %v10800_v14, %s11190_s29  ;;  %v10795_v25 = vpack.i.bf16 %v4460_v63, %v4392_v62  ;;  %v4462_v47 = vcombine.high %v4442_v11, %v4458_v20  ;;  %v4495_v58 = vcombine.low %v12597_v9, %v4478_v15  ;;  %v4511_v34 = vcombine.low %v12601_v3, %v12604_v51 }
 0x68f   : > { %v4538_v10 = vrot.slane %v4531_v59, %v11530_v41  ;;  %v4546_v24 = vrot.slane %v9889_v61, %v11530_v41  ;;  %v4554_v56 = vrot.slane %v4547_v44, %v11530_v41  ;;  %v4562_v36 = vrot.slane %v9890_v40, %v11530_v41  ;;  %10454 = vmatpush3.bf16.msra.mxu1 %v10862_v17 }
 0x690   : > { %10796 = vrot.lane.b32.xlu0 %v10795_v25, %s11191_s19  ;;  %v10805_v39 = vpack.i.bf16 %v4462_v47, %v4394_v18  ;;  %v12652_v37 = vrot.slane %v4495_v58, %v11544_v60  ;;  %v12655_v0 = vrot.slane %v4511_v34, %v11544_v60  ;;  %v4496_v19 = vcombine.high %v12597_v9, %v4478_v15 }
 0x691   : > { %v4563_v46 = vcombine.low %v4538_v10, %v4546_v24  ;;  %v4579_v43 = vcombine.low %v4554_v56, %v4562_v36  ;;  %v4512_v8 = vcombine.high %v12601_v3, %v12604_v51  ;;  %v4564_v23 = vcombine.high %v4538_v10, %v4546_v24 }
 0x692   : > { %v4528_v6 = vcombine.high %v12652_v37, %v12655_v0  ;;  %v4527_v53 = vcombine.low %v12652_v37, %v12655_v0  ;;  %v4510_v45 = vrot.slane %v4496_v19, %v11544_v60  ;;  %v4580_v5 = vcombine.high %v4554_v56, %v4562_v36  ;;  %v9895_v36 = vld [vmem:[%s14143_s4 + $0x3] ss:$0 sm:$0xff] }
 0x693   : > { %v4571_v9 = vrot.slane %v4563_v46, %v11544_v60  ;;  %v4587_v15 = vrot.slane %v4579_v43, %v11544_v60  ;;  %v4526_v3 = vrot.slane %v4512_v8, %v11544_v60  ;;  %v4578_v51 = vrot.slane %v4564_v23, %v11544_v60  ;;  %v11043_v8 = vld [vmem:[%s11375_s15] sm:$0xff] }
 0x694   : > { %10806 = vrot.lane.b32.xlu0 %v10805_v39, %s11192_s20  ;;  %v4594_v13 = vrot.slane %v4580_v5, %v11544_v60 }
 0x695   : > { %v4595_v57 = vcombine.low %v4571_v9, %v4587_v15  ;;  %v4596_v7 = vcombine.high %v4571_v9, %v4587_v15  ;;  %v4529_v21 = vcombine.low %v4510_v45, %v4526_v3  ;;  %v4530_v1 = vcombine.high %v4510_v45, %v4526_v3 }
 0x696   : > { %v4597_v29 = vcombine.low %v4578_v51, %v4594_v13  ;;  %v4598_v28 = vcombine.high %v4578_v51, %v4594_v13  ;;  %v11046_v51 = vld [vmem:[%s11375_s15 + $0x18] sm:$0xff] }
 0x697   : > { %v10810_v38 = vpack.i.bf16 %v4596_v7, %v4528_v6 }
 0x698   : > { %v10815_v27 = vpack.i.bf16 %v4597_v29, %v4529_v21  ;;  %v10820_v11 = vpack.i.bf16 %v4598_v28, %v4530_v1 }
 0x699   : > { %10811 = vrot.lane.b32.xlu1 %v10810_v38, %s11191_s19 }
 0x69d   : > { %10816 = vrot.lane.b32.xlu1 %v10815_v27, %s11190_s29 }
 0x6a1   : > { %10821 = vrot.lane.b32.xlu1 %v10820_v11, %s11192_s20 }
 0x700   : > { %v10802_v20 = vpop.permute.xlu1 %10801 }
 0x701   : > { %v10804_v32 = vunpack.i.h.bf16 %v10802_v20  ;;  %v10803_v50 = vunpack.i.l.bf16 %v10802_v20 }
 0x702   : > { %v10797_v62 = vpop.permute.xlu0 %10796 }
 0x703   : > { %v10799_v30 = vunpack.i.h.bf16 %v10797_v62  ;;  %v10798_v26 = vunpack.i.l.bf16 %v10797_v62 }
 0x705   : > { %v4648_v16 = vsel %vm2373_vm2, %v4459_v54, %v10799_v30  ;;  %v4647_v55 = vsel %vm2373_vm2, %v4391_v2, %v10798_v26 }
 0x706   : > { %v10807_v31 = vpop.permute.xlu0 %10806  ;;  %v4652_v42 = vsel %vm4651_vm4, %v4647_v55, %v10803_v50  ;;  %v4653_v14 = vsel %vm4651_vm4, %v4648_v16, %v10804_v32 }
 0x707   : > { %v10809_v35 = vunpack.i.h.bf16 %v10807_v31  ;;  %v10808_v33 = vunpack.i.l.bf16 %v10807_v31 }
 0x709   : > { %v4657_v63 = vsel %vm4656_vm5, %v4652_v42, %v10808_v33  ;;  %v4658_v49 = vsel %vm4656_vm5, %v4653_v14, %v10809_v35  ;;  %v10863_v14 = vld [vmem:[#allocation5] sm:$0xff]  }
 0x70a   : > { %v4661_v4 = vpack.c.bf16 %v4658_v49, %v4657_v63  ;;  %v10864_v63 = vld [vmem:[#allocation5 + $0x8] sm:$0xff]   ;;  %10459 = vmatprep.subr.bf16.mxu0 %v10863_v14  ;;  %v10865_v49 = vld [vmem:[%s14142_s3] sm:$0xff]  }
 0x70b   : > { %v10812_v54 = vpop.permute.xlu1 %10811  ;;  %10460 = vmatpush3.bf16.msra.mxu0 %v10863_v14  ;;  %10467 = vmatprep.subr.bf16.mxu1 %v10865_v49 }
 0x70c   : > { %10455 = vmatprep.mubr.msk.bf16.mxu1 %vm302_vm0, %v4661_v4  ;;  %v10814_v12 = vunpack.i.h.bf16 %v10812_v54  ;;  %v10813_v2 = vunpack.i.l.bf16 %v10812_v54  ;;  %10461 = vmatprep.subr.bf16.mxu0 %v10864_v63  ;;  %v10866_v4 = vld [vmem:[%s14142_s3 + $0x8] sm:$0xff]  }
 0x70e   : > { %v4650_v44 = vsel %vm2373_vm2, %v4595_v57, %v10814_v12  ;;  %v4649_v40 = vsel %vm2373_vm2, %v4527_v53, %v10813_v2  ;;  %v11044_v53 = vld [vmem:[%s11375_s15 + $0x10] sm:$0xff]  ;;  %s11105_s15 = scalar_lea.vmem %s14084_s8, 512 }
 0x70f   : > { %v10817_v22 = vpop.permute.xlu1 %10816  ;;  %10462 = vmatpush3.bf16.msra.mxu0 %v10864_v63  ;;  %p11106_p4 = scmp.ne.s32.totalorder %s14084_s8, %s11105_s15 }
 0x710   : > { %v10819_v18 = vunpack.i.h.bf16 %v10817_v22  ;;  %v10818_v59 = vunpack.i.l.bf16 %v10817_v22 }
 0x711   : > { %p11107_p6 = pnand %p11106_p4, %p11321_p12 }
 0x712   : > { %v4654_v58 = vsel %vm4651_vm4, %v4649_v40, %v10818_v59  ;;  %v4655_v34 = vsel %vm4651_vm4, %v4650_v44, %v10819_v18 }
 0x713   : > { %v10822_v61 = vpop.permute.xlu1 %10821  ;;  %p11108_p8 = pneg %p11107_p6 }
 0x714   : > { %v10824_v25 = vunpack.i.h.bf16 %v10822_v61  ;;  %v10823_v47 = vunpack.i.l.bf16 %v10822_v61 }
 0x716   : > { %v4659_v10 = vsel %vm4656_vm5, %v4654_v58, %v10823_v47  ;;  %v4660_v24 = vsel %vm4656_vm5, %v4655_v34, %v10824_v25 }
 0x717   : > { %v4662_v56 = vpack.c.bf16 %v4660_v24, %v4659_v10  ;;  %v9900_v10 = vld [vmem:[%s14143_s4 + $0x6] ss:$0 sm:$0xff] }
 0x719   : > { %10456 = vmatmul.mubr.msk.bf16.vlgmr.msra.gmra.mrb[72].mxu1 %vm302_vm0, %v4662_v56 }
 0x71a   : > { %10468 = vmatpush3.bf16.msra.mxu1 %v10865_v49 }
 0x71b   : > { %10469 = vmatprep.subr.bf16.mxu1 %v10866_v4 }
 0x71e   : > { %10470 = vmatpush3.bf16.msra.mxu1 %v10866_v4 }
 0x7ec   : > { %v10457_v39 = vpop.f32.mrb[72].mxu1 }
 0x7ed   : > { %v4724_v37 = vpop.f32.mrb[73].mxu1  ;;  %v4733_v0 = vadd.f32 %v10457_v39, %v9895_v36 }
 0x7ee   : > { %v4725_v19 = vadd.f32 %v9895_v36, %v4724_v37  ;;  %v10458_v46 = vpop.f32.mrb[74].mxu1 }
 0x7ef   : > { %v4727_v43 = vpop.f32.mrb[75].mxu1  ;;  %v12707_v45 = vadd.f32 %v11044_v53, %v4733_v0  ;;  %v4736_v5 = vadd.f32 %v10458_v46, %v9895_v36  ;;  %v9901_v0 = vld [vmem:[%s14143_s4 + $0x7] ss:$0 sm:$0xff] }
 0x7f0   : > { %v12704_v23 = vadd.f32 %v11043_v8, %v4725_v19  ;;  %v4728_v6 = vadd.f32 %v9895_v36, %v4727_v43 }
 0x7f1   : > { %v12717_v13 = vadd.f32 %v11046_v51, %v4736_v5  ;;  %v4749_v57 = vsel %vm302_vm0, %v12707_v45, 0.0 }
 0x7f2   : > { %v12710_v9 = vadd.f32 %v11045_v52, %v4728_v6  ;;  %v4743_v15 = vsel %vm302_vm0, %v12704_v23, 0.0 }
 0x7f3   : > { %4744 = vadd.xlane.f32.xlu0 %v4743_v15  ;;  %v4752_v7 = vsel %vm302_vm0, %v12717_v13, 0.0 }
 0x7f4   : > { %v4746_v3 = vsel %vm302_vm0, %v12710_v9, 0.0 }
 0x7f5   : > { %4747 = vadd.xlane.f32.xlu1 %v4746_v3 }
 0x7f7   : > { %4750 = vadd.xlane.f32.xlu0 %v4749_v57 }
 0x7fb   : > { %4753 = vadd.xlane.f32.xlu0 %v4752_v7  ;;  %v10867_v7 = vld [vmem:[%s14142_s3 + $0x10] sm:$0xff]  }
 0x7fc   : > { %10471 = vmatprep.subr.bf16.mxu1 %v10867_v7 }
 0x7fd   : > { %10472 = vmatpush3.bf16.msra.mxu1 %v10867_v7 }
 0x880   : > { %v4745_v21 = vpop.xlane.xlu0 %4744 }
 0x881   : > { %v4755_v1 = vmul.f32 0.03125, %v4745_v21  ;;  %v10868_v21 = vld [vmem:[%s14142_s3 + $0x18] sm:$0xff]  }
 0x882   : > { %v4748_v29 = vpop.xlane.xlu1 %4747  ;;  %10473 = vmatprep.subr.bf16.mxu1 %v10868_v21 }
 0x883   : > { %v4759_v28 = vsub.f32 %v12704_v23, %v4755_v1  ;;  %v4756_v38 = vmul.f32 0.03125, %v4748_v29  ;;  %10474 = vmatpush3.bf16.msra.mxu1 %v10868_v21  ;;  %v9902_v1 = vld [vmem:[%s14144_s5] ss:$0 sm:$0xff] }
 0x884   : > { %v4751_v17 = vpop.xlane.xlu0 %4750 }
 0x885   : > { %v4760_v27 = vsub.f32 %v12710_v9, %v4756_v38  ;;  %v4757_v11 = vmul.f32 0.03125, %v4751_v17  ;;  %v4763_v20 = vmul.f32 %v4759_v28, %v4759_v28 }
 0x887   : > { %v4761_v62 = vsub.f32 %v12707_v45, %v4757_v11  ;;  %v4767_v30 = vsel %vm302_vm0, %v4763_v20, 0.0  ;;  %v4764_v26 = vmul.f32 %v4760_v27, %v4760_v27 }
 0x888   : > { %4768 = vadd.xlane.f32.xlu0 %v4767_v30  ;;  %v4754_v32 = vpop.xlane.xlu0 %4753 }
 0x889   : > { %v4758_v50 = vmul.f32 0.03125, %v4754_v32  ;;  %v4770_v16 = vsel %vm302_vm0, %v4764_v26, 0.0  ;;  %v4765_v55 = vmul.f32 %v4761_v62, %v4761_v62 }
 0x88a   : > { %4771 = vadd.xlane.f32.xlu1 %v4770_v16 }
 0x88b   : > { %v4762_v31 = vsub.f32 %v12717_v13, %v4758_v50  ;;  %v4773_v35 = vsel %vm302_vm0, %v4765_v55, 0.0 }
 0x88c   : > { %4774 = vadd.xlane.f32.xlu0 %v4773_v35 }
 0x88d   : > { %v4766_v33 = vmul.f32 %v4762_v31, %v4762_v31 }
 0x88f   : > { %v4776_v42 = vsel %vm302_vm0, %v4766_v33, 0.0 }
 0x890   : > { %4777 = vadd.xlane.f32.xlu1 %v4776_v42 }
 0x915   : > { %v4769_v54 = vpop.xlane.xlu0 %4768 }
 0x916   : > { %v4779_v22 = vmul.f32 0.03125, %v4769_v54 }
 0x917   : > { %v4772_v12 = vpop.xlane.xlu1 %4771 }
 0x918   : > { %v4783_v2 = vadd.f32 1e-05, %v4779_v22  ;;  %v4780_v18 = vmul.f32 0.03125, %v4772_v12 }
 0x919   : > { %v4775_v59 = vpop.xlane.xlu0 %4774 }
 0x91a   : > { %10955 = vrsqrt.f32 %v4783_v2  ;;  %v4784_v61 = vadd.f32 1e-05, %v4780_v18  ;;  %v4781_v44 = vmul.f32 0.03125, %v4775_v59 }
 0x91c   : > { %10957 = vrsqrt.f32 %v4784_v61  ;;  %v4785_v40 = vadd.f32 1e-05, %v4781_v44 }
 0x91d   : > { %v4778_v25 = vpop.xlane.xlu1 %4777 }
 0x91e   : > { %10959 = vrsqrt.f32 %v4785_v40  ;;  %v4782_v47 = vmul.f32 0.03125, %v4778_v25 }
 0x920   : > { %v4786_v58 = vadd.f32 1e-05, %v4782_v47 }
 0x922   : > { %10961 = vrsqrt.f32 %v4786_v58 }
 0x924   : > { %v10956_v34 = vpop.eup %10955 }
 0x925   : > { %v4791_v24 = vmul.f32 %v10956_v34, %v4759_v28 }
 0x926   : > { %v10958_v56 = vpop.eup %10957 }
 0x927   : > { %v4792_v36 = vmul.f32 %v10958_v56, %v4760_v27  ;;  %v4799_v39 = vmul.f32 %v9900_v10, %v4791_v24 }
 0x928   : > { %v10960_v37 = vpop.eup %10959 }
 0x929   : > { %v4793_v19 = vmul.f32 %v10960_v37, %v4761_v62  ;;  %v4800_v46 = vmul.f32 %v9900_v10, %v4792_v36  ;;  %v4807_v43 = vadd.f32 %v9901_v0, %v4799_v39 }
 0x92b   : > { %v4808_v8 = vadd.f32 %v9901_v0, %v4800_v46  ;;  %v4801_v53 = vmul.f32 %v9900_v10, %v4793_v19 }
 0x92c   : > { %v10962_v6 = vpop.eup %10961 }
 0x92d   : > { %v4794_v5 = vmul.f32 %v10962_v6, %v4762_v31  ;;  %v4811_v52 = vpack.c.bf16 %v4808_v8, %v4807_v43  ;;  %v4809_v3 = vadd.f32 %v9901_v0, %v4801_v53  ;;  %v9907_v31 = vld [vmem:[%s14143_s4 + $0x8] ss:$0 sm:$0xff]  ;;  %v10869_v53 = vld [vmem:[%s14140_s1 + $0x40] sm:$0xff]  }
 0x92e   : > { %10479 = vmatprep.subr.bf16.mxu0 %v10869_v53 }
 0x92f   : > { %v4802_v15 = vmul.f32 %v9900_v10, %v4794_v5  ;;  %10463 = vmatprep.mubr.msk.bf16.mxu0 %vm302_vm0, %v4811_v52  ;;  %v10870_v5 = vld [vmem:[%s14140_s1 + $0x60] sm:$0xff]   ;;  %v10871_v52 = vld [vmem:[%s14140_s1 + $0x48] sm:$0xff]  }
 0x930   : > { %10495 = vmatprep.subr.bf16.mxu1 %v10870_v5 }
 0x931   : > { %v4810_v51 = vadd.f32 %v9901_v0, %v4802_v15  ;;  %v10872_v15 = vld [vmem:[%s14140_s1 + $0x68] sm:$0xff]  }
 0x933   : > { %v4812_v57 = vpack.c.bf16 %v4810_v51, %v4809_v3  ;;  %v10873_v3 = vld [vmem:[%s14140_s1 + $0x50] sm:$0xff]  }
 0x935   : > { %10464 = vmatmul.mubr.msk.bf16.vlgmr.msra.gmra.mrb[68].mxu0 %vm302_vm0, %v4812_v57 }
 0x936   : > { %10480 = vmatpush3.bf16.msra.mxu0 %v10869_v53 }
 0x937   : > { %10481 = vmatprep.subr.bf16.mxu0 %v10871_v52 }
 0x93a   : > { %10482 = vmatpush3.bf16.msra.mxu0 %v10871_v52  ;;  %v9948_v52 = vld [vmem:[%s14143_s4 + $0x12] ss:$0 sm:$0xff] }
 0x93b   : > { %10487 = vmatprep.subr.bf16.mxu0 %v10873_v3 }
 0xa08   : > { %v10465_v29 = vpop.f32.mrb[68].mxu0 }
 0xa09   : > { %v4884_v28 = vadd.f32 %v10465_v29, %v9902_v1  ;;  %v4875_v38 = vpop.f32.mrb[69].mxu0 }
 0xa0a   : > { %v4876_v17 = vadd.f32 %v9902_v1, %v4875_v38  ;;  %v10466_v27 = vpop.f32.mrb[70].mxu0 }
 0xa0b   : > { %v4887_v11 = vadd.f32 %v10466_v27, %v9902_v1  ;;  %v4878_v20 = vpop.f32.mrb[71].mxu0  ;;  %v4892_v30 = vmax.f32 %v4884_v28, 0.0 }
 0xa0c   : > { %v4879_v62 = vadd.f32 %v9902_v1, %v4878_v20  ;;  %v4890_v32 = vmax.f32 %v4876_v17, 0.0 }
 0xa0d   : > { %v4893_v26 = vmax.f32 %v4887_v11, 0.0 }
 0xa0e   : > { %v4891_v50 = vmax.f32 %v4879_v62, 0.0 }
 0xa0f   : > { %v4895_v16 = vpack.c.bf16 %v4893_v26, %v4892_v30  ;;  %v9924_v30 = vld [vmem:[%s14143_s4 + $0x14] ss:$0 sm:$0xff] }
 0xa10   : > { %v4894_v55 = vpack.c.bf16 %v4891_v50, %v4890_v32 }
 0xa12   : > { %10475 = vmatprep.mubr.msk.bf16.mxu1 %vm4932_vm6, %v4894_v55 }
 0xa13   : > { %10476 = vmatmul.mubr.msk.bf16.vlgmr.msra.gmra.mrb[76].mxu1 %vm4932_vm6, %v4895_v16 }
 0xa14   : > { %10496 = vmatpush3.bf16.msra.mxu1 %v10870_v5 }
 0xa15   : > { %10497 = vmatprep.subr.bf16.mxu1 %v10872_v15 }
 0xa18   : > { %10498 = vmatpush3.bf16.msra.mxu1 %v10872_v15 }
 0xa19   : > { %10509 = vmatprep.subr.bf16.mxu1 %v14192_v48 }
 0xae6   : > { %v10477_v35 = vpop.f32.mrb[76].mxu1 }
 0xae7   : > { %v4973_v33 = vpop.f32.mrb[77].mxu1  ;;  %v4982_v42 = vadd.f32 %v10477_v35, %v9907_v31 }
 0xae8   : > { %v4974_v14 = vadd.f32 %v9907_v31, %v4973_v33  ;;  %v10478_v63 = vpop.f32.mrb[78].mxu1 }
 0xae9   : > { %v4976_v49 = vpop.f32.mrb[79].mxu1  ;;  %v4985_v54 = vadd.f32 %v10478_v63, %v9907_v31  ;;  %v12763_v12 = vadd.f32 %v4982_v42, %v12707_v45 }
 0xaea   : > { %v12760_v4 = vadd.f32 %v4974_v14, %v12704_v23  ;;  %v4977_v22 = vadd.f32 %v9907_v31, %v4976_v49  ;;  %v9925_v31 = vld [vmem:[%s14143_s4 + $0x15] ss:$0 sm:$0xff] }
 0xaeb   : > { %14207 = vst [vmem:[#allocation14_spill] sm:$0xff] %v12763_v12  ;;  %v12771_v59 = vadd.f32 %v4985_v54, %v12717_v13  ;;  %v5010_v23 = vsel %vm302_vm0, %v12763_v12, 0.0 }
 0xaec   : > { %14206 = vst [vmem:[#allocation13_spill] sm:$0xff] %v12760_v4  ;;  %v12766_v2 = vadd.f32 %v4977_v22, %v12710_v9  ;;  %v5004_v18 = vsel %vm302_vm0, %v12760_v4, 0.0 }
 0xaed   : > { %5005 = vadd.xlane.f32.xlu0 %v5004_v18  ;;  %14209 = vst [vmem:[#allocation16_spill] sm:$0xff] %v12771_v59  ;;  %v5013_v45 = vsel %vm302_vm0, %v12771_v59, 0.0 }
 0xaee   : > { %14208 = vst [vmem:[#allocation15_spill] sm:$0xff] %v12766_v2  ;;  %v5007_v61 = vsel %vm302_vm0, %v12766_v2, 0.0 }
 0xaef   : > { %5008 = vadd.xlane.f32.xlu1 %v5007_v61 }
 0xaf1   : > { %5011 = vadd.xlane.f32.xlu0 %v5010_v23 }
 0xaf3   : > { %5014 = vadd.xlane.f32.xlu1 %v5013_v45 }
 0xb7a   : > { %v5006_v9 = vpop.xlane.xlu0 %5005 }
 0xb7b   : > { %v5016_v44 = vmul.f32 0.03125, %v5006_v9  ;;  %v10874_v9 = vld [vmem:[%s14140_s1 + $0x58] sm:$0xff]  }
 0xb7c   : > { %v5009_v40 = vpop.xlane.xlu1 %5008 }
 0xb7d   : > { %v5020_v25 = vsub.f32 %v12760_v4, %v5016_v44  ;;  %v5017_v47 = vmul.f32 0.03125, %v5009_v40  ;;  %v9930_v44 = vld [vmem:[%s14143_s4 + $0x10] ss:$0 sm:$0xff] }
 0xb7e   : > { %v5012_v13 = vpop.xlane.xlu0 %5011 }
 0xb7f   : > { %v5021_v58 = vsub.f32 %v12766_v2, %v5017_v47  ;;  %v5018_v34 = vmul.f32 0.03125, %v5012_v13  ;;  %v5024_v10 = vmul.f32 %v5020_v25, %v5020_v25 }
 0xb80   : > { %v5015_v24 = vpop.xlane.xlu1 %5014 }
 0xb81   : > { %v5022_v56 = vsub.f32 %v12763_v12, %v5018_v34  ;;  %v5019_v36 = vmul.f32 0.03125, %v5015_v24  ;;  %v5028_v39 = vsel %vm302_vm0, %v5024_v10, 0.0  ;;  %v5025_v37 = vmul.f32 %v5021_v58, %v5021_v58 }
 0xb82   : > { %5029 = vadd.xlane.f32.xlu0 %v5028_v39 }
 0xb83   : > { %v5023_v0 = vsub.f32 %v12771_v59, %v5019_v36  ;;  %v5031_v19 = vsel %vm302_vm0, %v5025_v37, 0.0  ;;  %v5026_v46 = vmul.f32 %v5022_v56, %v5022_v56 }
 0xb84   : > { %5032 = vadd.xlane.f32.xlu1 %v5031_v19  ;;  %v9939_v19 = vld [vmem:[%s14143_s4 + $0x11] ss:$0 sm:$0xff] }
 0xb85   : > { %v5034_v43 = vsel %vm302_vm0, %v5026_v46, 0.0  ;;  %v5027_v8 = vmul.f32 %v5023_v0, %v5023_v0 }
 0xb86   : > { %5035 = vadd.xlane.f32.xlu0 %v5034_v43 }
 0xb87   : > { %v5037_v6 = vsel %vm302_vm0, %v5027_v8, 0.0 }
 0xb88   : > { %5038 = vadd.xlane.f32.xlu1 %v5037_v6 }
 0xc0f   : > { %v5030_v51 = vpop.xlane.xlu0 %5029 }
 0xc10   : > { %v5040_v57 = vmul.f32 0.03125, %v5030_v51 }
 0xc11   : > { %v5033_v7 = vpop.xlane.xlu1 %5032 }
 0xc12   : > { %v5044_v21 = vadd.f32 1e-05, %v5040_v57  ;;  %v5041_v1 = vmul.f32 0.03125, %v5033_v7 }
 0xc13   : > { %v5036_v29 = vpop.xlane.xlu0 %5035 }
 0xc14   : > { %10963 = vrsqrt.f32 %v5044_v21  ;;  %v5045_v28 = vadd.f32 1e-05, %v5041_v1  ;;  %v5042_v38 = vmul.f32 0.03125, %v5036_v29 }
 0xc15   : > { %v5039_v17 = vpop.xlane.xlu1 %5038 }
 0xc16   : > { %10965 = vrsqrt.f32 %v5045_v28  ;;  %v5046_v27 = vadd.f32 1e-05, %v5042_v38  ;;  %v5043_v11 = vmul.f32 0.03125, %v5039_v17 }
 0xc18   : > { %10967 = vrsqrt.f32 %v5046_v27  ;;  %v5047_v20 = vadd.f32 1e-05, %v5043_v11 }
 0xc1a   : > { %10969 = vrsqrt.f32 %v5047_v20 }
 0xc1e   : > { %v10964_v62 = vpop.eup %10963 }
 0xc1f   : > { %v5052_v26 = vmul.f32 %v10964_v62, %v5020_v25 }
 0xc20   : > { %v10966_v32 = vpop.eup %10965 }
 0xc21   : > { %v5053_v50 = vmul.f32 %v10966_v32, %v5021_v58  ;;  %v5060_v16 = vmul.f32 %v9924_v30, %v5052_v26 }
 0xc22   : > { %v10968_v55 = vpop.eup %10967 }
 0xc23   : > { %v5054_v35 = vmul.f32 %v10968_v55, %v5022_v56  ;;  %v5061_v33 = vmul.f32 %v9924_v30, %v5053_v50  ;;  %v5068_v49 = vadd.f32 %v9925_v31, %v5060_v16 }
 0xc24   : > { %v10970_v42 = vpop.eup %10969 }
 0xc25   : > { %v5062_v14 = vmul.f32 %v9924_v30, %v5054_v35  ;;  %v5055_v63 = vmul.f32 %v10970_v42, %v5023_v0  ;;  %v5069_v54 = vadd.f32 %v9925_v31, %v5061_v33 }
 0xc27   : > { %v5063_v22 = vmul.f32 %v9924_v30, %v5055_v63  ;;  %v5072_v18 = vpack.c.bf16 %v5069_v54, %v5068_v49  ;;  %v5070_v61 = vadd.f32 %v9925_v31, %v5062_v14 }
 0xc29   : > { %10483 = vmatprep.mubr.msk.bf16.mxu0 %vm302_vm0, %v5072_v18  ;;  %10499 = vmatprep.mubr.msk.bf16.mxu1 %vm302_vm0, %v5072_v18  ;;  %v5071_v23 = vadd.f32 %v9925_v31, %v5063_v22 }
 0xc2b   : > { %v5073_v45 = vpack.c.bf16 %v5071_v23, %v5070_v61 }
 0xc2d   : > { %10484 = vmatmul.mubr.msk.bf16.vlgmr.msra.gmra.mrb[72].mxu0 %vm302_vm0, %v5073_v45  ;;  %10500 = vmatmul.mubr.msk.bf16.vlgmr.msra.gmra.mrb[80].mxu1 %vm302_vm0, %v5073_v45 }
 0xc2e   : > { %10488 = vmatpush3.bf16.msra.mxu0 %v10873_v3  ;;  %10491 = vmatprep.mubr.msk.bf16.mxu0 %vm302_vm0, %v5072_v18 }
 0xc2f   : > { %10489 = vmatprep.subr.bf16.mxu0 %v10874_v9  ;;  %10511 = vmatprep.mubr.msk.bf16.mxu1 %vm11187_vm1, %v14192_v48 }
 0xc32   : > { %10490 = vmatpush3.bf16.msra.mxu0 %v10874_v9 }
 0xc33   : > { %10503 = vmatprep.subr.bf16.mxu0 %v14192_v48 }
 0xc35   : > { %10492 = vmatmul.mubr.msk.bf16.vlgmr.msra.gmra.mrb[76].mxu0 %vm302_vm0, %v5073_v45 }
 0xc36   : > { %10505 = vmatprep.mubr.msk.bf16.mxu0 %vm11187_vm1, %v14192_v48 }
 0xd00   : > { %v10485_v40 = vpop.f32.mrb[72].mxu0  ;;  %v10501_v25 = vpop.f32.mrb[80].mxu1 }
 0xd01   : > { %v5135_v47 = vpop.f32.mrb[73].mxu0  ;;  %v5275_v13 = vpop.f32.mrb[81].mxu1  ;;  %v12871_v5 = vadd.f32 %v10485_v40, %v9930_v44  ;;  %v12900_v51 = vadd.f32 %v10501_v25, %v9948_v52 }
 0xd02   : > { %v12826_v58 = vadd.f32 %v9930_v44, %v5135_v47  ;;  %v10486_v34 = vpop.f32.mrb[74].mxu0  ;;  %v10502_v10 = vpop.f32.mrb[82].mxu1  ;;  %v12890_v3 = vadd.f32 %v9948_v52, %v5275_v13 }
 0xd03   : > { %v5138_v24 = vpop.f32.mrb[75].mxu0  ;;  %v5278_v56 = vpop.f32.mrb[83].mxu1  ;;  %v12886_v15 = vadd.f32 %v10486_v34, %v9930_v44  ;;  %14210 = vst [vmem:[#allocation11_spill] sm:$0xff] %v12900_v51  ;;  %v12916_v7 = vadd.f32 %v10502_v10, %v9948_v52 }
 0xd04   : > { %v12828_v36 = vadd.f32 %v9930_v44, %v5138_v24  ;;  %5294 = vrot.lane.b32.xlu0 %v12826_v58, %s11183_s18  ;;  %v12904_v57 = vadd.f32 %v9948_v52, %v5278_v56 }
 0xd05   : > { %14211 = vst [vmem:[#allocation12_spill] sm:$0xff] %v12916_v7 }
 0xd06   : > { %5296 = vrot.lane.b32.xlu1 %v12828_v36, %s11183_s18 }
 0xd08   : > { %v10493_v39 = vpop.f32.mrb[76].mxu0  ;;  %5306 = vrot.lane.b32.xlu0 %v12826_v58, %s11184_s7 }
 0xd09   : > { %v5205_v37 = vpop.f32.mrb[77].mxu0  ;;  %v12843_v43 = vadd.f32 %v10493_v39, %v9939_v19 }
 0xd0a   : > { %v10494_v0 = vpop.f32.mrb[78].mxu0  ;;  %5308 = vrot.lane.b32.xlu1 %v12828_v36, %s11184_s7  ;;  %v12847_v8 = vadd.f32 %v9939_v19, %v5205_v37 }
 0xd0b   : > { %v5208_v46 = vpop.f32.mrb[79].mxu0  ;;  %v12853_v6 = vadd.f32 %v10494_v0, %v9939_v19 }
 0xd0c   : > { %5318 = vrot.lane.b32.xlu0 %v12826_v58, %s11185_s12  ;;  %v12863_v53 = vadd.f32 %v9939_v19, %v5208_v46 }
 0xd0e   : > { %5320 = vrot.lane.b32.xlu1 %v12828_v36, %s11185_s12 }
 0xd10   : > { %5882 = vrot.lane.b32.xlu0 %v12843_v43, %s11183_s18 }
 0xd12   : > { %5890 = vrot.lane.b32.xlu1 %v12847_v8, %s11184_s7 }
 0xd14   : > { %5894 = vrot.lane.b32.xlu0 %v12843_v43, %s11184_s7 }
 0xd16   : > { %5884 = vrot.lane.b32.xlu1 %v12853_v6, %s11183_s18 }
 0xd18   : > { %5878 = vrot.lane.b32.xlu0 %v12847_v8, %s11183_s18 }
 0xd1a   : > { %5896 = vrot.lane.b32.xlu1 %v12853_v6, %s11184_s7 }
 0xd1c   : > { %5902 = vrot.lane.b32.xlu0 %v12847_v8, %s11185_s12 }
 0xd1e   : > { %5880 = vrot.lane.b32.xlu1 %v12863_v53, %s11183_s18 }
 0xd20   : > { %5906 = vrot.lane.b32.xlu0 %v12843_v43, %s11185_s12 }
 0xd22   : > { %5892 = vrot.lane.b32.xlu1 %v12863_v53, %s11184_s7 }
 0xd24   : > { %5298 = vrot.lane.b32.xlu0 %v12871_v5, %s11183_s18 }
 0xd26   : > { %5904 = vrot.lane.b32.xlu1 %v12863_v53, %s11185_s12 }
 0xd28   : > { %5310 = vrot.lane.b32.xlu0 %v12871_v5, %s11184_s7 }
 0xd2a   : > { %5908 = vrot.lane.b32.xlu1 %v12853_v6, %s11185_s12 }
 0xd2c   : > { %5322 = vrot.lane.b32.xlu0 %v12871_v5, %s11185_s12 }
 0xd2e   : > { %5300 = vrot.lane.b32.xlu1 %v12886_v15, %s11183_s18 }
 0xd30   : > { %6462 = vrot.lane.b32.xlu0 %v12890_v3, %s11183_s18 }
 0xd32   : > { %5312 = vrot.lane.b32.xlu1 %v12886_v15, %s11184_s7 }
 0xd34   : > { %6486 = vrot.lane.b32.xlu0 %v12890_v3, %s11185_s12 }
 0xd36   : > { %5324 = vrot.lane.b32.xlu1 %v12886_v15, %s11185_s12 }
 0xd38   : > { %6466 = vrot.lane.b32.xlu0 %v12900_v51, %s11183_s18 }
 0xd3a   : > { %6464 = vrot.lane.b32.xlu1 %v12904_v57, %s11183_s18 }
 0xd3e   : > { %6474 = vrot.lane.b32.xlu1 %v12890_v3, %s11184_s7 }
 0xd42   : > { %6476 = vrot.lane.b32.xlu1 %v12904_v57, %s11184_s7 }
 0xd46   : > { %6488 = vrot.lane.b32.xlu1 %v12904_v57, %s11185_s12 }
 0xd4a   : > { %6468 = vrot.lane.b32.xlu1 %v12916_v7, %s11183_s18 }
 0xd76   : > { %v5295_v21 = vpop.permute.xlu0 %5294 }
 0xd78   : > { %v5297_v1 = vpop.permute.xlu1 %5296 }
 0xd7a   : > { %v5307_v29 = vpop.permute.xlu0 %5306 }
 0xd7b   : > { %v5330_v28 = vcombine.low %v12826_v58, %v5307_v29  ;;  %v5331_v17 = vcombine.high %v12826_v58, %v5307_v29 }
 0xd7c   : > { %v5309_v38 = vpop.permute.xlu1 %5308 }
 0xd7d   : > { %v5398_v11 = vcombine.low %v12828_v36, %v5309_v38  ;;  %v5399_v20 = vcombine.high %v12828_v36, %v5309_v38  ;;  %v5338_v26 = vrot.slane %v5330_v28, %v11530_v41  ;;  %v5345_v35 = vrot.slane %v5331_v17, %v11530_v41 }
 0xd7e   : > { %v5319_v27 = vpop.permute.xlu0 %5318 }
 0xd7f   : > { %v5346_v62 = vcombine.low %v5295_v21, %v5319_v27  ;;  %v5347_v30 = vcombine.high %v5295_v21, %v5319_v27  ;;  %v5406_v42 = vrot.slane %v5398_v11, %v11530_v41  ;;  %v5413_v14 = vrot.slane %v5399_v20, %v11530_v41 }
 0xd80   : > { %v5321_v32 = vpop.permute.xlu1 %5320 }
 0xd81   : > { %v5354_v50 = vrot.slane %v5346_v62, %v11530_v41  ;;  %v5361_v16 = vrot.slane %v5347_v30, %v11530_v41  ;;  %v5414_v55 = vcombine.low %v5297_v1, %v5321_v32  ;;  %v5415_v31 = vcombine.high %v5297_v1, %v5321_v32 }
 0xd82   : > { %v12928_v33 = vpop.permute.xlu0 %5882 }
 0xd83   : > { %v5362_v63 = vcombine.low %v5338_v26, %v5354_v50  ;;  %v5363_v49 = vcombine.high %v5338_v26, %v5354_v50  ;;  %v5378_v54 = vcombine.low %v5345_v35, %v5361_v16  ;;  %v5379_v22 = vcombine.high %v5345_v35, %v5361_v16 }
 0xd84   : > { %v5422_v18 = vrot.slane %v5414_v55, %v11530_v41  ;;  %v5429_v61 = vrot.slane %v5415_v31, %v11530_v41  ;;  %v5891_v23 = vpop.permute.xlu1 %5890 }
 0xd85   : > { %v5370_v47 = vrot.slane %v5362_v63, %v11544_v60  ;;  %v5377_v13 = vrot.slane %v5363_v49, %v11544_v60  ;;  %v5386_v58 = vrot.slane %v5378_v54, %v11544_v60  ;;  %v5393_v34 = vrot.slane %v5379_v22, %v11544_v60 }
 0xd86   : > { %v5430_v45 = vcombine.low %v5406_v42, %v5422_v18  ;;  %v5431_v9 = vcombine.high %v5406_v42, %v5422_v18  ;;  %v5446_v44 = vcombine.low %v5413_v14, %v5429_v61  ;;  %v5447_v40 = vcombine.high %v5413_v14, %v5429_v61  ;;  %v5895_v25 = vpop.permute.xlu0 %5894 }
 0xd87   : > { %v5602_v0 = vcombine.low %v5370_v47, %v5377_v13  ;;  %v9953_v19 = vcombine.high %v5370_v47, %v5377_v13  ;;  %v5618_v46 = vcombine.low %v5386_v58, %v5393_v34  ;;  %v9954_v52 = vcombine.high %v5386_v58, %v5393_v34 }
 0xd88   : > { %v12938_v10 = vpop.permute.xlu1 %5884  ;;  %v5438_v24 = vrot.slane %v5430_v45, %v11544_v60  ;;  %v5445_v56 = vrot.slane %v5431_v9, %v11544_v60  ;;  %v5454_v36 = vrot.slane %v5446_v44, %v11544_v60  ;;  %v5461_v39 = vrot.slane %v5447_v40, %v11544_v60 }
 0xd89   : > { %v5914_v17 = vcombine.low %v12847_v8, %v5891_v23  ;;  %v12948_v11 = vrot.slane %v5602_v0, %v11530_v41  ;;  %v12951_v20 = vrot.slane %v9953_v19, %v11530_v41  ;;  %v12954_v62 = vrot.slane %v5618_v46, %v11530_v41 }
 0xd8a   : > { %v5879_v37 = vpop.permute.xlu0 %5878  ;;  %v5670_v1 = vcombine.low %v5438_v24, %v5445_v56  ;;  %v9955_v29 = vcombine.high %v5438_v24, %v5445_v56  ;;  %v5686_v28 = vcombine.low %v5454_v36, %v5461_v39  ;;  %v9956_v38 = vcombine.high %v5454_v36, %v5461_v39 }
 0xd8b   : > { %v12957_v30 = vrot.slane %v9954_v52, %v11530_v41  ;;  %v5915_v35 = vcombine.high %v12847_v8, %v5891_v23  ;;  %v5922_v14 = vrot.slane %v5914_v17, %v11530_v41  ;;  %v6050_v63 = vcombine.low %v12843_v43, %v5895_v25 }
 0xd8c   : > { %v12944_v21 = vpop.permute.xlu1 %5896  ;;  %v12960_v16 = vrot.slane %v5670_v1, %v11530_v41  ;;  %v12963_v55 = vrot.slane %v9955_v29, %v11530_v41  ;;  %v12966_v31 = vrot.slane %v5686_v28, %v11530_v41  ;;  %v12970_v42 = vrot.slane %v9956_v38, %v11530_v41 }
 0xd8d   : > { %v6051_v22 = vcombine.high %v12843_v43, %v5895_v25  ;;  %v5634_v8 = vcombine.low %v12948_v11, %v12951_v20  ;;  %v5650_v40 = vcombine.low %v12954_v62, %v12957_v30  ;;  %v5929_v43 = vrot.slane %v5915_v35, %v11530_v41 }
 0xd8e   : > { %v5903_v27 = vpop.permute.xlu0 %5902  ;;  %v5702_v47 = vcombine.low %v12960_v16, %v12963_v55  ;;  %v5718_v13 = vcombine.low %v12966_v31, %v12970_v42  ;;  %v6058_v24 = vrot.slane %v6050_v63, %v11530_v41 }
 0xd8f   : > { %v5930_v26 = vcombine.low %v5879_v37, %v5903_v27  ;;  %v5931_v32 = vcombine.high %v5879_v37, %v5903_v27  ;;  %v6065_v56 = vrot.slane %v6051_v22, %v11530_v41  ;;  %v6119_v37 = vcombine.high %v12853_v6, %v12944_v21 }
 0xd90   : > { %v5881_v50 = vpop.permute.xlu1 %5880  ;;  %v13001_v52 = vrot.slane %v5634_v8, %v11544_v60  ;;  %v13004_v28 = vrot.slane %v5650_v40, %v11544_v60  ;;  %v13007_v38 = vrot.slane %v5702_v47, %v11544_v60  ;;  %v13013_v27 = vrot.slane %v5718_v13, %v11544_v60 }
 0xd91   : > { %v5938_v49 = vrot.slane %v5930_v26, %v11530_v41  ;;  %v5945_v18 = vrot.slane %v5931_v32, %v11530_v41 }
 0xd92   : > { %v5907_v54 = vpop.permute.xlu0 %5906  ;;  %14212 = vst [vmem:[#allocation17_spill] sm:$0xff] %v13007_v38  ;;  %14213 = vst [vmem:[#allocation18_spill] sm:$0xff] %v13013_v27 }
 0xd93   : > { %v6066_v61 = vcombine.low %v12928_v33, %v5907_v54  ;;  %v6067_v45 = vcombine.high %v12928_v33, %v5907_v54  ;;  %v5946_v23 = vcombine.low %v5922_v14, %v5938_v49  ;;  %v5947_v9 = vcombine.high %v5922_v14, %v5938_v49 }
 0xd94   : > { %v5893_v44 = vpop.permute.xlu1 %5892  ;;  %v6118_v33 = vcombine.low %v12853_v6, %v12944_v21  ;;  %v5962_v36 = vcombine.low %v5929_v43, %v5945_v18  ;;  %v5963_v39 = vcombine.high %v5929_v43, %v5945_v18 }
 0xd95   : > { %v6074_v25 = vrot.slane %v6066_v61, %v11530_v41  ;;  %v6081_v58 = vrot.slane %v6067_v45, %v11530_v41  ;;  %v5954_v0 = vrot.slane %v5946_v23, %v11544_v60  ;;  %v5961_v19 = vrot.slane %v5947_v9, %v11544_v60 }
 0xd96   : > { %v12992_v34 = vpop.permute.xlu0 %5298  ;;  %v13010_v17 = vrot.slane %v6118_v33, %v11530_v41  ;;  %v5970_v26 = vrot.slane %v5962_v36, %v11544_v60  ;;  %v5977_v32 = vrot.slane %v5963_v39, %v11544_v60  ;;  %v5982_v35 = vcombine.low %v12863_v53, %v5893_v44 }
 0xd97   : > { %v6082_v1 = vcombine.low %v6058_v24, %v6074_v25  ;;  %v6083_v29 = vcombine.high %v6058_v24, %v6074_v25  ;;  %v6098_v6 = vcombine.low %v6065_v56, %v6081_v58  ;;  %v6099_v21 = vcombine.high %v6065_v56, %v6081_v58 }
 0xd98   : > { %v5905_v46 = vpop.permute.xlu1 %5904  ;;  %v5983_v14 = vcombine.high %v12863_v53, %v5893_v44  ;;  %v6186_v49 = vcombine.low %v5954_v0, %v5961_v19  ;;  %v9961_v54 = vcombine.high %v5954_v0, %v5961_v19  ;;  %v13020_v45 = vrot.slane %v6119_v37, %v11530_v41 }
 0xd99   : > { %v5998_v22 = vcombine.low %v5881_v50, %v5905_v46  ;;  %v5999_v18 = vcombine.high %v5881_v50, %v5905_v46  ;;  %v6090_v8 = vrot.slane %v6082_v1, %v11544_v60  ;;  %v6097_v23 = vrot.slane %v6083_v29, %v11544_v60 }
 0xd9a   : > { %v5311_v63 = vpop.permute.xlu0 %5310  ;;  %v13026_v9 = vcombine.low %v13001_v52, %v13004_v28  ;;  %v6106_v40 = vrot.slane %v6098_v6, %v11544_v60  ;;  %v6113_v53 = vrot.slane %v6099_v21, %v11544_v60  ;;  %v6202_v47 = vcombine.low %v5970_v26, %v5977_v32 }
 0xd9b   : > { %v6006_v44 = vrot.slane %v5998_v22, %v11530_v41  ;;  %v6013_v50 = vrot.slane %v5999_v18, %v11530_v41  ;;  %v5990_v43 = vrot.slane %v5982_v35, %v11530_v41  ;;  %v5997_v25 = vrot.slane %v5983_v14, %v11530_v41 }
 0xd9c   : > { %v5909_v61 = vpop.permute.xlu1 %5908  ;;  %v13036_v33 = vrot.slane %v6186_v49, %v11530_v41  ;;  %v13039_v58 = vrot.slane %v9961_v54, %v11530_v41  ;;  %v9962_v24 = vcombine.high %v5970_v26, %v5977_v32  ;;  %v6322_v1 = vcombine.low %v6090_v8, %v6097_v23 }
 0xd9d   : > { %v6134_v13 = vcombine.low %v12938_v10, %v5909_v61  ;;  %v6135_v56 = vcombine.high %v12938_v10, %v5909_v61  ;;  %v6014_v39 = vcombine.low %v5990_v43, %v6006_v44  ;;  %v6015_v37 = vcombine.high %v5990_v43, %v6006_v44 }
 0xd9e   : > { %v6030_v0 = vcombine.low %v5997_v25, %v6013_v50  ;;  %v6031_v19 = vcombine.high %v5997_v25, %v6013_v50  ;;  %v5323_v46 = vpop.permute.xlu0 %5322  ;;  %v9965_v29 = vcombine.high %v6090_v8, %v6097_v23  ;;  %v6338_v6 = vcombine.low %v6106_v40, %v6113_v53 }
 0xd9f   : > { %v9966_v21 = vcombine.high %v6106_v40, %v6113_v53  ;;  %v13045_v35 = vrot.slane %v6202_v47, %v11530_v41  ;;  %v5466_v14 = vcombine.low %v12871_v5, %v5311_v63  ;;  %v5467_v26 = vcombine.high %v12871_v5, %v5311_v63 }
 0xda0   : > { %v13042_v36 = vpop.permute.xlu1 %5300  ;;  %v6142_v10 = vrot.slane %v6134_v13, %v11530_v41  ;;  %v13051_v32 = vrot.slane %v9962_v24, %v11530_v41  ;;  %v6149_v49 = vrot.slane %v6135_v56, %v11530_v41  ;;  %v5482_v54 = vcombine.low %v12992_v34, %v5323_v46 }
 0xda1   : > { %v5483_v22 = vcombine.high %v12992_v34, %v5323_v46  ;;  %v6022_v61 = vrot.slane %v6014_v39, %v11544_v60  ;;  %v6029_v8 = vrot.slane %v6015_v37, %v11544_v60  ;;  %v6038_v23 = vrot.slane %v6030_v0, %v11544_v60 }
 0xda2   : > { %v6045_v5 = vrot.slane %v6031_v19, %v11544_v60  ;;  %v13061_v63 = vrot.slane %v6322_v1, %v11530_v41  ;;  %v13064_v40 = vrot.slane %v9965_v29, %v11530_v41  ;;  %v13067_v53 = vrot.slane %v6338_v6, %v11530_v41 }
 0xda3   : > { %v13070_v34 = vrot.slane %v9966_v21, %v11530_v41  ;;  %v5474_v44 = vrot.slane %v5466_v14, %v11530_v41  ;;  %v5481_v50 = vrot.slane %v5467_v26, %v11530_v41  ;;  %v6150_v47 = vcombine.low %v13010_v17, %v6142_v10 }
 0xda4   : > { %v5313_v18 = vpop.permute.xlu1 %5312  ;;  %v6151_v43 = vcombine.high %v13010_v17, %v6142_v10  ;;  %v6166_v25 = vcombine.low %v13020_v45, %v6149_v49  ;;  %v6167_v13 = vcombine.high %v13020_v45, %v6149_v49  ;;  %v5490_v24 = vrot.slane %v5482_v54, %v11530_v41 }
 0xda5   : > { %v5497_v56 = vrot.slane %v5483_v22, %v11530_v41  ;;  %v6254_v39 = vcombine.low %v6022_v61, %v6029_v8  ;;  %v9963_v37 = vcombine.high %v6022_v61, %v6029_v8  ;;  %v6270_v0 = vcombine.low %v6038_v23, %v6045_v5 }
 0xda6   : > { %v9964_v19 = vcombine.high %v6038_v23, %v6045_v5  ;;  %v5498_v1 = vcombine.low %v5474_v44, %v5490_v24  ;;  %v5499_v29 = vcombine.high %v5474_v44, %v5490_v24  ;;  %v13081_v14 = vrot.slane %v6150_v47, %v11544_v60 }
 0xda7   : > { %v5514_v6 = vcombine.low %v5481_v50, %v5497_v56  ;;  %v5515_v21 = vcombine.high %v5481_v50, %v5497_v56  ;;  %v13084_v17 = vrot.slane %v6151_v43, %v11544_v60  ;;  %v6218_v45 = vcombine.low %v13036_v33, %v13039_v58 }
 0xda8   : > { %v5325_v46 = vpop.permute.xlu1 %5324  ;;  %v6234_v26 = vcombine.low %v13045_v35, %v13051_v32  ;;  %v13091_v10 = vrot.slane %v6166_v25, %v11544_v60  ;;  %v5506_v49 = vrot.slane %v5498_v1, %v11544_v60  ;;  %v5513_v54 = vrot.slane %v5499_v29, %v11544_v60 }
 0xda9   : > { %v5534_v22 = vcombine.low %v12886_v15, %v5313_v18  ;;  %v13097_v61 = vrot.slane %v6167_v13, %v11544_v60  ;;  %v5535_v8 = vcombine.high %v12886_v15, %v5313_v18  ;;  %v13101_v23 = vrot.slane %v6218_v45, %v11544_v60 }
 0xdaa   : > { %v13104_v5 = vrot.slane %v6234_v26, %v11544_v60  ;;  %v5522_v44 = vrot.slane %v5514_v6, %v11544_v60  ;;  %v5529_v50 = vrot.slane %v5515_v21, %v11544_v60  ;;  %v5738_v47 = vcombine.low %v5506_v49, %v5513_v54 }
 0xdab   : > { %v9957_v43 = vcombine.high %v5506_v49, %v5513_v54  ;;  %v13109_v25 = vrot.slane %v6254_v39, %v11530_v41  ;;  %v13112_v13 = vrot.slane %v9963_v37, %v11530_v41  ;;  %v5550_v18 = vcombine.low %v13042_v36, %v5325_v46  ;;  %v13137_v54 = vpop.permute.xlu0 %6462 }
 0xdac   : > { %v6250_v15 = vcombine.low %v13101_v23, %v13104_v5  ;;  %v13117_v24 = vpop.permute.xlu1 %6464  ;;  %v13120_v56 = vrot.slane %v6270_v0, %v11530_v41  ;;  %v13123_v1 = vrot.slane %v9964_v19, %v11530_v41  ;;  %v6390_v39 = vcombine.low %v13081_v14, %v13084_v17 }
 0xdad   : > { %v5542_v29 = vrot.slane %v5534_v22, %v11530_v41  ;;  %v5549_v37 = vrot.slane %v5535_v8, %v11530_v41  ;;  %v5551_v21 = vcombine.high %v13042_v36, %v5325_v46  ;;  %v5558_v45 = vrot.slane %v5550_v18, %v11530_v41 }
 0xdae   : > { %14214 = vst [vmem:[#allocation19_spill] sm:$0xff] %v13120_v56  ;;  %v7058_v6 = vpack.c.bf16 %v6250_v15, %v6250_v15  ;;  %v13132_v26 = vrot.slane %v5738_v47, %v11530_v41  ;;  %v13135_v0 = vrot.slane %v9957_v43, %v11530_v41  ;;  %v5754_v19 = vcombine.low %v5522_v44, %v5529_v50 }
 0xdaf   : > { %v9958_v49 = vcombine.high %v5522_v44, %v5529_v50  ;;  %v5565_v22 = vrot.slane %v5551_v21, %v11530_v41  ;;  %v5566_v8 = vcombine.low %v5542_v29, %v5558_v45  ;;  %v5567_v15 = vcombine.high %v5542_v29, %v5558_v45 }
 0xdb0   : > { %v7078_v59 = vsel %vm2373_vm2, %v7058_v6, 0  ;;  %v6354_v36 = vcombine.low %v13061_v63, %v13064_v40  ;;  %v6370_v46 = vcombine.low %v13067_v53, %v13070_v34  ;;  %v6286_v47 = vcombine.low %v13109_v25, %v13112_v13 }
 0xdb1   : > { %10504 = vmatpush3.bf16.xpose.msra.mxu0 %v7078_v59  ;;  %v6302_v44 = vcombine.low %v13120_v56, %v13123_v1  ;;  %v5574_v50 = vrot.slane %v5566_v8, %v11544_v60  ;;  %v5581_v43 = vrot.slane %v5567_v15, %v11544_v60  ;;  %v5582_v18 = vcombine.low %v5549_v37, %v5565_v22  ;;  %v6475_v59 = vpop.permute.xlu1 %6474 }
 0xdb2   : > { %v5583_v6 = vcombine.high %v5549_v37, %v5565_v22  ;;  %10515 = vmatprep.subr.bf16.mxu0 %v14192_v48  ;;  %v13153_v29 = vrot.slane %v6354_v36, %v11544_v60  ;;  %v13156_v21 = vrot.slane %v6370_v46, %v11544_v60  ;;  %v13159_v45 = vrot.slane %v6286_v47, %v11544_v60 }
 0xdb3   : > { %v13162_v2 = vrot.slane %v6302_v44, %v11544_v60  ;;  %v13165_v8 = vrot.slane %v5754_v19, %v11530_v41  ;;  %v13168_v37 = vrot.slane %v9958_v49, %v11530_v41  ;;  %v5590_v22 = vrot.slane %v5582_v18, %v11544_v60  ;;  %v6487_v44 = vpop.permute.xlu0 %6486 }
 0xdb4   : > { %v5597_v15 = vrot.slane %v5583_v6, %v11544_v60  ;;  %v9967_v36 = vcombine.high %v13081_v14, %v13084_v17  ;;  %v6386_v46 = vcombine.low %v13153_v29, %v13156_v21  ;;  %v5734_v19 = vcombine.low %v13007_v38, %v13013_v27 }
 0xdb5   : > { %v6318_v47 = vcombine.low %v13159_v45, %v13162_v2  ;;  %v5770_v49 = vcombine.low %v13132_v26, %v13135_v0  ;;  %v5806_v12 = vcombine.low %v5574_v50, %v5581_v43  ;;  %v9959_v18 = vcombine.high %v5574_v50, %v5581_v43  ;;  %v13194_v50 = vpop.permute.xlu1 %6476 }
 0xdb6   : > { %v7042_v6 = vpack.c.bf16 %v13026_v9, %v13026_v9  ;;  %v5822_v4 = vcombine.low %v5590_v22, %v5597_v15  ;;  %v9960_v14 = vcombine.high %v5590_v22, %v5597_v15  ;;  %v7060_v17 = vpack.c.bf16 %v6386_v46, %v6386_v46 }
 0xdb7   : > { %v7059_v7 = vpack.c.bf16 %v6318_v47, %v6318_v47  ;;  %v13185_v51 = vrot.slane %v6390_v39, %v11530_v41  ;;  %v6406_v56 = vcombine.low %v13091_v10, %v13097_v61  ;;  %v9968_v38 = vcombine.high %v13091_v10, %v13097_v61 }
 0xdb8   : > { %v5786_v27 = vcombine.low %v13165_v8, %v13168_v37  ;;  %10506 = vmatmul.mubr.msk.bf16.vlgmr.msra.gmra.mrb[80].mxu0 %vm2373_vm2, %v7042_v6  ;;  %v6514_v9 = vcombine.low %v13137_v54, %v6487_v44  ;;  %v7170_v43 = vsel %vm2373_vm2, %v7060_v17, 0  ;;  %v6498_v22 = vcombine.low %v12890_v3, %v6475_v59 }
 0xdb9   : > { %v7124_v39 = vsel %vm2373_vm2, %v7059_v7, 0  ;;  %10517 = vmatprep.mubr.msk.bf16.mxu0 %vm11187_vm1, %v14192_v48  ;;  %v6515_v10 = vcombine.high %v13137_v54, %v6487_v44  ;;  %v13204_v61 = vrot.slane %v5806_v12, %v11530_v41  ;;  %10516 = vmatpush3.bf16.xpose.msra.mxu0 %v7170_v43  ;;  %v6499_v15 = vcombine.high %v12890_v3, %v6475_v59 }
 0xdba   : > { %10510 = vmatpush3.bf16.xpose.msra.mxu1 %v7124_v39  ;;  %v13208_v46 = vrot.slane %v9959_v18, %v11530_v41  ;;  %v13211_v47 = vrot.slane %v5822_v4, %v11530_v41  ;;  %v13214_v7 = vrot.slane %v9960_v14, %v11530_v41  ;;  %v13217_v6 = vrot.slane %v5770_v49, %v11544_v60  ;;  %v6489_v18 = vpop.permute.xlu1 %6488 }
 0xdbb   : > { %14215 = vst [vmem:[#allocation20_spill] sm:$0xff] %v13204_v61  ;;  %10527 = vmatprep.subr.bf16.mxu0 %v14192_v48  ;;  %v13221_v12 = vrot.slane %v9967_v36, %v11530_v41  ;;  %v13224_v54 = vrot.slane %v6406_v56, %v11530_v41  ;;  %v13227_v3 = vrot.slane %v9968_v38, %v11530_v41 }
 0xdbc   : > { %14216 = vst [vmem:[#allocation21_spill] sm:$0xff] %v13211_v47  ;;  %v13230_v4 = vrot.slane %v5786_v27, %v11544_v60  ;;  %10521 = vmatprep.subr.bf16.mxu1 %v14192_v48  ;;  %v6506_v49 = vrot.slane %v6498_v22, %v11530_v41  ;;  %v6251_v36 = vcombine.high %v13101_v23, %v13104_v5 }
 0xdbd   : > { %v6522_v44 = vrot.slane %v6514_v9, %v11530_v41  ;;  %v6513_v38 = vrot.slane %v6499_v15, %v11530_v41  ;;  %v6529_v14 = vrot.slane %v6515_v10, %v11530_v41  ;;  %v5838_v17 = vcombine.low %v13204_v61, %v13208_v46 }
 0xdbe   : > { %v5802_v27 = vcombine.low %v13217_v6, %v13230_v4  ;;  %v5854_v43 = vcombine.low %v13211_v47, %v13214_v7  ;;  %v7043_v23 = vpack.c.bf16 %v5734_v19, %v5734_v19  ;;  %v7062_v39 = vpack.c.bf16 %v6251_v36, %v6251_v36 }
 0xdbf   : > { %v6422_v9 = vcombine.low %v13185_v51, %v13221_v12  ;;  %v6438_v22 = vcombine.low %v13224_v54, %v13227_v3  ;;  %v5703_v15 = vcombine.high %v12960_v16, %v12963_v55  ;;  %v6530_v56 = vcombine.low %v6506_v49, %v6522_v44 }
 0xdc0   : > { %v7044_v5 = vpack.c.bf16 %v5802_v27, %v5802_v27  ;;  %v6531_v10 = vcombine.high %v6506_v49, %v6522_v44  ;;  %v6582_v59 = vcombine.low %v13117_v24, %v6489_v18  ;;  %v6546_v61 = vcombine.low %v6513_v38, %v6529_v14 }
 0xdc1   : > { %10512 = vmatmul.mubr.msk.bf16.vlgmr.msra.gmra.mrb[84].mxu1 %vm2373_vm2, %v7043_v23  ;;  %v7262_v19 = vsel %vm2373_vm2, %v7062_v39, 0  ;;  %v6430_v36 = vrot.slane %v6422_v9, %v11544_v60  ;;  %v6446_v27 = vrot.slane %v6438_v22, %v11544_v60  ;;  %v6547_v47 = vcombine.high %v6513_v38, %v6529_v14 }
 0xdc2   : > { %10518 = vmatmul.mubr.msk.bf16.vlgmr.msra.gmra.mrb[84].mxu0 %vm2373_vm2, %v7044_v5  ;;  %10523 = vmatprep.mubr.msk.bf16.mxu1 %vm11187_vm1, %v14192_v48  ;;  %v6566_v49 = vcombine.low %v12904_v57, %v13194_v50  ;;  %v6387_v44 = vcombine.high %v13153_v29, %v13156_v21  ;;  %v5667_v5 = vcombine.high %v13001_v52, %v13004_v28  ;;  %v14222_v16 = vld [vmem:[#allocation20_spill] sm:$0xff] }
 0xdc3   : > { %10528 = vmatpush3.bf16.xpose.msra.mxu0 %v7262_v19  ;;  %10529 = vmatprep.mubr.msk.bf16.mxu0 %vm11187_vm1, %v14192_v48  ;;  %v6454_v23 = vcombine.low %v6430_v36, %v6446_v27  ;;  %v13273_v39 = vrot.slane %v5838_v17, %v11544_v60  ;;  %v13276_v38 = vrot.slane %v5854_v43, %v11544_v60 }
 0xdc4   : > { %10539 = vmatprep.subr.bf16.mxu0 %v14192_v48  ;;  %v13279_v14 = vrot.slane %v6530_v56, %v11544_v60  ;;  %v13282_v9 = vrot.slane %v6531_v10, %v11544_v60  ;;  %v6583_v29 = vcombine.high %v13117_v24, %v6489_v18  ;;  %v6590_v21 = vrot.slane %v6582_v59, %v11530_v41 }
 0xdc5   : > { %v5719_v52 = vcombine.high %v12966_v31, %v12970_v42  ;;  %v7061_v28 = vpack.c.bf16 %v6454_v23, %v6454_v23  ;;  %v7064_v22 = vpack.c.bf16 %v6387_v44, %v6387_v44  ;;  %v6319_v17 = vcombine.high %v13159_v45, %v13162_v2 }
 0xdc6   : > { %v13291_v43 = vrot.slane %v6546_v61, %v11544_v60  ;;  %v13294_v56 = vrot.slane %v6547_v47, %v11544_v60  ;;  %v6567_v10 = vcombine.high %v12904_v57, %v13194_v50  ;;  %v6574_v24 = vrot.slane %v6566_v49, %v11530_v41 }
 0xdc7   : > { %v5771_v59 = vcombine.high %v13132_v26, %v13135_v0  ;;  %v7216_v18 = vsel %vm2373_vm2, %v7061_v28, 0  ;;  %v7046_v19 = vpack.c.bf16 %v5667_v5, %v5667_v5  ;;  %v5870_v2 = vcombine.low %v13273_v39, %v13276_v38 }
 0xdc8   : > { %v6770_v45 = vcombine.low %v13279_v14, %v13282_v9  ;;  %10522 = vmatpush3.bf16.xpose.msra.mxu1 %v7216_v18  ;;  %v6597_v61 = vrot.slane %v6583_v29, %v11530_v41  ;;  %v6598_v47 = vcombine.low %v6574_v24, %v6590_v21  ;;  %v6599_v44 = vcombine.high %v6574_v24, %v6590_v21 }
 0xdc9   : > { %v7354_v57 = vsel %vm2373_vm2, %v7064_v22, 0  ;;  %10533 = vmatprep.subr.bf16.mxu1 %v14192_v48  ;;  %v7063_v50 = vpack.c.bf16 %v6319_v17, %v6319_v17  ;;  %v6219_v49 = vcombine.high %v13036_v33, %v13039_v58  ;;  %v6235_v23 = vcombine.high %v13045_v35, %v13051_v32 }
 0xdca   : > { %10530 = vmatmul.mubr.msk.bf16.vlgmr.msra.gmra.mrb[88].mxu0 %vm2373_vm2, %v7046_v19  ;;  %v9969_v5 = vcombine.high %v13279_v14, %v13282_v9  ;;  %v6786_v29 = vcombine.low %v13291_v43, %v13294_v56  ;;  %v6581_v21 = vrot.slane %v6567_v10, %v11530_v41  ;;  %v5803_v28 = vcombine.high %v13217_v6, %v13230_v4 }
 0xdcb   : > { %10540 = vmatpush3.bf16.xpose.msra.mxu0 %v7354_v57  ;;  %v7045_v22 = vpack.c.bf16 %v5870_v2, %v5870_v2  ;;  %10541 = vmatprep.mubr.msk.bf16.mxu0 %vm11187_vm1, %v14192_v48  ;;  %v13325_v33 = vrot.slane %v6219_v49, %v11544_v60  ;;  %v13328_v58 = vrot.slane %v6235_v23, %v11544_v60  ;;  %v7308_v6 = vsel %vm2373_vm2, %v7063_v50, 0 }
 0xdcc   : > { %10551 = vmatprep.subr.bf16.mxu0 %v14192_v48  ;;  %v6606_v35 = vrot.slane %v6598_v47, %v11544_v60  ;;  %v6613_v32 = vrot.slane %v6599_v44, %v11544_v60  ;;  %v6614_v14 = vcombine.low %v6581_v21, %v6597_v61  ;;  %v6615_v9 = vcombine.high %v6581_v21, %v6597_v61  ;;  %v14220_v44 = vld [vmem:[#allocation18_spill] sm:$0xff] }
 0xdcd   : > { %v6252_v4 = vcombine.low %v13325_v33, %v13328_v58  ;;  %v6355_v17 = vcombine.high %v13061_v63, %v13064_v40  ;;  %v6371_v10 = vcombine.high %v13067_v53, %v13070_v34  ;;  %v7048_v24 = vpack.c.bf16 %v5803_v28, %v5803_v28 }
 0xdce   : > { %v6455_v18 = vcombine.high %v6430_v36, %v6446_v27  ;;  %v14217_v19 = vcombine.high %v12948_v11, %v12951_v20  ;;  %v14218_v61 = vcombine.high %v12954_v62, %v12957_v30  ;;  %v6287_v11 = vcombine.high %v13109_v25, %v13112_v13  ;;  %v14219_v62 = vld [vmem:[#allocation19_spill] sm:$0xff]  ;;  %v14221_v25 = vld [vmem:[#allocation17_spill] sm:$0xff] }
 0xdcf   : > { %10524 = vmatmul.mubr.msk.bf16.vlgmr.msra.gmra.mrb[88].mxu1 %vm2373_vm2, %v7045_v22  ;;  %v7066_v63 = vpack.c.bf16 %v6252_v4, %v6252_v4  ;;  %v13353_v40 = vrot.slane %v6355_v17, %v11544_v60  ;;  %v13356_v53 = vrot.slane %v6371_v10, %v11544_v60  ;;  %v6622_v20 = vrot.slane %v6614_v14, %v11544_v60 }
 0xdd0   : > { %v13343_v2 = vrot.slane %v14217_v19, %v11544_v60  ;;  %v13349_v47 = vrot.slane %v14218_v61, %v11544_v60  ;;  %v6629_v34 = vrot.slane %v6615_v9, %v11544_v60  ;;  %10534 = vmatpush3.bf16.xpose.msra.mxu1 %v7308_v6  ;;  %10535 = vmatprep.mubr.msk.bf16.mxu1 %vm11187_vm1, %v14192_v48 }
 0xdd1   : > { %v6303_v30 = vcombine.high %v14219_v62, %v13123_v1  ;;  %v9970_v36 = vcombine.high %v13291_v43, %v13294_v56  ;;  %v7446_v27 = vsel %vm2373_vm2, %v7066_v63, 0  ;;  %v5735_v13 = vcombine.high %v14221_v25, %v14220_v44  ;;  %10545 = vmatprep.subr.bf16.mxu1 %v14192_v48 }
 0xdd2   : > { %10542 = vmatmul.mubr.msk.bf16.vlgmr.msra.gmra.mrb[92].mxu0 %vm2373_vm2, %v7048_v24  ;;  %v6388_v57 = vcombine.low %v13353_v40, %v13356_v53  ;;  %v5787_v50 = vcombine.high %v13165_v8, %v13168_v37  ;;  %v6838_v49 = vcombine.low %v6606_v35, %v6613_v32  ;;  %v7065_v1 = vpack.c.bf16 %v6455_v18, %v6455_v18 }
 0xdd3   : > { %10552 = vmatpush3.bf16.xpose.msra.mxu0 %v7446_v27  ;;  %10553 = vmatprep.mubr.msk.bf16.mxu0 %vm11187_vm1, %v14192_v48  ;;  %v13380_v43 = vrot.slane %v6770_v45, %v11530_v41  ;;  %v5668_v56 = vcombine.low %v13343_v2, %v13349_v47  ;;  %v13386_v23 = vrot.slane %v6287_v11, %v11544_v60 }
 0xdd4   : > { %10563 = vmatprep.subr.bf16.mxu0 %v14192_v48  ;;  %v13389_v21 = vrot.slane %v6303_v30, %v11544_v60  ;;  %v6785_v8 = vrot.slane %v9969_v5, %v11530_v41  ;;  %v6793_v37 = vrot.slane %v6786_v29, %v11530_v41  ;;  %v9971_v28 = vcombine.high %v6606_v35, %v6613_v32 }
 0xdd5   : > { %v6854_v22 = vcombine.low %v6622_v20, %v6629_v34  ;;  %v6801_v45 = vrot.slane %v9970_v36, %v11530_v41  ;;  %v9972_v14 = vcombine.high %v6622_v20, %v6629_v34  ;;  %v7047_v9 = vpack.c.bf16 %v5735_v13, %v5735_v13 }
 0xdd6   : > { %v7068_v6 = vpack.c.bf16 %v6388_v57, %v6388_v57  ;;  %v13395_v4 = vrot.slane %v6838_v49, %v11530_v41  ;;  %v7400_v17 = vsel %vm2373_vm2, %v7065_v1, 0  ;;  %v13402_v10 = vrot.slane %v5771_v59, %v11544_v60 }
 0xdd7   : > { %v13405_v5 = vrot.slane %v5787_v50, %v11544_v60  ;;  %10536 = vmatmul.mubr.msk.bf16.vlgmr.msra.gmra.mrb[92].mxu1 %vm2373_vm2, %v7047_v9  ;;  %v7050_v29 = vpack.c.bf16 %v5668_v56, %v5668_v56  ;;  %v6320_v35 = vcombine.low %v13386_v23, %v13389_v21  ;;  %v6423_v32 = vcombine.high %v13185_v51, %v13221_v12  ;;  %v14223_v50 = vld [vmem:[#allocation21_spill] sm:$0xff] }
 0xdd8   : > { %v6439_v24 = vcombine.high %v13224_v54, %v13227_v3  ;;  %v6853_v18 = vrot.slane %v9971_v28, %v11530_v41  ;;  %v6861_v26 = vrot.slane %v6854_v22, %v11530_v41  ;;  %10546 = vmatpush3.bf16.xpose.msra.mxu1 %v7400_v17  ;;  %10547 = vmatprep.mubr.msk.bf16.mxu1 %vm11187_vm1, %v14192_v48  ;;  %v7538_v51 = vsel %vm2373_vm2, %v7068_v6, 0 }
 0xdd9   : > { %v5871_v0 = vcombine.high %v13273_v39, %v13276_v38  ;;  %v6869_v59 = vrot.slane %v9972_v14, %v11530_v41  ;;  %10557 = vmatprep.subr.bf16.mxu1 %v14192_v48  ;;  %v6253_v12 = vcombine.high %v13325_v33, %v13328_v58  ;;  %v6802_v54 = vcombine.low %v13380_v43, %v6785_v8 }
 0xdda   : > { %10554 = vmatmul.mubr.msk.bf16.vlgmr.msra.gmra.mrb[96].mxu0 %vm2373_vm2, %v7050_v29  ;;  %v5804_v3 = vcombine.low %v13402_v10, %v13405_v5  ;;  %v13435_v39 = vrot.slane %v5703_v15, %v11544_v60  ;;  %v13441_v38 = vrot.slane %v5719_v52, %v11544_v60  ;;  %v7067_v33 = vpack.c.bf16 %v6320_v35, %v6320_v35 }
 0xddb   : > { %10564 = vmatpush3.bf16.xpose.msra.mxu0 %v7538_v51  ;;  %10565 = vmatprep.mubr.msk.bf16.mxu0 %vm11187_vm1, %v14192_v48  ;;  %v13445_v58 = vrot.slane %v6423_v32, %v11544_v60  ;;  %v13448_v19 = vrot.slane %v6439_v24, %v11544_v60  ;;  %v6818_v61 = vcombine.low %v6793_v37, %v6801_v45 }
 0xddc   : > { %10575 = vmatprep.subr.bf16.mxu0 %v14192_v48  ;;  %v5839_v55 = vcombine.high %v14222_v16, %v13208_v46  ;;  %v7049_v15 = vpack.c.bf16 %v5871_v0, %v5871_v0  ;;  %v6810_v63 = vrot.slane %v6802_v54, %v11544_v60  ;;  %v7070_v11 = vpack.c.bf16 %v6253_v12, %v6253_v12 }
 0xddd   : > { %v6826_v31 = vrot.slane %v6818_v61, %v11544_v60  ;;  %v6870_v42 = vcombine.low %v13395_v4, %v6853_v18  ;;  %v6886_v52 = vcombine.low %v6861_v26, %v6869_v59  ;;  %v7052_v20 = vpack.c.bf16 %v5804_v3, %v5804_v3 }
 0xdde   : > { %v5736_v34 = vcombine.low %v13435_v39, %v13441_v38  ;;  %v6803_v62 = vcombine.high %v13380_v43, %v6785_v8  ;;  %v6819_v30 = vcombine.high %v6793_v37, %v6801_v45  ;;  %v7492_v46 = vsel %vm2373_vm2, %v7067_v33, 0 }
 0xddf   : > { %10548 = vmatmul.mubr.msk.bf16.vlgmr.msra.gmra.mrb[96].mxu1 %vm2373_vm2, %v7049_v15  ;;  %v6456_v36 = vcombine.low %v13445_v58, %v13448_v19  ;;  %v13463_v27 = vrot.slane %v6870_v42, %v11544_v60  ;;  %v13466_v44 = vrot.slane %v6886_v52, %v11544_v60  ;;  %v13470_v25 = vcombine.high %v6810_v63, %v6826_v31 }
 0xde0   : > { %10558 = vmatpush3.bf16.xpose.msra.mxu1 %v7492_v46  ;;  %10559 = vmatprep.mubr.msk.bf16.mxu1 %vm11187_vm1, %v14192_v48  ;;  %v6817_v13 = vrot.slane %v6803_v62, %v11544_v60  ;;  %v6833_v57 = vrot.slane %v6819_v30, %v11544_v60  ;;  %v5855_v49 = vcombine.high %v14223_v50, %v13214_v7  ;;  %v7630_v1 = vsel %vm2373_vm2, %v7070_v11, 0 }
 0xde1   : > { %10569 = vmatprep.subr.bf16.mxu1 %v14192_v48  ;;  %v6389_v43 = vcombine.high %v13353_v40, %v13356_v53  ;;  %v13483_v56 = vcombine.high %v13463_v27, %v13466_v44  ;;  %v5669_v7 = vcombine.high %v13343_v2, %v13349_v47  ;;  %v6871_v37 = vcombine.high %v13395_v4, %v6853_v18 }
 0xde2   : > { %10566 = vmatmul.mubr.msk.bf16.vlgmr.msra.gmra.mrb[100].mxu0 %vm2373_vm2, %v7052_v20  ;;  %v13489_v8 = vcombine.low %v6817_v13, %v6833_v57  ;;  %v7069_v28 = vpack.c.bf16 %v6456_v36, %v6456_v36  ;;  %v6887_v22 = vcombine.high %v6861_v26, %v6869_v59  ;;  %v7051_v40 = vpack.c.bf16 %v5736_v34, %v5736_v34 }
 0xde3   : > { %10576 = vmatpush3.bf16.xpose.msra.mxu0 %v7630_v1  ;;  %10577 = vmatprep.mubr.msk.bf16.mxu0 %vm11187_vm1, %v14192_v48  ;;  %v6885_v53 = vrot.slane %v6871_v37, %v11544_v60  ;;  %v13494_v45 = vcombine.high %v6817_v13, %v6833_v57  ;;  %v7072_v14 = vpack.c.bf16 %v6389_v43, %v6389_v43 }
 0xde4   : > { %10587 = vmatprep.subr.bf16.mxu0 %v14192_v48  ;;  %v5853_v9 = vrot.slane %v5839_v55, %v11544_v60  ;;  %v5869_v6 = vrot.slane %v5855_v49, %v11544_v60  ;;  %v6901_v2 = vrot.slane %v6887_v22, %v11544_v60  ;;  %v7054_v47 = vpack.c.bf16 %v5669_v7, %v5669_v7 }
 0xde5   : > { %v7584_v4 = vsel %vm2373_vm2, %v7069_v28, 0  ;;  %v6321_v17 = vcombine.high %v13386_v23, %v13389_v21  ;;  %v7722_v32 = vsel %vm2373_vm2, %v7072_v14, 0  ;;  %v6834_v18 = vcombine.low %v6810_v63, %v6826_v31 }
 0xde6   : > { %v13503_v29 = vcombine.low %v6885_v53, %v6901_v2  ;;  %v13505_v35 = vcombine.high %v6885_v53, %v6901_v2  ;;  %v5872_v24 = vcombine.low %v5853_v9, %v5869_v6  ;;  %v5805_v21 = vcombine.high %v13402_v10, %v13405_v5 }
 0xde7   : > { %10560 = vmatmul.mubr.msk.bf16.vlgmr.msra.gmra.mrb[100].mxu1 %vm2373_vm2, %v7051_v40  ;;  %v7071_v23 = vpack.c.bf16 %v6321_v17, %v6321_v17  ;;  %v8002_v0 = vpack.c.bf16 %v6834_v18, %v6834_v18  ;;  %v6457_v12 = vcombine.high %v13445_v58, %v13448_v19  ;;  %v5737_v5 = vcombine.high %v13435_v39, %v13441_v38 }
 0xde8   : > { %10570 = vmatpush3.bf16.xpose.msra.mxu1 %v7584_v4  ;;  %10571 = vmatprep.mubr.msk.bf16.mxu1 %vm11187_vm1, %v14192_v48  ;;  %v7053_v26 = vpack.c.bf16 %v5872_v24, %v5872_v24  ;;  %v7056_v51 = vpack.c.bf16 %v5805_v21, %v5805_v21  ;;  %v6902_v58 = vcombine.low %v13463_v27, %v13466_v44 }
 0xde9   : > { %10581 = vmatprep.subr.bf16.mxu1 %v14192_v48  ;;  %v7676_v59 = vsel %vm2373_vm2, %v7071_v23, 0  ;;  %v8022_v10 = vsel %vm3321_vm3, %v8002_v0, 0  ;;  %v7073_v54 = vpack.c.bf16 %v6457_v12, %v6457_v12  ;;  %v7055_v3 = vpack.c.bf16 %v5737_v5, %v5737_v5 }
 0xdea   : > { %10578 = vmatmul.mubr.msk.bf16.vlgmr.msra.gmra.mrb[104].mxu0 %vm2373_vm2, %v7054_v47  ;;  %v5873_v39 = vcombine.high %v5853_v9, %v5869_v6  ;;  %v8003_v38 = vpack.c.bf16 %v6902_v58, %v6902_v58 }
 0xdeb   : > { %10588 = vmatpush3.bf16.xpose.msra.mxu0 %v7722_v32  ;;  %10589 = vmatprep.mubr.msk.bf16.mxu0 %vm11187_vm1, %v14192_v48  ;;  %v7768_v33 = vsel %vm2373_vm2, %v7073_v54, 0 }
 0xdec   : > { %10599 = vmatprep.subr.bf16.mxu0 %v14192_v48  ;;  %v7057_v19 = vpack.c.bf16 %v5873_v39, %v5873_v39  ;;  %v8068_v61 = vsel %vm3321_vm3, %v8003_v38, 0 }
 0xdef   : > { %10572 = vmatmul.mubr.msk.bf16.vlgmr.msra.gmra.mrb[104].mxu1 %vm2373_vm2, %v7053_v26 }
 0xdf0   : > { %10582 = vmatpush3.bf16.xpose.msra.mxu1 %v7676_v59  ;;  %10583 = vmatprep.mubr.msk.bf16.mxu1 %vm11187_vm1, %v14192_v48 }
 0xdf1   : > { %10593 = vmatprep.subr.bf16.mxu1 %v14192_v48 }
 0xdf2   : > { %10590 = vmatmul.mubr.msk.bf16.vlgmr.msra.gmra.mrb[108].mxu0 %vm2373_vm2, %v7056_v51 }
 0xdf3   : > { %10600 = vmatpush3.bf16.msra.mxu0 %v8022_v10  ;;  %10601 = vmatprep.mubr.msk.bf16.mxu0 %vm11187_vm1, %v14192_v48 }
 0xdf4   : > { %10611 = vmatprep.subr.bf16.mxu0 %v14192_v48 }
 0xdf7   : > { %10584 = vmatmul.mubr.msk.bf16.vlgmr.msra.gmra.mrb[108].mxu1 %vm2373_vm2, %v7055_v3 }
 0xdf8   : > { %10594 = vmatpush3.bf16.xpose.msra.mxu1 %v7768_v33  ;;  %10595 = vmatprep.mubr.msk.bf16.mxu1 %vm11187_vm1, %v14192_v48 }
 0xdf9   : > { %10605 = vmatprep.subr.bf16.mxu1 %v14192_v48 }
 0xdff   : > { %10596 = vmatmul.mubr.msk.bf16.vlgmr.msra.gmra.mrb[112].mxu1 %vm2373_vm2, %v7057_v19 }
 0xe00   : > { %10606 = vmatpush3.bf16.msra.mxu1 %v8068_v61  ;;  %10607 = vmatprep.mubr.msk.bf16.mxu1 %vm11187_vm1, %v14192_v48 }
 0xe01   : > { %10617 = vmatprep.subr.bf16.mxu1 %v14192_v48 }
 0xe8b   : > { %v13543_v16 = vpop.f32.mrb[80].mxu0 }
 0xe8c   : > { %v10507_v55 = vpop.f32.mrb[81].mxu0  ;;  %v7810_v15 = vsel %vm2373_vm2, %v13543_v16, -inf }
 0xe8d   : > { %7811 = vmax.xlane.f32.xlu0 %v7810_v15  ;;  %v7117_v63 = vpop.f32.mrb[82].mxu0 }
 0xe8e   : > { %v10508_v11 = vpop.f32.mrb[83].mxu0  ;;  %v14224_v63 = vld [vmem:[#allocation11_spill] sm:$0xff] }
 0xe94   : > { %v13547_v31 = vpop.f32.mrb[84].mxu1 }
 0xe95   : > { %v13549_v42 = vpop.f32.mrb[84].mxu0  ;;  %v10513_v52 = vpop.f32.mrb[85].mxu1  ;;  %v7813_v20 = vsel %vm2373_vm2, %v13547_v31, -inf }
 0xe96   : > { %v10519_v34 = vpop.f32.mrb[85].mxu0  ;;  %v7816_v62 = vsel %vm2373_vm2, %v13549_v42, -inf  ;;  %7814 = vmax.xlane.f32.xlu1 %v7813_v20  ;;  %v7163_v30 = vpop.f32.mrb[86].mxu1 }
 0xe97   : > { %7817 = vmax.xlane.f32.xlu0 %v7816_v62  ;;  %v7209_v46 = vpop.f32.mrb[86].mxu0  ;;  %v10514_v36 = vpop.f32.mrb[87].mxu1  ;;  %v14225_v34 = vld [vmem:[#allocation12_spill] sm:$0xff] }
 0xe98   : > { %v10520_v27 = vpop.f32.mrb[87].mxu0 }
 0xe9d   : > { %v13555_v44 = vpop.f32.mrb[88].mxu0 }
 0xe9e   : > { %v10531_v13 = vpop.f32.mrb[89].mxu0  ;;  %v7822_v53 = vsel %vm2373_vm2, %v13555_v44, -inf }
 0xe9f   : > { %v7301_v57 = vpop.f32.mrb[90].mxu0 }
 0xea0   : > { %v10532_v50 = vpop.f32.mrb[91].mxu0 }
 0xea2   : > { %v13557_v49 = vpop.f32.mrb[88].mxu1 }
 0xea3   : > { %v10525_v1 = vpop.f32.mrb[89].mxu1  ;;  %v7819_v43 = vsel %vm2373_vm2, %v13557_v49, -inf }
 0xea4   : > { %v7255_v7 = vpop.f32.mrb[90].mxu1  ;;  %7820 = vmax.xlane.f32.xlu0 %v7819_v43 }
 0xea5   : > { %v13561_v37 = vpop.f32.mrb[92].mxu0  ;;  %v10526_v28 = vpop.f32.mrb[91].mxu1 }
 0xea6   : > { %v10543_v22 = vpop.f32.mrb[93].mxu0  ;;  %v7828_v47 = vsel %vm2373_vm2, %v13561_v37, -inf }
 0xea7   : > { %v7393_v40 = vpop.f32.mrb[94].mxu0 }
 0xea8   : > { %v10544_v14 = vpop.f32.mrb[95].mxu0  ;;  %7823 = vmax.xlane.f32.xlu0 %v7822_v53 }
 0xeaa   : > { %v13565_v9 = vpop.f32.mrb[92].mxu1 }
 0xeab   : > { %v10537_v6 = vpop.f32.mrb[93].mxu1  ;;  %v7825_v2 = vsel %vm2373_vm2, %v13565_v9, -inf }
 0xeac   : > { %7826 = vmax.xlane.f32.xlu1 %v7825_v2  ;;  %v7347_v4 = vpop.f32.mrb[94].mxu1  ;;  %7829 = vmax.xlane.f32.xlu0 %v7828_v47 }
 0xead   : > { %v13571_v17 = vpop.f32.mrb[96].mxu0  ;;  %v10538_v32 = vpop.f32.mrb[95].mxu1 }
 0xeae   : > { %v10555_v24 = vpop.f32.mrb[97].mxu0  ;;  %v7834_v22 = vsel %vm2373_vm2, %v13571_v17, -inf  ;;  %v13611_v32 = vpop.permute.xlu0 %6466 }
 0xeaf   : > { %v7485_v18 = vpop.f32.mrb[98].mxu0 }
 0xeb0   : > { %v10556_v23 = vpop.f32.mrb[99].mxu0 }
 0xeb2   : > { %v13573_v21 = vpop.f32.mrb[96].mxu1 }
 0xeb3   : > { %v10549_v26 = vpop.f32.mrb[97].mxu1  ;;  %v7831_v0 = vsel %vm2373_vm2, %v13573_v21, -inf }
 0xeb4   : > { %7832 = vmax.xlane.f32.xlu1 %v7831_v0  ;;  %v7439_v59 = vpop.f32.mrb[98].mxu1  ;;  %v13614_v26 = vpop.permute.xlu1 %6468 }
 0xeb5   : > { %v13577_v51 = vpop.f32.mrb[100].mxu0  ;;  %v10550_v12 = vpop.f32.mrb[99].mxu1 }
 0xeb6   : > { %v10567_v10 = vpop.f32.mrb[101].mxu0  ;;  %v7840_v40 = vsel %vm2373_vm2, %v13577_v51, -inf }
 0xeb7   : > { %v7577_v5 = vpop.f32.mrb[102].mxu0 }
 0xeb8   : > { %v10568_v54 = vpop.f32.mrb[103].mxu0 }
 0xeba   : > { %v13579_v3 = vpop.f32.mrb[100].mxu1 }
 0xebb   : > { %v10561_v33 = vpop.f32.mrb[101].mxu1  ;;  %v7837_v53 = vsel %vm2373_vm2, %v13579_v3, -inf }
 0xebc   : > { %v7531_v58 = vpop.f32.mrb[102].mxu1 }
 0xebd   : > { %v13581_v39 = vpop.f32.mrb[104].mxu0  ;;  %v10562_v38 = vpop.f32.mrb[103].mxu1 }
 0xebe   : > { %v10579_v19 = vpop.f32.mrb[105].mxu0  ;;  %v7846_v14 = vsel %vm2373_vm2, %v13581_v39, -inf }
 0xebf   : > { %v7669_v61 = vpop.f32.mrb[106].mxu0 }
 0xec0   : > { %v10580_v55 = vpop.f32.mrb[107].mxu0 }
 0xec2   : > { %v13583_v15 = vpop.f32.mrb[104].mxu1  ;;  %6478 = vrot.lane.b32.xlu0 %v14224_v63, %s11184_s7 }
 0xec3   : > { %v10573_v11 = vpop.f32.mrb[105].mxu1  ;;  %v7843_v6 = vsel %vm2373_vm2, %v13583_v15, -inf }
 0xec4   : > { %v7623_v52 = vpop.f32.mrb[106].mxu1 }
 0xec5   : > { %v13587_v20 = vpop.f32.mrb[108].mxu0  ;;  %6480 = vrot.lane.b32.xlu1 %v14225_v34, %s11184_s7  ;;  %v10574_v62 = vpop.f32.mrb[107].mxu1 }
 0xec6   : > { %v10591_v30 = vpop.f32.mrb[109].mxu0  ;;  %v7852_v2 = vsel %vm2373_vm2, %v13587_v20, -inf }
 0xec7   : > { %v7761_v46 = vpop.f32.mrb[110].mxu0 }
 0xec8   : > { %v10592_v36 = vpop.f32.mrb[111].mxu0 }
 0xeca   : > { %v13591_v27 = vpop.f32.mrb[108].mxu1 }
 0xecb   : > { %v10585_v13 = vpop.f32.mrb[109].mxu1  ;;  %v7849_v47 = vsel %vm2373_vm2, %v13591_v27, -inf }
 0xecc   : > { %v7715_v57 = vpop.f32.mrb[110].mxu1 }
 0xecd   : > { %v10586_v50 = vpop.f32.mrb[111].mxu1 }
 0xed2   : > { %v13593_v1 = vpop.f32.mrb[112].mxu1 }
 0xed3   : > { %v10597_v43 = vpop.f32.mrb[113].mxu1  ;;  %v7855_v4 = vsel %vm2373_vm2, %v13593_v1, -inf }
 0xed4   : > { %v7807_v7 = vpop.f32.mrb[114].mxu1 }
 0xed5   : > { %v10598_v28 = vpop.f32.mrb[115].mxu1 }
 0xee1   : > { %7835 = vmax.xlane.f32.xlu0 %v7834_v22 }
 0xee5   : > { %7841 = vmax.xlane.f32.xlu0 %v7840_v40 }
 0xee9   : > { %7838 = vmax.xlane.f32.xlu1 %v7837_v53  ;;  %7847 = vmax.xlane.f32.xlu0 %v7846_v14 }
 0xeed   : > { %7844 = vmax.xlane.f32.xlu1 %v7843_v6  ;;  %7853 = vmax.xlane.f32.xlu0 %v7852_v2 }
 0xef1   : > { %7850 = vmax.xlane.f32.xlu1 %v7849_v47 }
 0xef5   : > { %7856 = vmax.xlane.f32.xlu1 %v7855_v4 }
 0xf1a   : > { %v7812_v24 = vpop.xlane.xlu0 %7811 }
 0xf1b   : > { %v7858_v18 = vsub.f32 %v13543_v16, %v7812_v24 }
 0xf1d   : > { %v7874_v23 = vmul.f32 1.442695, %v7858_v18 }
 0xf1f   : > { %10971 = vpow2.f32 %v7874_v23 }
 0xf23   : > { %v7815_v0 = vpop.xlane.xlu1 %7814 }
 0xf24   : > { %v7818_v59 = vpop.xlane.xlu0 %7817  ;;  %v7859_v12 = vsub.f32 %v13547_v31, %v7815_v0 }
 0xf25   : > { %v7860_v10 = vsub.f32 %v13549_v42, %v7818_v59 }
 0xf26   : > { %v7876_v5 = vmul.f32 1.442695, %v7859_v12 }
 0xf27   : > { %v7878_v54 = vmul.f32 1.442695, %v7860_v10 }
 0xf28   : > { %10973 = vpow2.f32 %v7876_v5 }
 0xf29   : > { %v13618_v33 = vpop.eup %10971  ;;  %10975 = vpow2.f32 %v7878_v54 }
 0xf2a   : > { %v7906_v58 = vsel %vm2373_vm2, %v13618_v33, 0.0 }
 0xf2b   : > { %7907 = vadd.xlane.f32.xlu0 %v7906_v58 }
 0xf31   : > { %v7821_v38 = vpop.xlane.xlu0 %7820 }
 0xf32   : > { %v13622_v16 = vpop.eup %10973  ;;  %v7861_v61 = vsub.f32 %v13557_v49, %v7821_v38 }
 0xf33   : > { %v13624_v19 = vpop.eup %10975  ;;  %v7909_v31 = vsel %vm2373_vm2, %v13622_v16, 0.0 }
 0xf34   : > { %v7912_v42 = vsel %vm2373_vm2, %v13624_v19, 0.0  ;;  %7910 = vadd.xlane.f32.xlu1 %v7909_v31  ;;  %v7880_v55 = vmul.f32 1.442695, %v7861_v61 }
 0xf35   : > { %7913 = vadd.xlane.f32.xlu0 %v7912_v42  ;;  %v7824_v49 = vpop.xlane.xlu0 %7823 }
 0xf36   : > { %10977 = vpow2.f32 %v7880_v55  ;;  %v7862_v62 = vsub.f32 %v13555_v44, %v7824_v49 }
 0xf38   : > { %v7882_v36 = vmul.f32 1.442695, %v7862_v62 }
 0xf39   : > { %v7827_v30 = vpop.xlane.xlu1 %7826  ;;  %v7830_v46 = vpop.xlane.xlu0 %7829 }
 0xf3a   : > { %v7864_v13 = vsub.f32 %v13561_v37, %v7830_v46  ;;  %10979 = vpow2.f32 %v7882_v36  ;;  %v7863_v28 = vsub.f32 %v13565_v9, %v7827_v30 }
 0xf3c   : > { %v7886_v50 = vmul.f32 1.442695, %v7864_v13  ;;  %v7884_v44 = vmul.f32 1.442695, %v7863_v28 }
 0xf3d   : > { %v13649_v37 = vpop.permute.xlu0 %6478 }
 0xf3e   : > { %10981 = vpow2.f32 %v7886_v50 }
 0xf40   : > { %v13631_v11 = vpop.eup %10977 }
 0xf41   : > { %v7915_v52 = vsel %vm2373_vm2, %v13631_v11, 0.0  ;;  %v7833_v57 = vpop.xlane.xlu1 %7832 }
 0xf42   : > { %7916 = vadd.xlane.f32.xlu1 %v7915_v52  ;;  %v7865_v43 = vsub.f32 %v13573_v21, %v7833_v57 }
 0xf44   : > { %v7888_v7 = vmul.f32 1.442695, %v7865_v43  ;;  %v13643_v22 = vpop.eup %10979 }
 0xf45   : > { %v7918_v40 = vsel %vm2373_vm2, %v13643_v22, 0.0  ;;  %v13658_v4 = vpop.permute.xlu1 %6480 }
 0xf46   : > { %10983 = vpow2.f32 %v7888_v7 }
 0xf47   : > { %10985 = vpow2.f32 %v7884_v44 }
 0xf48   : > { %v13647_v53 = vpop.eup %10981 }
 0xf49   : > { %v7924_v21 = vsel %vm2373_vm2, %v13647_v53, 0.0 }
 0xf4b   : > { %6490 = vrot.lane.b32.xlu0 %v14224_v63, %s11185_s12 }
 0xf50   : > { %v13653_v14 = vpop.eup %10983 }
 0xf51   : > { %v7927_v2 = vsel %vm2373_vm2, %v13653_v14, 0.0  ;;  %v13660_v18 = vpop.eup %10985 }
 0xf52   : > { %v7921_v10 = vsel %vm2373_vm2, %v13660_v18, 0.0 }
 0xf53   : > { %6492 = vrot.lane.b32.xlu1 %v14225_v34, %s11185_s12  ;;  %s9695_s12 = scalar_lea.sflag [#allocation4], %s11369_s16 }
 0xf6a   : > { %7919 = vadd.xlane.f32.xlu0 %v7918_v40 }
 0xf6e   : > { %7925 = vadd.xlane.f32.xlu0 %v7924_v21  ;;  %v7836_v9 = vpop.xlane.xlu0 %7835 }
 0xf6f   : > { %v7866_v6 = vsub.f32 %v13571_v17, %v7836_v9 }
 0xf71   : > { %v7890_v47 = vmul.f32 1.442695, %v7866_v6 }
 0xf72   : > { %7928 = vadd.xlane.f32.xlu0 %v7927_v2  ;;  %v7842_v24 = vpop.xlane.xlu0 %7841 }
 0xf73   : > { %10987 = vpow2.f32 %v7890_v47  ;;  %v7868_v23 = vsub.f32 %v13577_v51, %v7842_v24 }
 0xf75   : > { %v7894_v0 = vmul.f32 1.442695, %v7868_v23 }
 0xf76   : > { %v7839_v59 = vpop.xlane.xlu1 %7838  ;;  %v7848_v12 = vpop.xlane.xlu0 %7847 }
 0xf77   : > { %10989 = vpow2.f32 %v7894_v0  ;;  %v7867_v17 = vsub.f32 %v13579_v3, %v7839_v59  ;;  %v7870_v5 = vsub.f32 %v13581_v39, %v7848_v12  ;;  %7922 = vadd.xlane.f32.xlu1 %v7921_v10  ;;  %v6634_v0 = vcombine.low %v14224_v63, %v13649_v37 }
 0xf78   : > { %v6635_v59 = vcombine.high %v14224_v63, %v13649_v37 }
 0xf79   : > { %v7892_v54 = vmul.f32 1.442695, %v7867_v17  ;;  %v7898_v58 = vmul.f32 1.442695, %v7870_v5 }
 0xf7a   : > { %v7845_v38 = vpop.xlane.xlu1 %7844  ;;  %v7854_v61 = vpop.xlane.xlu0 %7853 }
 0xf7b   : > { %10991 = vpow2.f32 %v7892_v54  ;;  %v7869_v31 = vsub.f32 %v13583_v15, %v7845_v38  ;;  %v7872_v51 = vsub.f32 %v13587_v20, %v7854_v61  ;;  %v6642_v54 = vrot.slane %v6634_v0, %v11530_v41 }
 0xf7c   : > { %10993 = vpow2.f32 %v7898_v58  ;;  %v6649_v58 = vrot.slane %v6635_v59, %v11530_v41 }
 0xf7d   : > { %v13669_v42 = vpop.eup %10987  ;;  %v7896_v55 = vmul.f32 1.442695, %v7869_v31  ;;  %v7902_v52 = vmul.f32 1.442695, %v7872_v51 }
 0xf7e   : > { %v7851_v49 = vpop.xlane.xlu1 %7850  ;;  %v7930_v3 = vsel %vm2373_vm2, %v13669_v42, 0.0 }
 0xf7f   : > { %10995 = vpow2.f32 %v7896_v55  ;;  %v7871_v39 = vsub.f32 %v13591_v27, %v7851_v49  ;;  %7931 = vadd.xlane.f32.xlu0 %v7930_v3 }
 0xf80   : > { %10997 = vpow2.f32 %v7902_v52 }
 0xf81   : > { %v13674_v62 = vpop.eup %10989  ;;  %v7900_v30 = vmul.f32 1.442695, %v7871_v39 }
 0xf82   : > { %v7857_v15 = vpop.xlane.xlu1 %7856  ;;  %v7936_v20 = vsel %vm2373_vm2, %v13674_v62, 0.0 }
 0xf83   : > { %10999 = vpow2.f32 %v7900_v30  ;;  %v7873_v46 = vsub.f32 %v13593_v1, %v7857_v15  ;;  %7937 = vadd.xlane.f32.xlu0 %v7936_v20 }
 0xf85   : > { %v13679_v36 = vpop.eup %10991  ;;  %v7904_v13 = vmul.f32 1.442695, %v7873_v46 }
 0xf86   : > { %v13681_v57 = vpop.eup %10993  ;;  %v7933_v27 = vsel %vm2373_vm2, %v13679_v36, 0.0 }
 0xf87   : > { %11001 = vpow2.f32 %v7904_v13  ;;  %7934 = vadd.xlane.f32.xlu1 %v7933_v27  ;;  %v7942_v50 = vsel %vm2373_vm2, %v13681_v57, 0.0 }
 0xf88   : > { %7943 = vadd.xlane.f32.xlu0 %v7942_v50 }
 0xf89   : > { %v13687_v43 = vpop.eup %10995 }
 0xf8a   : > { %v13689_v7 = vpop.eup %10997  ;;  %v7939_v1 = vsel %vm2373_vm2, %v13687_v43, 0.0 }
 0xf8b   : > { %7940 = vadd.xlane.f32.xlu1 %v7939_v1  ;;  %v7948_v28 = vsel %vm2373_vm2, %v13689_v7, 0.0 }
 0xf8c   : > { %7949 = vadd.xlane.f32.xlu0 %v7948_v28  ;;  %v6702_v28 = vcombine.low %v14225_v34, %v13658_v4 }
 0xf8d   : > { %v13695_v44 = vpop.eup %10999 }
 0xf8e   : > { %v7945_v40 = vsel %vm2373_vm2, %v13695_v44, 0.0 }
 0xf8f   : > { %7946 = vadd.xlane.f32.xlu1 %v7945_v40  ;;  %v6703_v40 = vcombine.high %v14225_v34, %v13658_v4  ;;  %v6710_v34 = vrot.slane %v6702_v28, %v11530_v41 }
 0xf91   : > { %v13699_v21 = vpop.eup %11001  ;;  %v6717_v4 = vrot.slane %v6703_v40, %v11530_v41 }
 0xf92   : > { %v7951_v9 = vsel %vm2373_vm2, %v13699_v21, 0.0 }
 0xf93   : > { %7952 = vadd.xlane.f32.xlu1 %v7951_v9 }
 0xfb8   : > { %v7908_v6 = vpop.xlane.xlu0 %7907 }
 0xfb9   : > { %11003 = vrcp.f32 %v7908_v6 }
 0xfc1   : > { %v7911_v2 = vpop.xlane.xlu1 %7910 }
 0xfc2   : > { %v7914_v47 = vpop.xlane.xlu0 %7913  ;;  %11005 = vrcp.f32 %v7911_v2 }
 0xfc3   : > { %v11004_v24 = vpop.eup %11003  ;;  %11007 = vrcp.f32 %v7914_v47 }
 0xfc4   : > { %v7970_v23 = vmul.f32 %v11004_v24, %v13618_v33 }
 0xfc6   : > { %v6491_v12 = vpop.permute.xlu0 %6490  ;;  %v7986_v10 = vpack.c.bf16 %v7970_v23, %v7970_v23 }
 0xfc7   : > { %v6650_v17 = vcombine.low %v13611_v32, %v6491_v12  ;;  %v6651_v5 = vcombine.high %v13611_v32, %v6491_v12 }
 0xfc8   : > { %10602 = vmatmul.mubr.msk.bf16.vlgmr.msra.gmra.mrb[112].mxu0 %vm2373_vm2, %v7986_v10 }
 0xfc9   : > { %v6658_v33 = vrot.slane %v6650_v17, %v11530_v41  ;;  %v6665_v38 = vrot.slane %v6651_v5, %v11530_v41  ;;  %10613 = vmatprep.mubr.msk.bf16.mxu0 %vm11187_vm1, %v14192_v48 }
 0xfcb   : > { %v6666_v63 = vcombine.low %v6642_v54, %v6658_v33  ;;  %v6667_v37 = vcombine.high %v6642_v54, %v6658_v33  ;;  %v6682_v61 = vcombine.low %v6649_v58, %v6665_v38  ;;  %v6683_v31 = vcombine.high %v6649_v58, %v6665_v38 }
 0xfcc   : > { %v11006_v51 = vpop.eup %11005 }
 0xfcd   : > { %v7971_v32 = vmul.f32 %v11006_v51, %v13622_v16  ;;  %v6674_v55 = vrot.slane %v6666_v63, %v11544_v60  ;;  %v6681_v52 = vrot.slane %v6667_v37, %v11544_v60  ;;  %v6690_v49 = vrot.slane %v6682_v61, %v11544_v60  ;;  %v11008_v10 = vpop.eup %11007 }
 0xfce   : > { %v6697_v3 = vrot.slane %v6683_v31, %v11544_v60  ;;  %v7972_v51 = vmul.f32 %v11008_v10, %v13624_v19 }
 0xfcf   : > { %v6906_v39 = vcombine.low %v6674_v55, %v6681_v52  ;;  %v9973_v30 = vcombine.high %v6674_v55, %v6681_v52  ;;  %v7987_v15 = vpack.c.bf16 %v7971_v32, %v7971_v32  ;;  %v7917_v13 = vpop.xlane.xlu1 %7916 }
 0xfd0   : > { %v6922_v20 = vcombine.low %v6690_v49, %v6697_v3  ;;  %v9974_v46 = vcombine.high %v6690_v49, %v6697_v3  ;;  %11009 = vrcp.f32 %v7917_v13  ;;  %v7988_v19 = vpack.c.bf16 %v7972_v51, %v7972_v51 }
 0xfd1   : > { %v6913_v27 = vrot.slane %v6906_v39, %v11530_v41  ;;  %v6921_v50 = vrot.slane %v9973_v30, %v11530_v41  ;;  %10608 = vmatmul.mubr.msk.bf16.vlgmr.msra.gmra.mrb[116].mxu1 %vm2373_vm2, %v7987_v15  ;;  %v8006_v30 = vpack.c.bf16 %v13470_v25, %v13470_v25 }
 0xfd2   : > { %v6929_v16 = vrot.slane %v6922_v20, %v11530_v41  ;;  %v6937_v1 = vrot.slane %v9974_v46, %v11530_v41  ;;  %10619 = vmatprep.mubr.msk.bf16.mxu1 %vm11187_vm1, %v14192_v48 }
 0xfd3   : > { %v6938_v9 = vcombine.low %v6913_v27, %v6921_v50  ;;  %v6939_v6 = vcombine.high %v6913_v27, %v6921_v50  ;;  %v6493_v2 = vpop.permute.xlu1 %6492  ;;  %v8206_v25 = vsel %vm3321_vm3, %v8006_v30, 0 }
 0xfd4   : > { %v6954_v47 = vcombine.low %v6929_v16, %v6937_v1  ;;  %v6955_v24 = vcombine.high %v6929_v16, %v6937_v1  ;;  %v6718_v23 = vcombine.low %v13614_v26, %v6493_v2  ;;  %v6719_v0 = vcombine.high %v13614_v26, %v6493_v2 }
 0xfd5   : > { %v13736_v59 = vrot.slane %v6938_v9, %v11544_v60  ;;  %v6953_v12 = vrot.slane %v6939_v6, %v11544_v60 }
 0xfd6   : > { %v6962_v17 = vrot.slane %v6954_v47, %v11544_v60  ;;  %v6969_v5 = vrot.slane %v6955_v24, %v11544_v60  ;;  %v6726_v54 = vrot.slane %v6718_v23, %v11530_v41  ;;  %v6733_v58 = vrot.slane %v6719_v0, %v11530_v41 }
 0xfd8   : > { %v6970_v26 = vcombine.low %v13736_v59, %v6962_v17  ;;  %v13746_v33 = vcombine.low %v6953_v12, %v6969_v5  ;;  %v13748_v38 = vcombine.high %v6953_v12, %v6969_v5  ;;  %v6734_v63 = vcombine.low %v6710_v34, %v6726_v54 }
 0xfd9   : > { %v6735_v37 = vcombine.high %v6710_v34, %v6726_v54  ;;  %v6750_v61 = vcombine.low %v6717_v4, %v6733_v58  ;;  %v6751_v31 = vcombine.high %v6717_v4, %v6733_v58  ;;  %v8007_v12 = vpack.c.bf16 %v13483_v56, %v13483_v56 }
 0xfda   : > { %v8004_v32 = vpack.c.bf16 %v6970_v26, %v6970_v26  ;;  %v6742_v55 = vrot.slane %v6734_v63, %v11544_v60  ;;  %v11010_v2 = vpop.eup %11009  ;;  %v6971_v56 = vcombine.high %v13736_v59, %v6962_v17 }
 0xfdb   : > { %v6749_v52 = vrot.slane %v6735_v37, %v11544_v60  ;;  %v6758_v49 = vrot.slane %v6750_v61, %v11544_v60  ;;  %v6765_v3 = vrot.slane %v6751_v31, %v11544_v60  ;;  %v7973_v24 = vmul.f32 %v11010_v2, %v13631_v11 }
 0xfdc   : > { %v8114_v39 = vsel %vm3321_vm3, %v8004_v32, 0  ;;  %v8252_v5 = vsel %vm3321_vm3, %v8007_v12, 0  ;;  %v8008_v58 = vpack.c.bf16 %v6971_v56, %v6971_v56  ;;  %v8014_v12 = vpack.c.bf16 %v13494_v45, %v13494_v45 }
 0xfdd   : > { %v6974_v15 = vcombine.low %v6742_v55, %v6749_v52  ;;  %v9975_v20 = vcombine.high %v6742_v55, %v6749_v52  ;;  %v6990_v46 = vcombine.low %v6758_v49, %v6765_v3  ;;  %v9976_v27 = vcombine.high %v6758_v49, %v6765_v3  ;;  %10612 = vmatpush3.bf16.msra.mxu0 %v8114_v39 }
 0xfde   : > { %10623 = vmatprep.subr.bf16.mxu0 %v14192_v48  ;;  %v7989_v10 = vpack.c.bf16 %v7973_v24, %v7973_v24  ;;  %v8298_v31 = vsel %vm3321_vm3, %v8008_v58, 0  ;;  %v8574_v56 = vsel %vm3321_vm3, %v8014_v12, 0  ;;  %v8016_v58 = vpack.c.bf16 %v13748_v38, %v13748_v38 }
 0xfdf   : > { %v13760_v13 = vrot.slane %v6974_v15, %v11530_v41  ;;  %v13763_v50 = vrot.slane %v9975_v20, %v11530_v41  ;;  %v13766_v16 = vrot.slane %v6990_v46, %v11530_v41  ;;  %v13769_v1 = vrot.slane %v9976_v27, %v11530_v41 }
 0xfe0   : > { %10614 = vmatmul.mubr.msk.bf16.vlgmr.msra.gmra.mrb[116].mxu0 %vm2373_vm2, %v7988_v19 }
 0xfe1   : > { %10624 = vmatpush3.bf16.msra.mxu0 %v8206_v25  ;;  %v7006_v28 = vcombine.low %v13760_v13, %v13763_v50  ;;  %v7022_v40 = vcombine.low %v13766_v16, %v13769_v1  ;;  %10625 = vmatprep.mubr.msk.bf16.mxu0 %vm11187_vm1, %v14192_v48  ;;  %v7007_v20 = vcombine.high %v13760_v13, %v13763_v50 }
 0xfe2   : > { %10635 = vmatprep.subr.bf16.mxu0 %v14192_v48  ;;  %v7023_v46 = vcombine.high %v13766_v16, %v13769_v1  ;;  %v8011_v25 = vpack.c.bf16 %v13503_v29, %v13503_v29  ;;  %v8012_v13 = vpack.c.bf16 %v13746_v33, %v13746_v33 }
 0xfe3   : > { %v7014_v9 = vrot.slane %v7006_v28, %v11544_v60  ;;  %v7030_v6 = vrot.slane %v7022_v40, %v11544_v60  ;;  %v7021_v1 = vrot.slane %v7007_v20, %v11544_v60 }
 0xfe4   : > { %v7037_v28 = vrot.slane %v7023_v46, %v11544_v60  ;;  %v8436_v29 = vsel %vm3321_vm3, %v8011_v25, 0  ;;  %v8482_v33 = vsel %vm3321_vm3, %v8012_v13, 0 }
 0xfe5   : > { %v7038_v47 = vcombine.low %v7014_v9, %v7030_v6  ;;  %v7039_v32 = vcombine.high %v7014_v9, %v7030_v6 }
 0xfe6   : > { %v7040_v6 = vcombine.low %v7021_v1, %v7037_v28 }
 0xfe7   : > { %v8005_v23 = vpack.c.bf16 %v7038_v47, %v7038_v47  ;;  %v8009_v3 = vpack.c.bf16 %v7039_v32, %v7039_v32 }
 0xfe9   : > { %v8160_v0 = vsel %vm3321_vm3, %v8005_v23, 0  ;;  %v8344_v30 = vsel %vm3321_vm3, %v8009_v3, 0 }
 0xfea   : > { %10618 = vmatpush3.bf16.msra.mxu1 %v8160_v0  ;;  %v8013_v0 = vpack.c.bf16 %v7040_v6, %v7040_v6 }
 0xfeb   : > { %10629 = vmatprep.subr.bf16.mxu1 %v14192_v48 }
 0xfed   : > { %10620 = vmatmul.mubr.msk.bf16.vlgmr.msra.gmra.mrb[120].mxu1 %vm2373_vm2, %v7989_v10 }
 0xfee   : > { %10630 = vmatpush3.bf16.msra.mxu1 %v8252_v5  ;;  %10631 = vmatprep.mubr.msk.bf16.mxu1 %vm11187_vm1, %v14192_v48 }
 0xfef   : > { %10641 = vmatprep.subr.bf16.mxu1 %v14192_v48 }
 0xff7   : > { %v7920_v11 = vpop.xlane.xlu0 %7919 }
 0xff8   : > { %11011 = vrcp.f32 %v7920_v11 }
 0xffb   : > { %v7926_v34 = vpop.xlane.xlu0 %7925 }
 0xffc   : > { %11013 = vrcp.f32 %v7926_v34  ;;  %v8528_v34 = vsel %vm3321_vm3, %v8013_v0, 0 }
 0xfff   : > { %v7929_v61 = vpop.xlane.xlu0 %7928 }
0x1002   : > { %v11012_v4 = vpop.eup %11011 }
0x1003   : > { %v7974_v54 = vmul.f32 %v11012_v4, %v13643_v22  ;;  %v8010_v22 = vpack.c.bf16 %v13489_v8, %v13489_v8 }
0x1004   : > { %v7923_v26 = vpop.xlane.xlu1 %7922 }
0x1005   : > { %v7990_v63 = vpack.c.bf16 %v7974_v54, %v7974_v54  ;;  %11015 = vrcp.f32 %v7923_v26  ;;  %v8390_v55 = vsel %vm3321_vm3, %v8010_v22, 0  ;;  %v8015_v54 = vpack.c.bf16 %v13505_v35, %v13505_v35 }
0x1006   : > { %v11014_v37 = vpop.eup %11013  ;;  %11017 = vrcp.f32 %v7929_v61  ;;  %v8666_v61 = vsel %vm3321_vm3, %v8016_v58, 0 }
0x1007   : > { %10626 = vmatmul.mubr.msk.bf16.vlgmr.msra.gmra.mrb[120].mxu0 %vm2373_vm2, %v7990_v63  ;;  %v7976_v51 = vmul.f32 %v11014_v37, %v13647_v53  ;;  %v8620_v37 = vsel %vm3321_vm3, %v8015_v54, 0 }
0x1008   : > { %10636 = vmatpush3.bf16.msra.mxu0 %v8298_v31  ;;  %10637 = vmatprep.mubr.msk.bf16.mxu0 %vm11187_vm1, %v14192_v48  ;;  %v7041_v31 = vcombine.high %v7021_v1, %v7037_v28 }
0x1009   : > { %10647 = vmatprep.subr.bf16.mxu0 %v14192_v48  ;;  %v7992_v17 = vpack.c.bf16 %v7976_v51, %v7976_v51 }
0x100a   : > { %v8017_v51 = vpack.c.bf16 %v7041_v31, %v7041_v31 }
0x100c   : > { %v7932_v59 = vpop.xlane.xlu0 %7931 }
0x100d   : > { %11019 = vrcp.f32 %v7932_v59 }
0x100f   : > { %10638 = vmatmul.mubr.msk.bf16.vlgmr.msra.gmra.mrb[124].mxu0 %vm2373_vm2, %v7992_v17  ;;  %v11016_v52 = vpop.eup %11015 }
0x1010   : > { %10648 = vmatpush3.bf16.msra.mxu0 %v8390_v55  ;;  %10649 = vmatprep.mubr.msk.bf16.mxu0 %vm11187_vm1, %v14192_v48  ;;  %v7975_v53 = vmul.f32 %v11016_v52, %v13660_v18  ;;  %v7938_v49 = vpop.xlane.xlu0 %7937  ;;  %v11018_v39 = vpop.eup %11017 }
0x1011   : > { %10659 = vmatprep.subr.bf16.mxu0 %v14192_v48  ;;  %11021 = vrcp.f32 %v7938_v49  ;;  %v7977_v27 = vmul.f32 %v11018_v39, %v13653_v14 }
0x1012   : > { %v7991_v8 = vpack.c.bf16 %v7975_v53, %v7975_v53 }
0x1013   : > { %v7993_v40 = vpack.c.bf16 %v7977_v27, %v7977_v27 }
0x1014   : > { %10632 = vmatmul.mubr.msk.bf16.vlgmr.msra.gmra.mrb[124].mxu1 %vm2373_vm2, %v7991_v8  ;;  %v7935_v15 = vpop.xlane.xlu1 %7934 }
0x1015   : > { %10642 = vmatpush3.bf16.msra.mxu1 %v8344_v30  ;;  %11023 = vrcp.f32 %v7935_v15  ;;  %v7944_v18 = vpop.xlane.xlu0 %7943  ;;  %10643 = vmatprep.mubr.msk.bf16.mxu1 %vm11187_vm1, %v14192_v48 }
0x1016   : > { %10653 = vmatprep.subr.bf16.mxu1 %v14192_v48  ;;  %11025 = vrcp.f32 %v7944_v18 }
0x1017   : > { %v11020_v19 = vpop.eup %11019 }
0x1018   : > { %v7978_v50 = vmul.f32 %v11020_v19, %v13669_v42  ;;  %v7941_v16 = vpop.xlane.xlu1 %7940 }
0x1019   : > { %11027 = vrcp.f32 %v7941_v16  ;;  %v7950_v42 = vpop.xlane.xlu0 %7949 }
0x101a   : > { %v7994_v14 = vpack.c.bf16 %v7978_v50, %v7978_v50  ;;  %11029 = vrcp.f32 %v7950_v42 }
0x101b   : > { %v11022_v9 = vpop.eup %11021 }
0x101c   : > { %10644 = vmatmul.mubr.msk.bf16.vlgmr.msra.gmra.mrb[128].mxu1 %vm2373_vm2, %v7993_v40  ;;  %10650 = vmatmul.mubr.msk.bf16.vlgmr.msra.gmra.mrb[128].mxu0 %vm2373_vm2, %v7994_v14  ;;  %v7980_v2 = vmul.f32 %v11022_v9, %v13674_v62  ;;  %v7947_v47 = vpop.xlane.xlu1 %7946 }
0x101d   : > { %10654 = vmatpush3.bf16.msra.mxu1 %v8436_v29  ;;  %10660 = vmatpush3.bf16.msra.mxu0 %v8482_v33  ;;  %11031 = vrcp.f32 %v7947_v47 }
0x101e   : > { %10655 = vmatprep.mubr.msk.bf16.mxu1 %vm11187_vm1, %v14192_v48  ;;  %10661 = vmatprep.mubr.msk.bf16.mxu0 %vm11187_vm1, %v14192_v48  ;;  %v7996_v5 = vpack.c.bf16 %v7980_v2, %v7980_v2 }
0x101f   : > { %v11024_v24 = vpop.eup %11023  ;;  %10665 = vmatprep.subr.bf16.mxu1 %v14192_v48  ;;  %10671 = vmatprep.subr.bf16.mxu0 %v14192_v48 }
0x1020   : > { %v7979_v23 = vmul.f32 %v11024_v24, %v13679_v36  ;;  %v11026_v62 = vpop.eup %11025  ;;  %v7953_v45 = vpop.xlane.xlu1 %7952 }
0x1021   : > { %v7982_v36 = vmul.f32 %v11026_v62, %v13681_v57  ;;  %11033 = vrcp.f32 %v7953_v45 }
0x1022   : > { %v7995_v10 = vpack.c.bf16 %v7979_v23, %v7979_v23 }
0x1023   : > { %v11028_v11 = vpop.eup %11027  ;;  %v7998_v26 = vpack.c.bf16 %v7982_v36, %v7982_v36 }
0x1024   : > { %10656 = vmatmul.mubr.msk.bf16.vlgmr.msra.gmra.mrb[132].mxu1 %vm2373_vm2, %v7995_v10  ;;  %10662 = vmatmul.mubr.msk.bf16.vlgmr.msra.gmra.mrb[132].mxu0 %vm2373_vm2, %v7996_v5  ;;  %v7981_v4 = vmul.f32 %v11028_v11, %v13687_v43  ;;  %v11030_v57 = vpop.eup %11029 }
0x1025   : > { %10666 = vmatpush3.bf16.msra.mxu1 %v8528_v34  ;;  %10672 = vmatpush3.bf16.msra.mxu0 %v8574_v56  ;;  %v7984_v35 = vmul.f32 %v11030_v57, %v13689_v7  ;;  %v8712_v7 = vsel %vm3321_vm3, %v8017_v51, 0 }
0x1026   : > { %10667 = vmatprep.mubr.msk.bf16.mxu1 %vm11187_vm1, %v14192_v48  ;;  %10673 = vmatprep.mubr.msk.bf16.mxu0 %vm11187_vm1, %v14192_v48  ;;  %v7997_v43 = vpack.c.bf16 %v7981_v4, %v7981_v4 }
0x1027   : > { %10677 = vmatprep.subr.bf16.mxu1 %v14192_v48  ;;  %10683 = vmatprep.subr.bf16.mxu0 %v14192_v48  ;;  %v11032_v63 = vpop.eup %11031  ;;  %v8000_v59 = vpack.c.bf16 %v7984_v35, %v7984_v35 }
0x1028   : > { %v7983_v38 = vmul.f32 %v11032_v63, %v13695_v44 }
0x102a   : > { %v7999_v22 = vpack.c.bf16 %v7983_v38, %v7983_v38 }
0x102b   : > { %v11034_v17 = vpop.eup %11033 }
0x102c   : > { %10668 = vmatmul.mubr.msk.bf16.vlgmr.msra.gmra.mrb[136].mxu1 %vm2373_vm2, %v7997_v43  ;;  %10674 = vmatmul.mubr.msk.bf16.vlgmr.msra.gmra.mrb[136].mxu0 %vm2373_vm2, %v7998_v26  ;;  %v7985_v44 = vmul.f32 %v11034_v17, %v13699_v21 }
0x102d   : > { %10678 = vmatpush3.bf16.msra.mxu1 %v8620_v37  ;;  %10684 = vmatpush3.bf16.msra.mxu0 %v8666_v61 }
0x102e   : > { %10679 = vmatprep.mubr.msk.bf16.mxu1 %vm11187_vm1, %v14192_v48  ;;  %10685 = vmatprep.mubr.msk.bf16.mxu0 %vm11187_vm1, %v14192_v48  ;;  %v8001_v32 = vpack.c.bf16 %v7985_v44, %v7985_v44 }
0x102f   : > { %10689 = vmatprep.subr.bf16.mxu1 %v14192_v48 }
0x1034   : > { %10680 = vmatmul.mubr.msk.bf16.vlgmr.msra.gmra.mrb[140].mxu1 %vm2373_vm2, %v7999_v22  ;;  %10686 = vmatmul.mubr.msk.bf16.vlgmr.msra.gmra.mrb[140].mxu0 %vm2373_vm2, %v8000_v59 }
0x1035   : > { %10690 = vmatpush3.bf16.msra.mxu1 %v8712_v7  ;;  %10691 = vmatprep.mubr.msk.bf16.mxu1 %vm11187_vm1, %v14192_v48 }
0x103c   : > { %10692 = vmatmul.mubr.msk.bf16.vlgmr.msra.gmra.mrb[144].mxu1 %vm2373_vm2, %v8001_v32 }
0x109b   : > { %v8058_v55 = vpop.f32.mrb[112].mxu0 }
0x109c   : > { %v10603_v52 = vpop.f32.mrb[113].mxu0 }
0x109d   : > { %v8061_v53 = vpop.f32.mrb[114].mxu0 }
0x109e   : > { %v10604_v49 = vpop.f32.mrb[115].mxu0 }
0x10a4   : > { %v13873_v3 = vpop.f32.mrb[116].mxu1 }
0x10a5   : > { %v10609_v8 = vpop.f32.mrb[117].mxu1 }
0x10a6   : > { %v8107_v39 = vpop.f32.mrb[118].mxu1 }
0x10a7   : > { %v10610_v30 = vpop.f32.mrb[119].mxu1 }
0x10b3   : > { %v13875_v15 = vpop.f32.mrb[116].mxu0 }
0x10b4   : > { %v10615_v20 = vpop.f32.mrb[117].mxu0 }
0x10b5   : > { %v8153_v46 = vpop.f32.mrb[118].mxu0 }
0x10b6   : > { %v10616_v18 = vpop.f32.mrb[119].mxu0 }
0x10c0   : > { %v13877_v48 = vpop.f32.mrb[120].mxu1 }
0x10c1   : > { %v10621_v21 = vpop.f32.mrb[121].mxu1 }
0x10c2   : > { %v8199_v27 = vpop.f32.mrb[122].mxu1 }
0x10c3   : > { %v10622_v19 = vpop.f32.mrb[123].mxu1 }
0x10da   : > { %v8242_v25 = vpop.f32.mrb[120].mxu0 }
0x10db   : > { %v10627_v13 = vpop.f32.mrb[121].mxu0 }
0x10dc   : > { %v8245_v50 = vpop.f32.mrb[122].mxu0 }
0x10dd   : > { %v10628_v16 = vpop.f32.mrb[123].mxu0 }
0x10e2   : > { %v13879_v1 = vpop.f32.mrb[124].mxu0 }
0x10e3   : > { %v10639_v28 = vpop.f32.mrb[125].mxu0 }
0x10e4   : > { %v8337_v40 = vpop.f32.mrb[126].mxu0 }
0x10e5   : > { %v10640_v14 = vpop.f32.mrb[127].mxu0 }
0x10e7   : > { %v13881_v9 = vpop.f32.mrb[124].mxu1 }
0x10e8   : > { %v10633_v29 = vpop.f32.mrb[125].mxu1 }
0x10e9   : > { %v8291_v33 = vpop.f32.mrb[126].mxu1 }
0x10ea   : > { %v10634_v6 = vpop.f32.mrb[127].mxu1 }
0x10ef   : > { %v13883_v42 = vpop.f32.mrb[128].mxu1  ;;  %v8426_v2 = vpop.f32.mrb[128].mxu0 }
0x10f0   : > { %v8754_v47 = vcombine.low %v8058_v55, %v8426_v2  ;;  %v8755_v24 = vcombine.high %v8058_v55, %v8426_v2  ;;  %v10645_v23 = vpop.f32.mrb[129].mxu1  ;;  %v10651_v0 = vpop.f32.mrb[129].mxu0 }
0x10f1   : > { %v8383_v12 = vpop.f32.mrb[130].mxu1  ;;  %v8429_v62 = vpop.f32.mrb[130].mxu0 }
0x10f2   : > { %v10646_v10 = vpop.f32.mrb[131].mxu1  ;;  %v10652_v5 = vpop.f32.mrb[131].mxu0  ;;  %v8762_v44 = vrot.slane %v8754_v47, %v11530_v41  ;;  %v8769_v32 = vrot.slane %v8755_v24, %v11530_v41 }
0x10f7   : > { %v8472_v11 = vpop.f32.mrb[132].mxu1  ;;  %v8518_v34 = vpop.f32.mrb[132].mxu0 }
0x10f8   : > { %v8822_v56 = vcombine.low %v13873_v3, %v8472_v11  ;;  %v8823_v36 = vcombine.high %v13873_v3, %v8472_v11  ;;  %v8890_v4 = vcombine.low %v13875_v15, %v8518_v34  ;;  %v8891_v45 = vcombine.high %v13875_v15, %v8518_v34  ;;  %v10657_v54 = vpop.f32.mrb[133].mxu1  ;;  %v10663_v58 = vpop.f32.mrb[133].mxu0 }
0x10f9   : > { %v8475_v57 = vpop.f32.mrb[134].mxu1  ;;  %v8521_v43 = vpop.f32.mrb[134].mxu0 }
0x10fa   : > { %v10658_v26 = vpop.f32.mrb[135].mxu1  ;;  %v10664_v63 = vpop.f32.mrb[135].mxu0  ;;  %v8830_v15 = vrot.slane %v8822_v56, %v11530_v41  ;;  %v8837_v20 = vrot.slane %v8823_v36, %v11530_v41  ;;  %v8898_v27 = vrot.slane %v8890_v4, %v11530_v41  ;;  %v8905_v19 = vrot.slane %v8891_v45, %v11530_v41 }
0x10ff   : > { %v8564_v37 = vpop.f32.mrb[136].mxu1  ;;  %v8610_v61 = vpop.f32.mrb[136].mxu0 }
0x1100   : > { %v8958_v31 = vcombine.low %v13877_v48, %v8564_v37  ;;  %v8959_v35 = vcombine.high %v13877_v48, %v8564_v37  ;;  %v8770_v38 = vcombine.low %v8242_v25, %v8610_v61  ;;  %v8771_v51 = vcombine.high %v8242_v25, %v8610_v61  ;;  %v10669_v22 = vpop.f32.mrb[137].mxu1  ;;  %v10675_v59 = vpop.f32.mrb[137].mxu0 }
0x1101   : > { %v8567_v17 = vpop.f32.mrb[138].mxu1  ;;  %v8613_v7 = vpop.f32.mrb[138].mxu0 }
0x1102   : > { %v8778_v55 = vrot.slane %v8770_v38, %v11530_v41  ;;  %v8785_v52 = vrot.slane %v8771_v51, %v11530_v41  ;;  %v10670_v53 = vpop.f32.mrb[139].mxu1  ;;  %v10676_v49 = vpop.f32.mrb[139].mxu0  ;;  %v13904_v25 = vrot.slane %v8958_v31, %v11530_v41  ;;  %v13907_v13 = vrot.slane %v8959_v35, %v11530_v41 }
0x1104   : > { %v8786_v3 = vcombine.low %v8762_v44, %v8778_v55  ;;  %v8787_v8 = vcombine.high %v8762_v44, %v8778_v55  ;;  %v8802_v39 = vcombine.low %v8769_v32, %v8785_v52  ;;  %v8803_v30 = vcombine.high %v8769_v32, %v8785_v52 }
0x1106   : > { %v8794_v46 = vrot.slane %v8786_v3, %v11544_v60  ;;  %v8801_v18 = vrot.slane %v8787_v8, %v11544_v60  ;;  %v8810_v48 = vrot.slane %v8802_v39, %v11544_v60  ;;  %v8817_v21 = vrot.slane %v8803_v30, %v11544_v60 }
0x1107   : > { %v8656_v50 = vpop.f32.mrb[140].mxu1  ;;  %v8702_v16 = vpop.f32.mrb[140].mxu0 }
0x1108   : > { %v9026_v28 = vcombine.low %v8794_v46, %v8801_v18  ;;  %v10009_v40 = vcombine.high %v8794_v46, %v8801_v18  ;;  %v9042_v14 = vcombine.low %v8810_v48, %v8817_v21  ;;  %v10010_v29 = vcombine.high %v8810_v48, %v8817_v21  ;;  %v10681_v33 = vpop.f32.mrb[141].mxu1  ;;  %v10687_v6 = vpop.f32.mrb[141].mxu0 }
0x1109   : > { %v8838_v2 = vcombine.low %v13881_v9, %v8656_v50  ;;  %v8839_v47 = vcombine.high %v13881_v9, %v8656_v50  ;;  %v8906_v24 = vcombine.low %v13879_v1, %v8702_v16  ;;  %v8907_v23 = vcombine.high %v13879_v1, %v8702_v16  ;;  %v8659_v0 = vpop.f32.mrb[142].mxu1  ;;  %v8705_v12 = vpop.f32.mrb[142].mxu0 }
0x110a   : > { %v9033_v62 = vrot.slane %v9026_v28, %v11530_v41  ;;  %v9041_v10 = vrot.slane %v10009_v40, %v11530_v41  ;;  %v9049_v5 = vrot.slane %v9042_v14, %v11530_v41  ;;  %v9057_v11 = vrot.slane %v10010_v29, %v11530_v41  ;;  %v10682_v34 = vpop.f32.mrb[143].mxu1  ;;  %v10688_v56 = vpop.f32.mrb[143].mxu0 }
0x110b   : > { %v8846_v36 = vrot.slane %v8838_v2, %v11530_v41  ;;  %v8853_v9 = vrot.slane %v8839_v47, %v11530_v41  ;;  %v8914_v4 = vrot.slane %v8906_v24, %v11530_v41  ;;  %v8921_v1 = vrot.slane %v8907_v23, %v11530_v41 }
0x110c   : > { %v9059_v45 = vcombine.high %v9033_v62, %v9041_v10  ;;  %v9075_v54 = vcombine.high %v9049_v5, %v9057_v11  ;;  %v9058_v58 = vcombine.low %v9033_v62, %v9041_v10  ;;  %v9074_v57 = vcombine.low %v9049_v5, %v9057_v11 }
0x110d   : > { %v8854_v43 = vcombine.low %v8830_v15, %v8846_v36  ;;  %v8855_v26 = vcombine.high %v8830_v15, %v8846_v36  ;;  %v8870_v63 = vcombine.low %v8837_v20, %v8853_v9  ;;  %v8871_v37 = vcombine.high %v8837_v20, %v8853_v9 }
0x110e   : > { %v8922_v61 = vcombine.low %v8898_v27, %v8914_v4  ;;  %v8923_v31 = vcombine.high %v8898_v27, %v8914_v4  ;;  %v8938_v35 = vcombine.low %v8905_v19, %v8921_v1  ;;  %v8939_v38 = vcombine.high %v8905_v19, %v8921_v1 }
0x110f   : > { %v8862_v51 = vrot.slane %v8854_v43, %v11544_v60  ;;  %v8869_v22 = vrot.slane %v8855_v26, %v11544_v60  ;;  %v8878_v59 = vrot.slane %v8870_v63, %v11544_v60  ;;  %v8885_v17 = vrot.slane %v8871_v37, %v11544_v60  ;;  %v8748_v7 = vpop.f32.mrb[144].mxu1 }
0x1110   : > { %v8930_v44 = vrot.slane %v8922_v61, %v11544_v60  ;;  %v8937_v32 = vrot.slane %v8923_v31, %v11544_v60  ;;  %v8946_v55 = vrot.slane %v8938_v35, %v11544_v60  ;;  %v8953_v52 = vrot.slane %v8939_v38, %v11544_v60  ;;  %v10693_v53 = vpop.f32.mrb[145].mxu1 }
0x1111   : > { %v9094_v49 = vcombine.low %v8862_v51, %v8869_v22  ;;  %v10011_v3 = vcombine.high %v8862_v51, %v8869_v22  ;;  %v9110_v8 = vcombine.low %v8878_v59, %v8885_v17  ;;  %v10012_v39 = vcombine.high %v8878_v59, %v8885_v17  ;;  %v8751_v30 = vpop.f32.mrb[146].mxu1 }
0x1112   : > { %v9162_v15 = vcombine.low %v8930_v44, %v8937_v32  ;;  %v10013_v20 = vcombine.high %v8930_v44, %v8937_v32  ;;  %v9178_v46 = vcombine.low %v8946_v55, %v8953_v52  ;;  %v10014_v18 = vcombine.high %v8946_v55, %v8953_v52  ;;  %v10694_v48 = vpop.f32.mrb[147].mxu1 }
0x1113   : > { %v9101_v21 = vrot.slane %v9094_v49, %v11530_v41  ;;  %v9109_v27 = vrot.slane %v10011_v3, %v11530_v41  ;;  %v9117_v19 = vrot.slane %v9110_v8, %v11530_v41  ;;  %v9125_v50 = vrot.slane %v10012_v39, %v11530_v41 }
0x1114   : > { %v9169_v16 = vrot.slane %v9162_v15, %v11530_v41  ;;  %v9177_v28 = vrot.slane %v10013_v20, %v11530_v41  ;;  %v9185_v40 = vrot.slane %v9178_v46, %v11530_v41  ;;  %v9193_v14 = vrot.slane %v10014_v18, %v11530_v41 }
0x1115   : > { %v8974_v29 = vcombine.low %v13883_v42, %v8748_v7  ;;  %v8975_v33 = vcombine.high %v13883_v42, %v8748_v7  ;;  %v9073_v6 = vrot.slane %v9059_v45, %v11544_v60  ;;  %v9089_v2 = vrot.slane %v9075_v54, %v11544_v60 }
0x1116   : > { %v9127_v47 = vcombine.high %v9101_v21, %v9109_v27  ;;  %v9143_v24 = vcombine.high %v9117_v19, %v9125_v50  ;;  %v13942_v23 = vrot.slane %v9058_v58, %v11544_v60  ;;  %v13945_v0 = vrot.slane %v9074_v57, %v11544_v60 }
0x1117   : > { %v8982_v12 = vrot.slane %v8974_v29, %v11530_v41  ;;  %v8989_v62 = vrot.slane %v8975_v33, %v11530_v41  ;;  %v9092_v10 = vcombine.low %v9073_v6, %v9089_v2  ;;  %v9126_v5 = vcombine.low %v9101_v21, %v9109_v27  ;;  %v10875_v27 = vld [vmem:[%s14140_s1 + $0x70] sm:$0xff]  }
0x1118   : > { %v9141_v42 = vrot.slane %v9127_v47, %v11544_v60  ;;  %v9157_v11 = vrot.slane %v9143_v24, %v11544_v60  ;;  %v9091_v34 = vcombine.high %v13942_v23, %v13945_v0  ;;  %v9142_v56 = vcombine.low %v9117_v19, %v9125_v50  ;;  %10695 = vmatprep.subr.bf16.mxu0 %v10875_v27 }
0x1119   : > { %v8990_v36 = vcombine.low %v13904_v25, %v8982_v12  ;;  %v8991_v9 = vcombine.high %v13904_v25, %v8982_v12  ;;  %v9006_v4 = vcombine.low %v13907_v13, %v8989_v62  ;;  %v9007_v1 = vcombine.high %v13907_v13, %v8989_v62  ;;  %10696 = vmatpush3.bf16.msra.mxu0 %v10875_v27 }
0x111a   : > { %v9160_v45 = vcombine.low %v9141_v42, %v9157_v11  ;;  %v13958_v54 = vrot.slane %v9126_v5, %v11544_v60  ;;  %v13961_v58 = vrot.slane %v9142_v56, %v11544_v60  ;;  %v9093_v57 = vcombine.high %v9073_v6, %v9089_v2 }
0x111b   : > { %v8998_v43 = vrot.slane %v8990_v36, %v11544_v60  ;;  %v9005_v26 = vrot.slane %v8991_v9, %v11544_v60  ;;  %v9014_v63 = vrot.slane %v9006_v4, %v11544_v60  ;;  %v9021_v25 = vrot.slane %v9007_v1, %v11544_v60 }
0x111c   : > { %v10830_v37 = vpack.i.bf16 %v9160_v45, %v9092_v10  ;;  %v9159_v13 = vcombine.high %v13958_v54, %v13961_v58  ;;  %v9161_v61 = vcombine.high %v9141_v42, %v9157_v11  ;;  %v9194_v31 = vcombine.low %v9169_v16, %v9177_v28 }
0x111d   : > { %v9230_v35 = vcombine.low %v8998_v43, %v9005_v26  ;;  %v10015_v38 = vcombine.high %v8998_v43, %v9005_v26  ;;  %v9246_v51 = vcombine.low %v9014_v63, %v9021_v25  ;;  %v10016_v22 = vcombine.high %v9014_v63, %v9021_v25 }
0x111e   : > { %10831 = vrot.lane.b32.xlu1 %v10830_v37, %s11190_s29  ;;  %v10825_v59 = vpack.i.bf16 %v9159_v13, %v9091_v34  ;;  %v10835_v17 = vpack.i.bf16 %v9161_v61, %v9093_v57  ;;  %v13971_v7 = vrot.slane %v9194_v31, %v11544_v60  ;;  %v9210_v44 = vcombine.low %v9185_v40, %v9193_v14 }
0x111f   : > { %v9237_v32 = vrot.slane %v9230_v35, %v11530_v41  ;;  %v9245_v55 = vrot.slane %v10015_v38, %v11530_v41  ;;  %v9253_v52 = vrot.slane %v9246_v51, %v11530_v41  ;;  %v9261_v53 = vrot.slane %v10016_v22, %v11530_v41 }
0x1120   : > { %10826 = vrot.lane.b32.xlu0 %v10825_v59, %s11191_s19  ;;  %v13979_v49 = vrot.slane %v9210_v44, %v11544_v60  ;;  %v9195_v3 = vcombine.high %v9169_v16, %v9177_v28  ;;  %v9211_v8 = vcombine.high %v9185_v40, %v9193_v14  ;;  %v9090_v39 = vcombine.low %v13942_v23, %v13945_v0 }
0x1121   : > { %v9262_v30 = vcombine.low %v9237_v32, %v9245_v55  ;;  %v9278_v15 = vcombine.low %v9253_v52, %v9261_v53  ;;  %v9263_v20 = vcombine.high %v9237_v32, %v9245_v55  ;;  %v9279_v46 = vcombine.high %v9253_v52, %v9261_v53  ;;  %v10021_v32 = vld [vmem:[%s14143_s4 + $0x13] ss:$0 sm:$0xff] }
0x1122   : > { %v9227_v18 = vcombine.high %v13971_v7, %v13979_v49  ;;  %v9209_v48 = vrot.slane %v9195_v3, %v11544_v60  ;;  %v9225_v41 = vrot.slane %v9211_v8, %v11544_v60  ;;  %v9158_v21 = vcombine.low %v13958_v54, %v13961_v58 }
0x1123   : > { %v9270_v19 = vrot.slane %v9262_v30, %v11544_v60  ;;  %v9286_v50 = vrot.slane %v9278_v15, %v11544_v60  ;;  %v9277_v16 = vrot.slane %v9263_v20, %v11544_v60  ;;  %v9293_v28 = vrot.slane %v9279_v46, %v11544_v60  ;;  %v10876_v60 = vld [vmem:[%s14140_s1 + $0x78] sm:$0xff]  }
0x1124   : > { %10836 = vrot.lane.b32.xlu0 %v10835_v17, %s11192_s20  ;;  %v9228_v40 = vcombine.low %v9209_v48, %v9225_v41  ;;  %v9229_v14 = vcombine.high %v9209_v48, %v9225_v41  ;;  %v9226_v29 = vcombine.low %v13971_v7, %v13979_v49  ;;  %10697 = vmatprep.subr.bf16.mxu0 %v10876_v60  ;;  %v14227_v20 = vld [vmem:[#allocation14_spill] sm:$0xff]  ;;  %v14228_v48 = vld [vmem:[#allocation15_spill] sm:$0xff] }
0x1125   : > { %v9295_v33 = vcombine.high %v9270_v19, %v9286_v50  ;;  %v9296_v6 = vcombine.low %v9277_v16, %v9293_v28  ;;  %v9297_v2 = vcombine.high %v9277_v16, %v9293_v28  ;;  %v9294_v47 = vcombine.low %v9270_v19, %v9286_v50  ;;  %10698 = vmatpush3.bf16.msra.mxu0 %v10876_v60  ;;  %v14229_v19 = vld [vmem:[#allocation16_spill] sm:$0xff] }
0x1127   : > { %v10840_v24 = vpack.i.bf16 %v9295_v33, %v9227_v18  ;;  %v10845_v23 = vpack.i.bf16 %v9296_v6, %v9228_v40  ;;  %v10850_v0 = vpack.i.bf16 %v9297_v2, %v9229_v14 }
0x1129   : > { %10841 = vrot.lane.b32.xlu1 %v10840_v24, %s11191_s19 }
0x112d   : > { %10846 = vrot.lane.b32.xlu1 %v10845_v23, %s11190_s29  ;;  %s11193_s29 = smov [#allocation7]  }
0x1131   : > { %10851 = vrot.lane.b32.xlu1 %v10850_v0, %s11192_s20  ;;  %s11109_s20 = sshll.u32 %s11193_s29, 4  ;;  %s11110_s20 = int_to_ptr.vmem [resolvable:$false] %s11109_s20 }
0x1132   : > { %s11111_s10 = scalar_lea.vmem %s11110_s20, 1024  ;;  %p11112_p10 = scmp.lt.s32.totalorder %s14084_s8, %s11110_s20 }
0x1133   : > { %p11113_p13 = scmp.lt.s32.totalorder %s11111_s10, %s11105_s15 }
0x1135   : > { %p11114_p3 = por %p11113_p13, %p11112_p10 }
0x1137   : > { %p11115_p7 = pnand %p11114_p3, %p11108_p8 }
0x1190   : > { %v10832_v12 = vpop.permute.xlu1 %10831 }
0x1191   : > { %v10834_v42 = vunpack.i.h.bf16 %v10832_v12  ;;  %v10833_v11 = vunpack.i.l.bf16 %v10832_v12 }
0x1192   : > { %v10827_v62 = vpop.permute.xlu0 %10826 }
0x1193   : > { %v10829_v10 = vunpack.i.h.bf16 %v10827_v62  ;;  %v10828_v5 = vunpack.i.l.bf16 %v10827_v62 }
0x1195   : > { %v9347_v34 = vsel %vm2373_vm2, %v9158_v21, %v10829_v10  ;;  %v9346_v56 = vsel %vm2373_vm2, %v9090_v39, %v10828_v5  ;;  %v14226_v39 = vld [vmem:[#allocation13_spill] sm:$0xff] }
0x1196   : > { %v10837_v36 = vpop.permute.xlu0 %10836  ;;  %v9350_v1 = vsel %vm4651_vm4, %v9346_v56, %v10833_v11  ;;  %v9351_v45 = vsel %vm4651_vm4, %v9347_v34, %v10834_v42 }
0x1197   : > { %v10839_v9 = vunpack.i.h.bf16 %v10837_v36  ;;  %v10838_v4 = vunpack.i.l.bf16 %v10837_v36 }
0x1199   : > { %v9354_v54 = vsel %vm4656_vm5, %v9350_v1, %v10838_v4  ;;  %v9355_v58 = vsel %vm4656_vm5, %v9351_v45, %v10839_v9  ;;  %v10877_v9 = vld [vmem:[#allocation5 + $0x10] sm:$0xff]   ;;  %v10878_v4 = vld [vmem:[#allocation5 + $0x18] sm:$0xff]   ;;  %v10879_v1 = vld [vmem:[%s14142_s3 + $0x20] sm:$0xff]  }
0x119a   : > { %v9358_v57 = vpack.c.bf16 %v9355_v58, %v9354_v54  ;;  %10703 = vmatprep.subr.bf16.mxu1 %v10877_v9  ;;  %v10880_v45 = vld [vmem:[%s14142_s3 + $0x28] sm:$0xff]   ;;  %10711 = vmatprep.subr.bf16.mxu0 %v10879_v1 }
0x119b   : > { %v10842_v43 = vpop.permute.xlu1 %10841  ;;  %10704 = vmatpush3.bf16.msra.mxu1 %v10877_v9 }
0x119c   : > { %10699 = vmatprep.mubr.msk.bf16.mxu0 %vm302_vm0, %v9358_v57  ;;  %v10844_v63 = vunpack.i.h.bf16 %v10842_v43  ;;  %v10843_v25 = vunpack.i.l.bf16 %v10842_v43  ;;  %10705 = vmatprep.subr.bf16.mxu1 %v10878_v4 }
0x119e   : > { %v9349_v31 = vsel %vm2373_vm2, %v9294_v47, %v10844_v63  ;;  %v9348_v35 = vsel %vm2373_vm2, %v9226_v29, %v10843_v25 }
0x119f   : > { %v10847_v26 = vpop.permute.xlu1 %10846  ;;  %10706 = vmatpush3.bf16.msra.mxu1 %v10878_v4 }
0x11a0   : > { %v10849_v37 = vunpack.i.h.bf16 %v10847_v26  ;;  %v10848_v13 = vunpack.i.l.bf16 %v10847_v26 }
0x11a2   : > { %v9352_v22 = vsel %vm4651_vm4, %v9348_v35, %v10848_v13  ;;  %v9353_v59 = vsel %vm4651_vm4, %v9349_v31, %v10849_v37 }
0x11a3   : > { %v10852_v61 = vpop.permute.xlu1 %10851 }
0x11a4   : > { %v10854_v38 = vunpack.i.h.bf16 %v10852_v61  ;;  %v10853_v51 = vunpack.i.l.bf16 %v10852_v61 }
0x11a6   : > { %v9356_v17 = vsel %vm4656_vm5, %v9352_v22, %v10853_v51  ;;  %v9357_v7 = vsel %vm4656_vm5, %v9353_v59, %v10854_v38  ;;  %v10026_v51 = vld [vmem:[%s14143_s4 + $0x16] ss:$0 sm:$0xff] }
0x11a7   : > { %v9359_v44 = vpack.c.bf16 %v9357_v7, %v9356_v17 }
0x11a9   : > { %10700 = vmatmul.mubr.msk.bf16.vlgmr.msra.gmra.mrb[144].mxu0 %vm302_vm0, %v9359_v44 }
0x11aa   : > { %10712 = vmatpush3.bf16.msra.mxu0 %v10879_v1 }
0x11ab   : > { %10713 = vmatprep.subr.bf16.mxu0 %v10880_v45 }
0x11ae   : > { %10714 = vmatpush3.bf16.msra.mxu0 %v10880_v45 }
0x127c   : > { %v10701_v55 = vpop.f32.mrb[144].mxu0 }
0x127d   : > { %v9421_v52 = vpop.f32.mrb[145].mxu0  ;;  %v9430_v53 = vadd.f32 %v10701_v55, %v10021_v32 }
0x127e   : > { %v9422_v49 = vadd.f32 %v10021_v32, %v9421_v52  ;;  %v10702_v3 = vpop.f32.mrb[146].mxu0 }
0x127f   : > { %v9424_v8 = vpop.f32.mrb[147].mxu0  ;;  %v14026_v46 = vadd.f32 %v9430_v53, %v14227_v20  ;;  %v9433_v18 = vadd.f32 %v10702_v3, %v10021_v32 }
0x1280   : > { %v14023_v30 = vadd.f32 %v9422_v49, %v14226_v39  ;;  %v9425_v15 = vadd.f32 %v10021_v32, %v9424_v8  ;;  %v10027_v32 = vld [vmem:[%s14143_s4 + $0x17] ss:$0 sm:$0xff] }
0x1281   : > { %v14036_v50 = vadd.f32 %v9433_v18, %v14229_v19  ;;  %v9446_v16 = vsel %vm302_vm0, %v14026_v46, 0.0  ;;  %v10882_v19 = vld [vmem:[%s14142_s3 + $0x38] sm:$0xff]  }
0x1282   : > { %v14029_v41 = vadd.f32 %v9425_v15, %v14228_v48  ;;  %v9440_v21 = vsel %vm302_vm0, %v14023_v30, 0.0 }
0x1283   : > { %9441 = vadd.xlane.f32.xlu0 %v9440_v21  ;;  %v9449_v28 = vsel %vm302_vm0, %v14036_v50, 0.0 }
0x1284   : > { %v9443_v27 = vsel %vm302_vm0, %v14029_v41, 0.0 }
0x1285   : > { %9444 = vadd.xlane.f32.xlu1 %v9443_v27  ;;  %v10881_v27 = vld [vmem:[%s14142_s3 + $0x30] sm:$0xff]  }
0x1286   : > { %10715 = vmatprep.subr.bf16.mxu0 %v10881_v27 }
0x1287   : > { %9447 = vadd.xlane.f32.xlu0 %v9446_v16  ;;  %10716 = vmatpush3.bf16.msra.mxu0 %v10881_v27  ;;  %v10028_v16 = vld [vmem:[%s14144_s5 + $0x1] ss:$0 sm:$0xff] }
0x1288   : > { %10717 = vmatprep.subr.bf16.mxu0 %v10882_v19 }
0x128b   : > { %9450 = vadd.xlane.f32.xlu0 %v9449_v28  ;;  %10718 = vmatpush3.bf16.msra.mxu0 %v10882_v19 }
0x1310   : > { %v9442_v40 = vpop.xlane.xlu0 %9441 }
0x1311   : > { %v9452_v14 = vmul.f32 0.03125, %v9442_v40 }
0x1312   : > { %v9445_v29 = vpop.xlane.xlu1 %9444 }
0x1313   : > { %v9456_v33 = vsub.f32 %v14023_v30, %v9452_v14  ;;  %v9453_v6 = vmul.f32 0.03125, %v9445_v29 }
0x1314   : > { %v9448_v2 = vpop.xlane.xlu0 %9447 }
0x1315   : > { %v9457_v47 = vsub.f32 %v14029_v41, %v9453_v6  ;;  %v9454_v24 = vmul.f32 0.03125, %v9448_v2  ;;  %v9460_v23 = vmul.f32 %v9456_v33, %v9456_v33 }
0x1317   : > { %v9458_v0 = vsub.f32 %v14026_v46, %v9454_v24  ;;  %v9464_v60 = vsel %vm302_vm0, %v9460_v23, 0.0  ;;  %v9461_v12 = vmul.f32 %v9457_v47, %v9457_v47 }
0x1318   : > { %9465 = vadd.xlane.f32.xlu0 %v9464_v60  ;;  %v9451_v62 = vpop.xlane.xlu0 %9450 }
0x1319   : > { %v9455_v10 = vmul.f32 0.03125, %v9451_v62  ;;  %v9467_v5 = vsel %vm302_vm0, %v9461_v12, 0.0  ;;  %v9462_v42 = vmul.f32 %v9458_v0, %v9458_v0 }
0x131a   : > { %9468 = vadd.xlane.f32.xlu1 %v9467_v5 }
0x131b   : > { %v9459_v11 = vsub.f32 %v14036_v50, %v9455_v10  ;;  %v9470_v34 = vsel %vm302_vm0, %v9462_v42, 0.0  ;;  %v10041_v10 = vld [vmem:[%s14143_s4 + $0x18] ss:$0 sm:$0xff] }
0x131c   : > { %9471 = vadd.xlane.f32.xlu0 %v9470_v34 }
0x131d   : > { %v9463_v56 = vmul.f32 %v9459_v11, %v9459_v11 }
0x131f   : > { %v9473_v36 = vsel %vm302_vm0, %v9463_v56, 0.0 }
0x1320   : > { %9474 = vadd.xlane.f32.xlu1 %v9473_v36 }
0x13a5   : > { %v9466_v54 = vpop.xlane.xlu0 %9465 }
0x13a6   : > { %v9476_v58 = vmul.f32 0.03125, %v9466_v54 }
0x13a7   : > { %v9469_v57 = vpop.xlane.xlu1 %9468 }
0x13a8   : > { %v9480_v43 = vadd.f32 1e-05, %v9476_v58  ;;  %v9477_v26 = vmul.f32 0.03125, %v9469_v57 }
0x13a9   : > { %v9472_v63 = vpop.xlane.xlu0 %9471 }
0x13aa   : > { %11035 = vrsqrt.f32 %v9480_v43  ;;  %v9481_v25 = vadd.f32 1e-05, %v9477_v26  ;;  %v9478_v37 = vmul.f32 0.03125, %v9472_v63 }
0x13ac   : > { %11037 = vrsqrt.f32 %v9481_v25  ;;  %v9482_v13 = vadd.f32 1e-05, %v9478_v37 }
0x13ad   : > { %v9475_v61 = vpop.xlane.xlu1 %9474 }
0x13ae   : > { %11039 = vrsqrt.f32 %v9482_v13  ;;  %v9479_v31 = vmul.f32 0.03125, %v9475_v61 }
0x13b0   : > { %v9483_v35 = vadd.f32 1e-05, %v9479_v31 }
0x13b2   : > { %11041 = vrsqrt.f32 %v9483_v35 }
0x13b4   : > { %v11036_v38 = vpop.eup %11035 }
0x13b5   : > { %v9488_v22 = vmul.f32 %v11036_v38, %v9456_v33 }
0x13b6   : > { %v11038_v59 = vpop.eup %11037 }
0x13b7   : > { %v9489_v17 = vmul.f32 %v11038_v59, %v9457_v47  ;;  %v9496_v7 = vmul.f32 %v10026_v51, %v9488_v22 }
0x13b8   : > { %v11040_v44 = vpop.eup %11039 }
0x13b9   : > { %v9490_v55 = vmul.f32 %v11040_v44, %v9458_v0  ;;  %v9497_v52 = vmul.f32 %v10026_v51, %v9489_v17  ;;  %v9504_v53 = vadd.f32 %v10027_v32, %v9496_v7 }
0x13bb   : > { %v9505_v49 = vadd.f32 %v10027_v32, %v9497_v52  ;;  %v9498_v8 = vmul.f32 %v10026_v51, %v9490_v55 }
0x13bc   : > { %v11042_v3 = vpop.eup %11041 }
0x13bd   : > { %v9491_v39 = vmul.f32 %v11042_v3, %v9459_v11  ;;  %v9508_v15 = vpack.c.bf16 %v9505_v49, %v9504_v53  ;;  %v9506_v18 = vadd.f32 %v10027_v32, %v9498_v8 }
0x13bf   : > { %v9499_v20 = vmul.f32 %v10026_v51, %v9491_v39  ;;  %10707 = vmatprep.mubr.msk.bf16.mxu1 %vm302_vm0, %v9508_v15 }
0x13c1   : > { %v9507_v48 = vadd.f32 %v10027_v32, %v9499_v20 }
0x13c3   : > { %v9509_v21 = vpack.c.bf16 %v9507_v48, %v9506_v18 }
0x13c5   : > { %10708 = vmatmul.mubr.msk.bf16.vlgmr.msra.gmra.mrb[148].mxu1 %vm302_vm0, %v9509_v21 }
0x1498   : > { %v10709_v28 = vpop.f32.mrb[148].mxu1 }
0x1499   : > { %v9582_v40 = vadd.f32 %v10709_v28, %v10028_v16  ;;  %v9573_v14 = vpop.f32.mrb[149].mxu1 }
0x149a   : > { %v9574_v29 = vadd.f32 %v10028_v16, %v9573_v14  ;;  %v10710_v33 = vpop.f32.mrb[150].mxu1 }
0x149b   : > { %v9585_v6 = vadd.f32 %v10710_v33, %v10028_v16  ;;  %v9576_v2 = vpop.f32.mrb[151].mxu1  ;;  %v9590_v24 = vmax.f32 %v9582_v40, 0.0 }
0x149c   : > { %v9577_v47 = vadd.f32 %v10028_v16, %v9576_v2  ;;  %v9588_v0 = vmax.f32 %v9574_v29, 0.0 }
0x149d   : > { %v9591_v23 = vmax.f32 %v9585_v6, 0.0 }
0x149e   : > { %v9589_v60 = vmax.f32 %v9577_v47, 0.0 }
0x149f   : > { %v9593_v12 = vpack.c.bf16 %v9591_v23, %v9590_v24 }
0x14a0   : > { %v9592_v62 = vpack.c.bf16 %v9589_v60, %v9588_v0 }
0x14a2   : > { %10719 = vmatprep.mubr.msk.bf16.mxu0 %vm4932_vm6, %v9592_v62 }
0x14a3   : > { %10720 = vmatmul.mubr.msk.bf16.vlgmr.msra.gmra.mrb[148].mxu0 %vm4932_vm6, %v9593_v12 }
0x1576   : > { %v10721_v5 = vpop.f32.mrb[148].mxu0 }
0x1577   : > { %v9680_v42 = vadd.f32 %v10721_v5, %v10041_v10  ;;  %v9671_v11 = vpop.f32.mrb[149].mxu0 }
0x1578   : > { %v9672_v34 = vadd.f32 %v10041_v10, %v9671_v11  ;;  %v10722_v56 = vpop.f32.mrb[150].mxu0 }
0x1579   : > { %v9688_v36 = vadd.f32 %v9680_v42, %v14026_v46  ;;  %v9683_v9 = vadd.f32 %v10722_v56, %v10041_v10  ;;  %v9674_v4 = vpop.f32.mrb[151].mxu0 }
0x157a   : > { %v9686_v1 = vadd.f32 %v9672_v34, %v14023_v30  ;;  %v9675_v45 = vadd.f32 %v10041_v10, %v9674_v4 }
0x157b   : > { %9692 = vst.msk [vmem:[%s284_s26 + $0x10] sm:$0xff] %vm302_vm0, %v9688_v36  ;;  %v9689_v54 = vadd.f32 %v9683_v9, %v14036_v50 }
0x157c   : > { %9690 = vst.msk [vmem:[%s284_s26] sm:$0xff] %vm302_vm0, %v9686_v1  ;;  %v9687_v46 = vadd.f32 %v9675_v45, %v14029_v41 }
0x157d   : > { %9693 = vst.msk [vmem:[%s284_s26 + $0x18] sm:$0xff] %vm302_vm0, %v9689_v54 }
0x157e   : > { %9691 = vst.msk [vmem:[%s284_s26 + $0x8] sm:$0xff] %vm302_vm0, %v9687_v46 }
0x157f   : > { %11118 = shalt.err (!%p11115_p7)
}
0x1580   : > { %s11119_s11 = scalar_lea.hbm %s14092_s25, 512  ;;  %s11123_s26 = scalar_lea.hbm %s14145_s6, 1024 }
0x1581   : > { %p11120_p9 = scmp.ne.s32.totalorder %s14092_s25, %s11119_s11  ;;  %p11124_p5 = scmp.lt.u32.totalorder %s14092_s25, %s14145_s6 }
0x1582   : > { %p11125_p11 = scmp.lt.u32.totalorder %s11123_s26, %s11119_s11  ;;  %p11127_p4 = scmp.lt.u32.totalorder %s11119_s11, %s14092_s25 }
0x1583   : > { %p11121_p2 = pnand %p11120_p9, %p11321_p12 }
0x1584   : > { %p11126_p1 = por %p11125_p11, %p11124_p5 }
0x1585   : > { %p11122_p0 = pneg %p11121_p2 }
0x1586   : > { %p11128_p6 = por %p11127_p4, %p11126_p1 }
0x1588   : > { %p11129_p8 = pnand %p11128_p6, %p11122_p0 }
0x158a   : > { %11132 = shalt.err (!%p11129_p8)
}
0x158b   : > { %s11194_s7 = smov 128  }
0x158c   : > { %10729 = dma.vmem_to_hbm [thread:$0]  (%p11321_p12), %s14084_s8, 512, %s14092_s25, %s9695_s12, %s11194_s7, %s11194_s7, %s11191_s19  }
0x158d PF: > { %s9723_s15 = sand.u32 1, %s11163_s21   ;;  %p14231_p10 = scmp.ne.s32.totalorder %s14174_s28, 0 }
0x158e   : > { %p14232_p13 = scmp.ge.s32.totalorder %s11175_s24, 2  ;;  %s9724_s29 = scalar_lea.sflag [#allocation4], %s9723_s15 }
0x1590   : > { %p10740_p3 = pnand %p14232_p13, %p14231_p10 }
0x1592   : > { %11158 = dma.done.wait (!%p10740_p3), %s9724_s29, 512  }
0x1593   : > { %11160 = vsyncadd (!%p10740_p3), %s9724_s29, 4294966784  ;;  %p20_p7 = scmp.ge.s32.totalorder %s11286_s9, 4   ;;  %s14233_s21 = smov %s11167_s22 }
0x1594   : > { %s14234_s22 = smov %s11171_s23  ;;  %s14235_s23 = smov %s11317_s13 }
0x1595   : > { %s14236_s24 = smov %s11286_s9  ;;  %22 = sbr.rel (!%p20_p7) target bundleno = 6 (0x6), region = 104 }
0x159c   :  { %9729 = vsyncpa [#allocation3], 1 }
0x159d   :  { %9731 = vsyncpa [#allocation3 + $0x1], 1 }
0x159e   :  { %9732 = vsyncpa [#allocation6], 1 }
0x159f   :  { %9733 = vsyncpa [#allocation4], 1 }
0x15a0   :  { %9735 = vsyncpa [#allocation4 + $0x1], 1 }

</bundles_post_ra>
